<compile_context>
chip_gen: v6e
topology: v6e:2x2x1
jax: 0.10.0
libtpu: 0.0.40
codegen_flags: <defaults>
</compile_context>

<pallas_src>
import functools
import math

import jax
import jax.numpy as jnp
from jax.experimental import pallas as pl
from jax.experimental.pallas import tpu as pltpu


# ----------------------------------------------------------------------------
# The fused decoder-layer kernel (one grid step == one batch element)
# ----------------------------------------------------------------------------
def _layer_kernel(
    # per-batch activations
    q_ref, qpos_ref, mem_ref, mpos_ref, reft_ref,
    # self-attention params
    wqkv_ref, battn_ref, wo_ref, bo_ref, ln1_ref,
    # Box2D MLP fused with bc/dt proj (block-diagonal over the query lane axis)
    k1_ref, b1w_ref, k2_ref, b2w_ref,
    # ISSM projections / per-head params
    wzx_ref, wbcd_ref, wqp_ref, hpar_ref,
    # static selector matrices for the closed-form biscan
    tril_ref, tilel_ref, mge_ref, mle_ref, rsum_ref,
    # output norms / projections
    knw_ref, wok_ref, qn_ref, woq_ref,
    # FFN (memory branch)
    ffnm_ln_ref, w1m_ref, b1m_ref, w2m_ref, b2m_ref,
    # FFN (query branch)
    ffnq_ln_ref, w1q_ref, b1q_ref, w2q_ref, b2q_ref,
    # outputs
    oq_ref, om_ref,
    *, Q, L, D, H, P, N, G, last_layer):
  f32 = jnp.float32
  din = H * P

  def mm(a, w):   # a [M,K] @ w[O,K]^T  (PyTorch nn.Linear layout)
    return jax.lax.dot_general(a, w, (((1,), (1,)), ((), ())),
                               preferred_element_type=f32)

  def mmn(a, b):  # plain a @ b
    return jnp.dot(a, b, preferred_element_type=f32)

  def mmT(a, b):  # contract dim0 with dim0 -> [a.shape[1], b.shape[1]]
    return jax.lax.dot_general(a, b, (((0,), (0,)), ((), ())),
                               preferred_element_type=f32)

  def layer_norm(x, g, b):
    mu = jnp.mean(x, axis=-1, keepdims=True)
    var = jnp.mean((x - mu) ** 2, axis=-1, keepdims=True)
    return (x - mu) * jax.lax.rsqrt(var + 1e-5) * g + b

  def softplus(x):
    return jnp.maximum(x, 0.0) + jnp.log(1.0 + jnp.exp(-jnp.abs(x)))

  # ------------------- self-attention + residual + LayerNorm -------------------
  Dh = D // H
  xq = q_ref[...]                                     # [Q, D] (value input)
  xp = xq + qpos_ref[...]                             # query/key input (with pos)
  wqkv = wqkv_ref[...]
  battn = battn_ref[...]
  qk = mm(xp, wqkv[0:2 * D, :]) + battn[:, 0:2 * D]   # [Q, 2D]
  vv = mm(xq, wqkv[2 * D:3 * D, :]) + battn[:, 2 * D:3 * D]
  scale = 1.0 / math.sqrt(Dh)
  head_out = []
  for h in range(H):
    c0 = h * Dh
    qh = qk[:, c0:c0 + Dh]
    kh = qk[:, D + c0:D + c0 + Dh]
    vh = vv[:, c0:c0 + Dh]
    s = mm(qh, kh) * scale                            # [Q, Q]
    s = s - jnp.max(s, axis=-1, keepdims=True)
    e = jnp.exp(s)
    prob = e * pl.reciprocal(jnp.sum(e, axis=-1, keepdims=True), approx=True)
    head_out.append(mmn(prob, vh))
  attn = jnp.concatenate(head_out, axis=1)            # [Q, D] single full-width value
  q_ln = layer_norm(xq + mm(attn, wo_ref[...]) + bo_ref[...],
                    ln1_ref[0:1, :], ln1_ref[1:2, :])

  # ------------------- geometry, local weights, Box2D dist MLP -----------------
  mpos = mpos_ref[...]                                # [L, 2]
  reft = reft_ref[...]                                # [4, Q]  rows: cx, cy, w, h
  eps = 1e-6
  rel_x = mpos[:, 0:1] - reft[0:1, :]                 # [L, Q]
  rel_y = mpos[:, 1:2] - reft[1:2, :]
  den_x = jnp.maximum(reft[2:3, :], eps) + eps
  den_y = jnp.maximum(reft[3:4, :], eps) + eps
  rnx = rel_x / den_x
  rny = rel_y / den_y
  in_box = ((jnp.abs(rnx) <= 0.5) & (jnp.abs(rny) <= 0.5)).astype(f32)
  feat = jnp.concatenate([rnx, rny, in_box, 1.0 - in_box], axis=1)     # [L, 4Q]
  radius = jnp.maximum(jnp.sqrt((reft[2:3, :] ** 2 + reft[3:4, :] ** 2) * 0.25), 16.0)
  dist = jnp.sqrt(rel_x * rel_x + rel_y * rel_y)
  wmask = jnp.exp(-0.1 * jnp.maximum(dist - radius, 0.0))              # [L, Q(=N)]

  # Box2D MLP (4->dd->dd) fused with bc_proj/dt_proj, block-diagonal per query.
  h1 = jax.nn.relu(mmn(feat, k1_ref[...]) + b1w_ref[...])              # [L, dd*N]
  bcdt = mmn(h1, k2_ref[...]) + b2w_ref[...]                           # [L, (2G+H)*N]
  b_base = bcdt[:, 0:N]
  c_base = bcdt[:, N:2 * N]

  # ------------------------ key_proj / query_proj ------------------------------
  mem = mem_ref[...]                                  # [L, D]
  zx = mm(mem, wzx_ref[...])                          # [L, 2*din]
  z_gate = zx[:, 0:din]
  x_in = zx[:, din:2 * din]                           # [L, din]
  bcd = mm(mem, wbcd_ref[...])                        # [L, 2G+H]
  b_bias = bcd[:, 0:G]                                # [L, 1]
  c_bias = bcd[:, G:2 * G]
  init0 = mm(q_ln, wqp_ref[...])                      # [Q, din]

  Bmat = b_base + b_bias                              # [L, N]
  Cmat = c_base + c_bias

  # --------------------- closed-form bidirectional ISSM scan -------------------
  tril = tril_ref[...]                # [L, L]      tril[t,u] = [u <= t]
  tilel = tilel_ref[...]              # [N, L*N]    tile-over-s selector
  m_ge = mge_ref[...]                 # [L, L*N]    [row >= col//N]
  m_le = mle_ref[...]                 # [L, L*N]    [row <= col//N]
  m_lt = 1.0 - m_ge
  m_eq = m_ge * m_le
  rsum = rsum_ref[...]                # [L*N, L]    segment-sum over n
  ones_ll = jnp.ones((L, L), f32)
  ones_lp = jnp.ones((L, P), f32)
  hpar = hpar_ref[...]                # [3, H] rows: A(=-exp(A_log)), dt_bias, D
  c_t = mmn(Cmat, tilel)              # C[t,n] broadcast over s -> [L, L*N]

  y_parts = []
  last_parts = []
  for h in range(H):
    a_h = hpar[0:1, h:h + 1]
    dtb_h = hpar[1:2, h:h + 1]
    d_h = hpar[2:3, h:h + 1]
    dt_h = softplus(bcdt[:, (2 * G + h) * N:(2 * G + h + 1) * N]
                    + bcd[:, 2 * G + h:2 * G + h + 1] + dtb_h) * wmask   # [L, N]
    dtA_h = dt_h * a_h                                                   # <= 0
    bdt_h = dt_h * Bmat
    x_h = x_in[:, h * P:(h + 1) * P]                                     # [L, P]
    init_h = init0[:, h * P:(h + 1) * P]                                 # [N(=Q), P]

    la = mmn(tril, dtA_h)             # inclusive prefix sums  [L, N]
    ex = la - dtA_h                   # exclusive prefix sums
    la_last = la[L - 1:L, :]          # [1, N]

    dtA_t = mmn(dtA_h, tilel)         # dtA[t,n] over s        [L, L*N]
    x1 = mmn(la, tilel)               # la[t,n]  over s
    ex1 = x1 - dtA_t                  # ex[t,n]  over s
    x2 = mmn(ones_ll, m_le * dtA_t)   # la[s,n]  over t
    ex2 = mmn(ones_ll, m_lt * dtA_t)  # ex[s,n]  over t
    b2 = mmn(ones_ll, m_eq * mmn(bdt_h, tilel))     # bdt[s,n] over t

    # averaged fwd/bwd decay (exponents <= 0 on the valid side; clamp keeps the
    # masked-out side finite so 0*exp never produces NaN)
    e_flat = 0.5 * (m_ge * jnp.exp(jnp.minimum(x1 - x2, 0.0))
                    + m_le * jnp.exp(jnp.minimum(ex2 - ex1, 0.0)))       # [L, L*N]
    m_avg = mmn(c_t * b2 * e_flat, rsum)                                 # [L, L]

    cdec = 0.5 * Cmat * (jnp.exp(la) + jnp.exp(la_last - ex))            # [L, N]
    w_avg = 0.5 * bdt_h * (jnp.exp(la_last - la) + jnp.exp(ex))          # [L, N]

    y_parts.append(mmn(m_avg, x_h) + mmn(cdec, init_h) + x_h * d_h)      # [L, P]
    e_last = jnp.exp(mmT(dtA_h, ones_lp))                                # [N, P]
    last_parts.append(e_last * init_h + mmT(w_avg, x_h))                 # [N, P]

  y_all = jnp.concatenate(y_parts, axis=1)          # [L, din]
  last_q = jnp.concatenate(last_parts, axis=1)      # [Q, din]  (== b q (h d))

  # gated RMSNorm (norm_before_gate=False) + out_key_proj
  xg = y_all * (z_gate * jax.nn.sigmoid(z_gate))
  xn = xg * jax.lax.rsqrt(jnp.mean(xg * xg, axis=-1, keepdims=True) + 1e-5) * knw_ref[...]
  memory2 = mm(xn, wok_ref[...])                    # [L, D]

  # LayerNorm + out_query_proj on the averaged final states
  lq = layer_norm(last_q, qn_ref[0:1, :], qn_ref[1:2, :])
  query2 = mm(lq, woq_ref[...])                     # [Q, D]

  # --------------------- residual + norm2 + FFN + norm3 ------------------------
  def res_ffn(x0, dlt, ln4, w1, b1, w2, b2):
    h0 = layer_norm(x0 + dlt, ln4[0:1, :], ln4[1:2, :])
    t = jax.nn.relu(mm(h0, w1) + b1)
    h2 = h0 + mm(t, w2) + b2
    return layer_norm(h2, ln4[2:3, :], ln4[3:4, :])

  oq_ref[...] = res_ffn(q_ln, query2, ffnq_ln_ref[...], w1q_ref[...],
                        b1q_ref[...], w2q_ref[...], b2q_ref[...])
  if last_layer:
    om_ref[...] = mem
  else:
    om_ref[...] = res_ffn(mem, memory2, ffnm_ln_ref[...], w1m_ref[...],
                          b1m_ref[...], w2m_ref[...], b2m_ref[...])


# ----------------------------------------------------------------------------
# Host-side weight preparation (done once; pure weight reshuffles / fusions)
# ----------------------------------------------------------------------------
def prepare_params(p, cfg):
  din = cfg["d_inner"]
  G = cfg["ngroups"]
  N = cfg["d_state"]
  pp = {}
  pp["wqkv"] = p["attn_in_w"]
  pp["battn"] = p["attn_in_b"][None, :]
  pp["wo"] = p["attn_out_w"]
  pp["bo"] = p["attn_out_b"][None, :]
  pp["ln1"] = jnp.stack([p["norm1_g"], p["norm1_b"]])

  # Box2D MLP fused with bc_proj / dt_proj, block-diagonalised over the N(=Q)
  # lane axis:  out[:, k*N+q] = (Wc @ (W2 @ relu(W1 feat_q + b1) + b2))[k]
  wc = jnp.concatenate([p["bc_proj_w"], p["dt_proj_w"]], axis=0)     # [2G+H, dd]
  wc2 = wc @ p["mlp_w2"]
  bias6 = wc @ p["mlp_b2"]
  eye_n = jnp.eye(N, dtype=jnp.float32)
  pp["k1"] = jnp.kron(p["mlp_w1"].T, eye_n)                          # [4N, dd*N]
  pp["b1w"] = jnp.repeat(p["mlp_b1"], N)[None, :]
  pp["k2"] = jnp.kron(wc2.T, eye_n)                                  # [dd*N, (2G+H)*N]
  pp["b2w"] = jnp.repeat(bias6, N)[None, :]

  kp = p["key_proj_w"]
  pp["wzx"] = kp[:2 * din]                                           # -> z, x (lane aligned)
  pp["wbcd"] = kp[2 * din:]                                          # -> b_bias, c_bias, dt_seq
  pp["wqp"] = p["query_proj_w"]
  pp["hpar"] = jnp.stack([-jnp.exp(p["A_log"]), p["dt_bias"], p["D"]])

  pp["knw"] = p["key_norm_w"][None, :]
  pp["wok"] = p["out_key_proj_w"]
  pp["qn"] = jnp.stack([p["query_norm_g"], p["query_norm_b"]])
  pp["woq"] = p["out_query_proj_w"]
  for name in ("memory", "query"):
    pp[f"ffn_{name}_ln"] = jnp.stack([p[f"norm2_{name}_g"], p[f"norm2_{name}_b"],
                                      p[f"norm3_{name}_g"], p[f"norm3_{name}_b"]])
    pp[f"w1_{name}"] = p[f"linear1_{name}_w"]
    pp[f"b1_{name}"] = p[f"linear1_{name}_b"][None, :]
    pp[f"w2_{name}"] = p[f"linear2_{name}_w"]
    pp[f"b2_{name}"] = p[f"linear2_{name}_b"][None, :]
  return pp


# ----------------------------------------------------------------------------
# SsmTransformerDecoderLayer.forward — one fused pallas_call, grid over batch
# ----------------------------------------------------------------------------
def ssm_transformer_decoder_layer(pp, cfg, query, memory, query_pos_embed,
                                  memory_pos, reference_points, spatial_shapes,
                                  level_start_index, memory_key_padding_mask=None,
                                  layer_idx=None, last_layer=False):
  del spatial_shapes, level_start_index, memory_key_padding_mask
  Bb, Qn, D = query.shape
  L = memory.shape[1]
  H = cfg["nhead"]
  P = cfg["headdim"]
  N = cfg["d_state"]
  G = cfg["ngroups"]
  assert G == 1 and N == Qn and H * P == cfg["d_inner"]
  # TODO(synk): only the 'default' (identity raster) serialization strategy is
  # implemented; spiral/zigzag/query_centered/topk/hybrid use host-side sorting.

  # center/size transposed so kernel geometry is lane-dense over queries
  ref_t = jnp.transpose(reference_points[:, :, 0, :], (0, 2, 1))       # [B, 4, Q]

  # static selector matrices for the lane-dense [L, L*N] biscan formulation
  f32 = jnp.float32
  idx_r = jnp.arange(L)[:, None]
  idx_s = (jnp.arange(L * N) // N)[None, :]
  m_ge = (idx_r >= idx_s).astype(f32)                                  # [L, L*N]
  m_le = (idx_r <= idx_s).astype(f32)
  tril = jnp.tril(jnp.ones((L, L), f32))
  tilel = jnp.tile(jnp.eye(N, dtype=f32), (1, L))                      # [N, L*N]
  rsum = jnp.repeat(jnp.eye(L, dtype=f32), N, axis=0)                  # [L*N, L]

  kernel = functools.partial(_layer_kernel, Q=Qn, L=L, D=D, H=H, P=P, N=N, G=G,
                             last_layer=last_layer)

  def batch_spec(shape):
    nd = len(shape)
    return pl.BlockSpec((None,) + shape, lambda b, _nd=nd: (b,) + (0,) * _nd)

  def param_spec(arr):
    nd = arr.ndim
    return pl.BlockSpec(arr.shape, lambda b, _nd=nd: (0,) * _nd)

  batch_arrays = [query, query_pos_embed, memory, memory_pos, ref_t]
  batch_shapes = [(Qn, D), (Qn, D), (L, D), (L, 2), (4, Qn)]
  param_arrays = [
      pp["wqkv"], pp["battn"], pp["wo"], pp["bo"], pp["ln1"],
      pp["k1"], pp["b1w"], pp["k2"], pp["b2w"],
      pp["wzx"], pp["wbcd"], pp["wqp"], pp["hpar"],
      tril, tilel, m_ge, m_le, rsum,
      pp["knw"], pp["wok"], pp["qn"], pp["woq"],
      pp["ffn_memory_ln"], pp["w1_memory"], pp["b1_memory"], pp["w2_memory"], pp["b2_memory"],
      pp["ffn_query_ln"], pp["w1_query"], pp["b1_query"], pp["w2_query"], pp["b2_query"],
  ]

  in_specs = [batch_spec(s) for s in batch_shapes] + [param_spec(a) for a in param_arrays]

  out_query, out_memory = pl.pallas_call(
      kernel,
      grid=(Bb,),
      in_specs=in_specs,
      out_specs=[pl.BlockSpec((None, Qn, D), lambda b: (b, 0, 0)),
                 pl.BlockSpec((None, L, D), lambda b: (b, 0, 0))],
      out_shape=[jax.ShapeDtypeStruct((Bb, Qn, D), jnp.float32),
                 jax.ShapeDtypeStruct((Bb, L, D), jnp.float32)],
      compiler_params=pltpu.CompilerParams(dimension_semantics=("parallel",)),
  )(*(batch_arrays + param_arrays))
  return out_query, out_memory


# ----------------------------------------------------------------------------
# Deterministic parameter init (synthetic; shapes follow the module __init__)
# ----------------------------------------------------------------------------
def init_params(key, cfg):
  D = cfg["d_model"]
  H = cfg["nhead"]
  FF = cfg["dim_feedforward"]
  din = cfg["d_inner"]
  G = cfg["ngroups"]
  dd = cfg["d_dist"]
  it = iter(jax.random.split(key, 32))

  def w(shape, scale=0.05):
    return jax.random.normal(next(it), shape, jnp.float32) * scale

  p = {}
  p["attn_in_w"] = w((3 * D, D)); p["attn_in_b"] = jnp.zeros((3 * D,), jnp.float32)
  p["attn_out_w"] = w((D, D));    p["attn_out_b"] = jnp.zeros((D,), jnp.float32)
  p["norm1_g"] = jnp.ones((D,), jnp.float32); p["norm1_b"] = jnp.zeros((D,), jnp.float32)
  p["mlp_w1"] = w((dd, 4));  p["mlp_b1"] = jnp.zeros((dd,), jnp.float32)
  p["mlp_w2"] = w((dd, dd)); p["mlp_b2"] = jnp.zeros((dd,), jnp.float32)
  p["key_proj_w"] = w((2 * din + 2 * G + H, D))
  p["query_proj_w"] = w((din, D))
  p["bc_proj_w"] = w((2 * G, dd))
  p["dt_proj_w"] = w((H, dd))
  dt = jnp.exp(jax.random.uniform(next(it), (H,), jnp.float32)
               * (math.log(0.1) - math.log(1e-4)) + math.log(1e-4))
  dt = jnp.maximum(dt, 1e-4)
  p["dt_bias"] = dt + jnp.log(-jnp.expm1(-dt))
  p["A_log"] = jnp.log(jax.random.uniform(next(it), (H,), jnp.float32,
                                          minval=1.0, maxval=16.0))
  p["D"] = jnp.ones((H,), jnp.float32)
  p["out_key_proj_w"] = w((D, din))
  p["out_query_proj_w"] = w((D, din))
  p["key_norm_w"] = jnp.ones((din,), jnp.float32)
  p["query_norm_g"] = jnp.ones((din,), jnp.float32)
  p["query_norm_b"] = jnp.zeros((din,), jnp.float32)
  for name in ("memory", "query"):
    p[f"norm2_{name}_g"] = jnp.ones((D,), jnp.float32)
    p[f"norm2_{name}_b"] = jnp.zeros((D,), jnp.float32)
    p[f"linear1_{name}_w"] = w((FF, D)); p[f"linear1_{name}_b"] = jnp.zeros((FF,), jnp.float32)
    p[f"linear2_{name}_w"] = w((D, FF)); p[f"linear2_{name}_b"] = jnp.zeros((D,), jnp.float32)
    p[f"norm3_{name}_g"] = jnp.ones((D,), jnp.float32)
    p[f"norm3_{name}_b"] = jnp.zeros((D,), jnp.float32)
  return p


# ----------------------------------------------------------------------------
# Main
# ----------------------------------------------------------------------------
if __name__ == "__main__":
  cfg = dict(d_model=32, nhead=4, dim_feedforward=64, num_proposal=8,
             d_dist=16, expand=2, ngroups=1)
  cfg["d_inner"] = cfg["expand"] * cfg["d_model"]          # 64
  cfg["headdim"] = cfg["d_inner"] // cfg["nhead"]          # 16
  cfg["d_state"] = cfg["num_proposal"]                     # 8

  B, L, Q, D = 2, 16, cfg["num_proposal"], cfg["d_model"]

  root = jax.random.PRNGKey(0)
  kp, kq, km, kqp, kmp, kr = jax.random.split(root, 6)
  params = init_params(kp, cfg)
  prepped = prepare_params(params, cfg)

  query = jax.random.normal(kq, (B, Q, D), jnp.float32)
  memory = jax.random.normal(km, (B, L, D), jnp.float32)
  query_pos_embed = jax.random.normal(kqp, (B, Q, D), jnp.float32)
  memory_pos = jax.random.uniform(kmp, (B, L, 2), jnp.float32) * 16.0
  reference_points = jax.random.uniform(kr, (B, Q, 2, 4), jnp.float32,
                                        minval=0.1, maxval=0.9) * 16.0
  spatial_shapes = jnp.array([[4, 4]], dtype=jnp.int32)        # unused by forward
  level_start_index = jnp.array([0], dtype=jnp.int32)          # unused by forward

  out_query, out_memory = ssm_transformer_decoder_layer(
      prepped, cfg, query, memory, query_pos_embed, memory_pos,
      reference_points, spatial_shapes, level_start_index,
      memory_key_padding_mask=None, layer_idx=None, last_layer=False)

  out_query, out_memory = jax.block_until_ready((out_query, out_memory))
  assert out_query.shape == (B, Q, D) and out_memory.shape == (B, L, D)
  assert bool(jnp.all(jnp.isfinite(out_query))) and bool(jnp.all(jnp.isfinite(out_memory)))
  print("KERNEL_OK")
</pallas_src>

<mosaic_0001>
module attributes {stable_mosaic.version = 11 : i64} {
  func.func @_layer_kernel(%arg0: i32, %arg1: memref<1x8x32xf32, #tpu.memory_space<vmem>>, %arg2: memref<1x8x32xf32, #tpu.memory_space<vmem>>, %arg3: memref<1x16x32xf32, #tpu.memory_space<vmem>>, %arg4: memref<1x16x2xf32, #tpu.memory_space<vmem>>, %arg5: memref<1x4x8xf32, #tpu.memory_space<vmem>>, %arg6: memref<96x32xf32, #tpu.memory_space<vmem>>, %arg7: memref<1x96xf32, #tpu.memory_space<vmem>>, %arg8: memref<32x32xf32, #tpu.memory_space<vmem>>, %arg9: memref<1x32xf32, #tpu.memory_space<vmem>>, %arg10: memref<2x32xf32, #tpu.memory_space<vmem>>, %arg11: memref<32x128xf32, #tpu.memory_space<vmem>>, %arg12: memref<1x128xf32, #tpu.memory_space<vmem>>, %arg13: memref<128x48xf32, #tpu.memory_space<vmem>>, %arg14: memref<1x48xf32, #tpu.memory_space<vmem>>, %arg15: memref<128x32xf32, #tpu.memory_space<vmem>>, %arg16: memref<6x32xf32, #tpu.memory_space<vmem>>, %arg17: memref<64x32xf32, #tpu.memory_space<vmem>>, %arg18: memref<3x4xf32, #tpu.memory_space<vmem>>, %arg19: memref<16x16xf32, #tpu.memory_space<vmem>>, %arg20: memref<8x128xf32, #tpu.memory_space<vmem>>, %arg21: memref<16x128xf32, #tpu.memory_space<vmem>>, %arg22: memref<16x128xf32, #tpu.memory_space<vmem>>, %arg23: memref<128x16xf32, #tpu.memory_space<vmem>>, %arg24: memref<1x64xf32, #tpu.memory_space<vmem>>, %arg25: memref<32x64xf32, #tpu.memory_space<vmem>>, %arg26: memref<2x64xf32, #tpu.memory_space<vmem>>, %arg27: memref<32x64xf32, #tpu.memory_space<vmem>>, %arg28: memref<4x32xf32, #tpu.memory_space<vmem>>, %arg29: memref<64x32xf32, #tpu.memory_space<vmem>>, %arg30: memref<1x64xf32, #tpu.memory_space<vmem>>, %arg31: memref<32x64xf32, #tpu.memory_space<vmem>>, %arg32: memref<1x32xf32, #tpu.memory_space<vmem>>, %arg33: memref<4x32xf32, #tpu.memory_space<vmem>>, %arg34: memref<64x32xf32, #tpu.memory_space<vmem>>, %arg35: memref<1x64xf32, #tpu.memory_space<vmem>>, %arg36: memref<32x64xf32, #tpu.memory_space<vmem>>, %arg37: memref<1x32xf32, #tpu.memory_space<vmem>>, %arg38: memref<1x8x32xf32, #tpu.memory_space<vmem>>, %arg39: memref<1x16x32xf32, #tpu.memory_space<vmem>>) attributes {dimension_semantics = [#tpu.dimension_semantics<parallel>], iteration_bounds = array<i64: 2>, scalar_prefetch = 0 : i64, scratch_operands = 0 : i64, tpu.core_type = #tpu.core_type<tc>, window_params = [{transform_indices = @transform_0, window_bounds = array<i64: 1, 8, 32>}, {transform_indices = @transform_1, window_bounds = array<i64: 1, 8, 32>}, {transform_indices = @transform_2, window_bounds = array<i64: 1, 16, 32>}, {transform_indices = @transform_3, window_bounds = array<i64: 1, 16, 2>}, {transform_indices = @transform_4, window_bounds = array<i64: 1, 4, 8>}, {pipeline_mode = #tpu.pipeline_mode<synchronous>, transform_indices = @transform_5, window_bounds = array<i64: 96, 32>}, {pipeline_mode = #tpu.pipeline_mode<synchronous>, transform_indices = @transform_6, window_bounds = array<i64: 1, 96>}, {pipeline_mode = #tpu.pipeline_mode<synchronous>, transform_indices = @transform_7, window_bounds = array<i64: 32, 32>}, {pipeline_mode = #tpu.pipeline_mode<synchronous>, transform_indices = @transform_8, window_bounds = array<i64: 1, 32>}, {pipeline_mode = #tpu.pipeline_mode<synchronous>, transform_indices = @transform_9, window_bounds = array<i64: 2, 32>}, {pipeline_mode = #tpu.pipeline_mode<synchronous>, transform_indices = @transform_10, window_bounds = array<i64: 32, 128>}, {pipeline_mode = #tpu.pipeline_mode<synchronous>, transform_indices = @transform_11, window_bounds = array<i64: 1, 128>}, {pipeline_mode = #tpu.pipeline_mode<synchronous>, transform_indices = @transform_12, window_bounds = array<i64: 128, 48>}, {pipeline_mode = #tpu.pipeline_mode<synchronous>, transform_indices = @transform_13, window_bounds = array<i64: 1, 48>}, {pipeline_mode = #tpu.pipeline_mode<synchronous>, transform_indices = @transform_14, window_bounds = array<i64: 128, 32>}, {pipeline_mode = #tpu.pipeline_mode<synchronous>, transform_indices = @transform_15, window_bounds = array<i64: 6, 32>}, {pipeline_mode = #tpu.pipeline_mode<synchronous>, transform_indices = @transform_16, window_bounds = array<i64: 64, 32>}, {pipeline_mode = #tpu.pipeline_mode<synchronous>, transform_indices = @transform_17, window_bounds = array<i64: 3, 4>}, {pipeline_mode = #tpu.pipeline_mode<synchronous>, transform_indices = @transform_18, window_bounds = array<i64: 16, 16>}, {pipeline_mode = #tpu.pipeline_mode<synchronous>, transform_indices = @transform_19, window_bounds = array<i64: 8, 128>}, {pipeline_mode = #tpu.pipeline_mode<synchronous>, transform_indices = @transform_20, window_bounds = array<i64: 16, 128>}, {pipeline_mode = #tpu.pipeline_mode<synchronous>, transform_indices = @transform_21, window_bounds = array<i64: 16, 128>}, {pipeline_mode = #tpu.pipeline_mode<synchronous>, transform_indices = @transform_22, window_bounds = array<i64: 128, 16>}, {pipeline_mode = #tpu.pipeline_mode<synchronous>, transform_indices = @transform_23, window_bounds = array<i64: 1, 64>}, {pipeline_mode = #tpu.pipeline_mode<synchronous>, transform_indices = @transform_24, window_bounds = array<i64: 32, 64>}, {pipeline_mode = #tpu.pipeline_mode<synchronous>, transform_indices = @transform_25, window_bounds = array<i64: 2, 64>}, {pipeline_mode = #tpu.pipeline_mode<synchronous>, transform_indices = @transform_26, window_bounds = array<i64: 32, 64>}, {pipeline_mode = #tpu.pipeline_mode<synchronous>, transform_indices = @transform_27, window_bounds = array<i64: 4, 32>}, {pipeline_mode = #tpu.pipeline_mode<synchronous>, transform_indices = @transform_28, window_bounds = array<i64: 64, 32>}, {pipeline_mode = #tpu.pipeline_mode<synchronous>, transform_indices = @transform_29, window_bounds = array<i64: 1, 64>}, {pipeline_mode = #tpu.pipeline_mode<synchronous>, transform_indices = @transform_30, window_bounds = array<i64: 32, 64>}, {pipeline_mode = #tpu.pipeline_mode<synchronous>, transform_indices = @transform_31, window_bounds = array<i64: 1, 32>}, {pipeline_mode = #tpu.pipeline_mode<synchronous>, transform_indices = @transform_32, window_bounds = array<i64: 4, 32>}, {pipeline_mode = #tpu.pipeline_mode<synchronous>, transform_indices = @transform_33, window_bounds = array<i64: 64, 32>}, {pipeline_mode = #tpu.pipeline_mode<synchronous>, transform_indices = @transform_34, window_bounds = array<i64: 1, 64>}, {pipeline_mode = #tpu.pipeline_mode<synchronous>, transform_indices = @transform_35, window_bounds = array<i64: 32, 64>}, {pipeline_mode = #tpu.pipeline_mode<synchronous>, transform_indices = @transform_36, window_bounds = array<i64: 1, 32>}, {transform_indices = @transform_37, window_bounds = array<i64: 1, 8, 32>}, {transform_indices = @transform_38, window_bounds = array<i64: 1, 16, 32>}]} {
    %c0 = arith.constant 0 : index
    %c0_0 = arith.constant 0 : index
    %c0_1 = arith.constant 0 : index
    %0 = vector.load %arg1[%c0, %c0_0, %c0_1] : memref<1x8x32xf32, #tpu.memory_space<vmem>>, vector<1x8x32xf32>
    %1 = vector.shape_cast %0 : vector<1x8x32xf32> to vector<8x32xf32>
    %c0_2 = arith.constant 0 : index
    %c0_3 = arith.constant 0 : index
    %c0_4 = arith.constant 0 : index
    %2 = vector.load %arg2[%c0_2, %c0_3, %c0_4] : memref<1x8x32xf32, #tpu.memory_space<vmem>>, vector<1x8x32xf32>
    %3 = vector.shape_cast %2 : vector<1x8x32xf32> to vector<8x32xf32>
    %4 = arith.addf %1, %3 : vector<8x32xf32>
    %c0_5 = arith.constant 0 : index
    %c0_6 = arith.constant 0 : index
    %5 = vector.load %arg6[%c0_5, %c0_6] : memref<96x32xf32, #tpu.memory_space<vmem>>, vector<96x32xf32>
    %c0_7 = arith.constant 0 : index
    %c0_8 = arith.constant 0 : index
    %6 = vector.load %arg7[%c0_7, %c0_8] : memref<1x96xf32, #tpu.memory_space<vmem>>, vector<1x96xf32>
    %7 = vector.extract_strided_slice %5 {offsets = [0, 0], sizes = [64, 32], strides = [1, 1]} : vector<96x32xf32> to vector<64x32xf32>
    %cst = arith.constant dense<0.000000e+00> : vector<8x64xf32>
    %8 = tpu.matmul %4, %7, %cst {dimension_numbers = #tpu.dot_dimension_numbers<[1], [1], [0], [0], [0, 0, 1, 0], [], []>} : vector<8x32xf32>, vector<64x32xf32>, vector<8x64xf32> -> vector<8x64xf32>
    %9 = vector.extract_strided_slice %6 {offsets = [0, 0], sizes = [1, 64], strides = [1, 1]} : vector<1x96xf32> to vector<1x64xf32>
    %10 = vector.broadcast %9 : vector<1x64xf32> to vector<8x64xf32>
    %11 = arith.addf %8, %10 : vector<8x64xf32>
    %12 = vector.extract_strided_slice %5 {offsets = [64, 0], sizes = [32, 32], strides = [1, 1]} : vector<96x32xf32> to vector<32x32xf32>
    %cst_9 = arith.constant dense<0.000000e+00> : vector<8x32xf32>
    %13 = tpu.matmul %1, %12, %cst_9 {dimension_numbers = #tpu.dot_dimension_numbers<[1], [1], [0], [0], [0, 0, 1, 0], [], []>} : vector<8x32xf32>, vector<32x32xf32>, vector<8x32xf32> -> vector<8x32xf32>
    %14 = vector.extract_strided_slice %6 {offsets = [0, 64], sizes = [1, 32], strides = [1, 1]} : vector<1x96xf32> to vector<1x32xf32>
    %15 = vector.broadcast %14 : vector<1x32xf32> to vector<8x32xf32>
    %16 = arith.addf %13, %15 : vector<8x32xf32>
    %17 = vector.extract_strided_slice %11 {offsets = [0, 0], sizes = [8, 8], strides = [1, 1]} : vector<8x64xf32> to vector<8x8xf32>
    %18 = vector.extract_strided_slice %11 {offsets = [0, 32], sizes = [8, 8], strides = [1, 1]} : vector<8x64xf32> to vector<8x8xf32>
    %19 = vector.extract_strided_slice %16 {offsets = [0, 0], sizes = [8, 8], strides = [1, 1]} : vector<8x32xf32> to vector<8x8xf32>
    %cst_10 = arith.constant dense<0.000000e+00> : vector<8x8xf32>
    %20 = tpu.matmul %17, %18, %cst_10 {dimension_numbers = #tpu.dot_dimension_numbers<[1], [1], [0], [0], [0, 0, 1, 0], [], []>} : vector<8x8xf32>, vector<8x8xf32>, vector<8x8xf32> -> vector<8x8xf32>
    %cst_11 = arith.constant 0.353553385 : f32
    %21 = vector.broadcast %cst_11 : f32 to vector<8x8xf32>
    %22 = arith.mulf %20, %21 : vector<8x8xf32>
    %cst_12 = arith.constant dense<0xFF800000> : vector<8xf32>
    %23 = vector.multi_reduction <maximumf>, %22, %cst_12 [1] : vector<8x8xf32> to vector<8xf32>
    %24 = vector.shape_cast %23 : vector<8xf32> to vector<8x1xf32>
    %25 = vector.broadcast %24 : vector<8x1xf32> to vector<8x8xf32>
    %26 = arith.subf %22, %25 : vector<8x8xf32>
    %27 = math.exp %26 : vector<8x8xf32>
    %cst_13 = arith.constant dense<0.000000e+00> : vector<8xf32>
    %28 = vector.multi_reduction <add>, %27, %cst_13 [1] : vector<8x8xf32> to vector<8xf32>
    %29 = vector.shape_cast %28 : vector<8xf32> to vector<8x1xf32>
    %30 = tpu.reciprocal %29 {approx = true} : vector<8x1xf32> -> vector<8x1xf32>
    %31 = vector.broadcast %30 : vector<8x1xf32> to vector<8x8xf32>
    %32 = arith.mulf %27, %31 : vector<8x8xf32>
    %cst_14 = arith.constant dense<0.000000e+00> : vector<8x8xf32>
    %33 = tpu.matmul %32, %19, %cst_14 {dimension_numbers = #tpu.dot_dimension_numbers<[1], [0], [0], [1], [0, 0, 1, 1], [], []>} : vector<8x8xf32>, vector<8x8xf32>, vector<8x8xf32> -> vector<8x8xf32>
    %34 = vector.extract_strided_slice %11 {offsets = [0, 8], sizes = [8, 8], strides = [1, 1]} : vector<8x64xf32> to vector<8x8xf32>
    %35 = vector.extract_strided_slice %11 {offsets = [0, 40], sizes = [8, 8], strides = [1, 1]} : vector<8x64xf32> to vector<8x8xf32>
    %36 = vector.extract_strided_slice %16 {offsets = [0, 8], sizes = [8, 8], strides = [1, 1]} : vector<8x32xf32> to vector<8x8xf32>
    %cst_15 = arith.constant dense<0.000000e+00> : vector<8x8xf32>
    %37 = tpu.matmul %34, %35, %cst_15 {dimension_numbers = #tpu.dot_dimension_numbers<[1], [1], [0], [0], [0, 0, 1, 0], [], []>} : vector<8x8xf32>, vector<8x8xf32>, vector<8x8xf32> -> vector<8x8xf32>
    %cst_16 = arith.constant 0.353553385 : f32
    %38 = vector.broadcast %cst_16 : f32 to vector<8x8xf32>
    %39 = arith.mulf %37, %38 : vector<8x8xf32>
    %cst_17 = arith.constant dense<0xFF800000> : vector<8xf32>
    %40 = vector.multi_reduction <maximumf>, %39, %cst_17 [1] : vector<8x8xf32> to vector<8xf32>
    %41 = vector.shape_cast %40 : vector<8xf32> to vector<8x1xf32>
    %42 = vector.broadcast %41 : vector<8x1xf32> to vector<8x8xf32>
    %43 = arith.subf %39, %42 : vector<8x8xf32>
    %44 = math.exp %43 : vector<8x8xf32>
    %cst_18 = arith.constant dense<0.000000e+00> : vector<8xf32>
    %45 = vector.multi_reduction <add>, %44, %cst_18 [1] : vector<8x8xf32> to vector<8xf32>
    %46 = vector.shape_cast %45 : vector<8xf32> to vector<8x1xf32>
    %47 = tpu.reciprocal %46 {approx = true} : vector<8x1xf32> -> vector<8x1xf32>
    %48 = vector.broadcast %47 : vector<8x1xf32> to vector<8x8xf32>
    %49 = arith.mulf %44, %48 : vector<8x8xf32>
    %cst_19 = arith.constant dense<0.000000e+00> : vector<8x8xf32>
    %50 = tpu.matmul %49, %36, %cst_19 {dimension_numbers = #tpu.dot_dimension_numbers<[1], [0], [0], [1], [0, 0, 1, 1], [], []>} : vector<8x8xf32>, vector<8x8xf32>, vector<8x8xf32> -> vector<8x8xf32>
    %51 = vector.extract_strided_slice %11 {offsets = [0, 16], sizes = [8, 8], strides = [1, 1]} : vector<8x64xf32> to vector<8x8xf32>
    %52 = vector.extract_strided_slice %11 {offsets = [0, 48], sizes = [8, 8], strides = [1, 1]} : vector<8x64xf32> to vector<8x8xf32>
    %53 = vector.extract_strided_slice %16 {offsets = [0, 16], sizes = [8, 8], strides = [1, 1]} : vector<8x32xf32> to vector<8x8xf32>
    %cst_20 = arith.constant dense<0.000000e+00> : vector<8x8xf32>
    %54 = tpu.matmul %51, %52, %cst_20 {dimension_numbers = #tpu.dot_dimension_numbers<[1], [1], [0], [0], [0, 0, 1, 0], [], []>} : vector<8x8xf32>, vector<8x8xf32>, vector<8x8xf32> -> vector<8x8xf32>
    %cst_21 = arith.constant 0.353553385 : f32
    %55 = vector.broadcast %cst_21 : f32 to vector<8x8xf32>
    %56 = arith.mulf %54, %55 : vector<8x8xf32>
    %cst_22 = arith.constant dense<0xFF800000> : vector<8xf32>
    %57 = vector.multi_reduction <maximumf>, %56, %cst_22 [1] : vector<8x8xf32> to vector<8xf32>
    %58 = vector.shape_cast %57 : vector<8xf32> to vector<8x1xf32>
    %59 = vector.broadcast %58 : vector<8x1xf32> to vector<8x8xf32>
    %60 = arith.subf %56, %59 : vector<8x8xf32>
    %61 = math.exp %60 : vector<8x8xf32>
    %cst_23 = arith.constant dense<0.000000e+00> : vector<8xf32>
    %62 = vector.multi_reduction <add>, %61, %cst_23 [1] : vector<8x8xf32> to vector<8xf32>
    %63 = vector.shape_cast %62 : vector<8xf32> to vector<8x1xf32>
    %64 = tpu.reciprocal %63 {approx = true} : vector<8x1xf32> -> vector<8x1xf32>
    %65 = vector.broadcast %64 : vector<8x1xf32> to vector<8x8xf32>
    %66 = arith.mulf %61, %65 : vector<8x8xf32>
    %cst_24 = arith.constant dense<0.000000e+00> : vector<8x8xf32>
    %67 = tpu.matmul %66, %53, %cst_24 {dimension_numbers = #tpu.dot_dimension_numbers<[1], [0], [0], [1], [0, 0, 1, 1], [], []>} : vector<8x8xf32>, vector<8x8xf32>, vector<8x8xf32> -> vector<8x8xf32>
    %68 = vector.extract_strided_slice %11 {offsets = [0, 24], sizes = [8, 8], strides = [1, 1]} : vector<8x64xf32> to vector<8x8xf32>
    %69 = vector.extract_strided_slice %11 {offsets = [0, 56], sizes = [8, 8], strides = [1, 1]} : vector<8x64xf32> to vector<8x8xf32>
    %70 = vector.extract_strided_slice %16 {offsets = [0, 24], sizes = [8, 8], strides = [1, 1]} : vector<8x32xf32> to vector<8x8xf32>
    %cst_25 = arith.constant dense<0.000000e+00> : vector<8x8xf32>
    %71 = tpu.matmul %68, %69, %cst_25 {dimension_numbers = #tpu.dot_dimension_numbers<[1], [1], [0], [0], [0, 0, 1, 0], [], []>} : vector<8x8xf32>, vector<8x8xf32>, vector<8x8xf32> -> vector<8x8xf32>
    %cst_26 = arith.constant 0.353553385 : f32
    %72 = vector.broadcast %cst_26 : f32 to vector<8x8xf32>
    %73 = arith.mulf %71, %72 : vector<8x8xf32>
    %cst_27 = arith.constant dense<0xFF800000> : vector<8xf32>
    %74 = vector.multi_reduction <maximumf>, %73, %cst_27 [1] : vector<8x8xf32> to vector<8xf32>
    %75 = vector.shape_cast %74 : vector<8xf32> to vector<8x1xf32>
    %76 = vector.broadcast %75 : vector<8x1xf32> to vector<8x8xf32>
    %77 = arith.subf %73, %76 : vector<8x8xf32>
    %78 = math.exp %77 : vector<8x8xf32>
    %cst_28 = arith.constant dense<0.000000e+00> : vector<8xf32>
    %79 = vector.multi_reduction <add>, %78, %cst_28 [1] : vector<8x8xf32> to vector<8xf32>
    %80 = vector.shape_cast %79 : vector<8xf32> to vector<8x1xf32>
    %81 = tpu.reciprocal %80 {approx = true} : vector<8x1xf32> -> vector<8x1xf32>
    %82 = vector.broadcast %81 : vector<8x1xf32> to vector<8x8xf32>
    %83 = arith.mulf %78, %82 : vector<8x8xf32>
    %cst_29 = arith.constant dense<0.000000e+00> : vector<8x8xf32>
    %84 = tpu.matmul %83, %70, %cst_29 {dimension_numbers = #tpu.dot_dimension_numbers<[1], [0], [0], [1], [0, 0, 1, 1], [], []>} : vector<8x8xf32>, vector<8x8xf32>, vector<8x8xf32> -> vector<8x8xf32>
    %85 = tpu.concatenate %33, %50, %67, %84 in 1 : vector<8x8xf32>, vector<8x8xf32>, vector<8x8xf32>, vector<8x8xf32> -> vector<8x32xf32>
    %c0_30 = arith.constant 0 : index
    %c0_31 = arith.constant 0 : index
    %86 = vector.load %arg8[%c0_30, %c0_31] : memref<32x32xf32, #tpu.memory_space<vmem>>, vector<32x32xf32>
    %cst_32 = arith.constant dense<0.000000e+00> : vector<8x32xf32>
    %87 = tpu.matmul %85, %86, %cst_32 {dimension_numbers = #tpu.dot_dimension_numbers<[1], [1], [0], [0], [0, 0, 1, 0], [], []>} : vector<8x32xf32>, vector<32x32xf32>, vector<8x32xf32> -> vector<8x32xf32>
    %88 = arith.addf %1, %87 : vector<8x32xf32>
    %c0_33 = arith.constant 0 : index
    %c0_34 = arith.constant 0 : index
    %89 = vector.load %arg9[%c0_33, %c0_34] : memref<1x32xf32, #tpu.memory_space<vmem>>, vector<1x32xf32>
    %90 = vector.broadcast %89 : vector<1x32xf32> to vector<8x32xf32>
    %91 = arith.addf %88, %90 : vector<8x32xf32>
    %c0_35 = arith.constant 0 : index
    %c0_36 = arith.constant 0 : index
    %92 = vector.load %arg10[%c0_35, %c0_36] : memref<2x32xf32, #tpu.memory_space<vmem>>, vector<1x32xf32>
    %c1 = arith.constant 1 : index
    %c0_37 = arith.constant 0 : index
    %93 = vector.load %arg10[%c1, %c0_37] : memref<2x32xf32, #tpu.memory_space<vmem>>, vector<1x32xf32>
    %cst_38 = arith.constant dense<0.000000e+00> : vector<8xf32>
    %94 = vector.multi_reduction <add>, %91, %cst_38 [1] : vector<8x32xf32> to vector<8xf32>
    %95 = vector.shape_cast %94 : vector<8xf32> to vector<8x1xf32>
    %cst_39 = arith.constant 3.200000e+01 : f32
    %96 = vector.broadcast %cst_39 : f32 to vector<8x1xf32>
    %97 = arith.divf %95, %96 : vector<8x1xf32>
    %98 = vector.broadcast %97 : vector<8x1xf32> to vector<8x32xf32>
    %99 = arith.subf %91, %98 : vector<8x32xf32>
    %100 = arith.mulf %99, %99 : vector<8x32xf32>
    %cst_40 = arith.constant dense<0.000000e+00> : vector<8xf32>
    %101 = vector.multi_reduction <add>, %100, %cst_40 [1] : vector<8x32xf32> to vector<8xf32>
    %102 = vector.shape_cast %101 : vector<8xf32> to vector<8x1xf32>
    %cst_41 = arith.constant 3.200000e+01 : f32
    %103 = vector.broadcast %cst_41 : f32 to vector<8x1xf32>
    %104 = arith.divf %102, %103 : vector<8x1xf32>
    %105 = vector.broadcast %97 : vector<8x1xf32> to vector<8x32xf32>
    %106 = arith.subf %91, %105 : vector<8x32xf32>
    %cst_42 = arith.constant 9.99999974E-6 : f32
    %107 = vector.broadcast %cst_42 : f32 to vector<8x1xf32>
    %108 = arith.addf %104, %107 : vector<8x1xf32>
    %109 = math.rsqrt %108 : vector<8x1xf32>
    %110 = vector.broadcast %109 : vector<8x1xf32> to vector<8x32xf32>
    %111 = arith.mulf %106, %110 : vector<8x32xf32>
    %112 = vector.broadcast %92 : vector<1x32xf32> to vector<8x32xf32>
    %113 = arith.mulf %111, %112 : vector<8x32xf32>
    %114 = vector.broadcast %93 : vector<1x32xf32> to vector<8x32xf32>
    %115 = arith.addf %113, %114 : vector<8x32xf32>
    %c0_43 = arith.constant 0 : index
    %c0_44 = arith.constant 0 : index
    %c0_45 = arith.constant 0 : index
    %116 = vector.load %arg4[%c0_43, %c0_44, %c0_45] : memref<1x16x2xf32, #tpu.memory_space<vmem>>, vector<1x16x2xf32>
    %117 = vector.shape_cast %116 : vector<1x16x2xf32> to vector<16x2xf32>
    %c0_46 = arith.constant 0 : index
    %c0_47 = arith.constant 0 : index
    %c0_48 = arith.constant 0 : index
    %118 = vector.load %arg5[%c0_46, %c0_47, %c0_48] : memref<1x4x8xf32, #tpu.memory_space<vmem>>, vector<1x4x8xf32>
    %119 = vector.shape_cast %118 : vector<1x4x8xf32> to vector<4x8xf32>
    %120 = vector.extract_strided_slice %117 {offsets = [0, 0], sizes = [16, 1], strides = [1, 1]} : vector<16x2xf32> to vector<16x1xf32>
    %121 = vector.extract_strided_slice %119 {offsets = [0, 0], sizes = [1, 8], strides = [1, 1]} : vector<4x8xf32> to vector<1x8xf32>
    %122 = vector.broadcast %120 : vector<16x1xf32> to vector<16x8xf32>
    %123 = vector.broadcast %121 : vector<1x8xf32> to vector<16x8xf32>
    %124 = arith.subf %122, %123 : vector<16x8xf32>
    %125 = vector.extract_strided_slice %117 {offsets = [0, 1], sizes = [16, 1], strides = [1, 1]} : vector<16x2xf32> to vector<16x1xf32>
    %126 = vector.extract_strided_slice %119 {offsets = [1, 0], sizes = [1, 8], strides = [1, 1]} : vector<4x8xf32> to vector<1x8xf32>
    %127 = vector.broadcast %125 : vector<16x1xf32> to vector<16x8xf32>
    %128 = vector.broadcast %126 : vector<1x8xf32> to vector<16x8xf32>
    %129 = arith.subf %127, %128 : vector<16x8xf32>
    %130 = vector.extract_strided_slice %119 {offsets = [2, 0], sizes = [1, 8], strides = [1, 1]} : vector<4x8xf32> to vector<1x8xf32>
    %cst_49 = arith.constant 9.99999997E-7 : f32
    %131 = vector.broadcast %cst_49 : f32 to vector<1x8xf32>
    %132 = arith.maximumf %130, %131 : vector<1x8xf32>
    %cst_50 = arith.constant 9.99999997E-7 : f32
    %133 = vector.broadcast %cst_50 : f32 to vector<1x8xf32>
    %134 = arith.addf %132, %133 : vector<1x8xf32>
    %135 = vector.extract_strided_slice %119 {offsets = [3, 0], sizes = [1, 8], strides = [1, 1]} : vector<4x8xf32> to vector<1x8xf32>
    %cst_51 = arith.constant 9.99999997E-7 : f32
    %136 = vector.broadcast %cst_51 : f32 to vector<1x8xf32>
    %137 = arith.maximumf %135, %136 : vector<1x8xf32>
    %cst_52 = arith.constant 9.99999997E-7 : f32
    %138 = vector.broadcast %cst_52 : f32 to vector<1x8xf32>
    %139 = arith.addf %137, %138 : vector<1x8xf32>
    %140 = vector.broadcast %134 : vector<1x8xf32> to vector<16x8xf32>
    %141 = arith.divf %124, %140 : vector<16x8xf32>
    %142 = vector.broadcast %139 : vector<1x8xf32> to vector<16x8xf32>
    %143 = arith.divf %129, %142 : vector<16x8xf32>
    %144 = math.absf %141 : vector<16x8xf32>
    %cst_53 = arith.constant 5.000000e-01 : f32
    %145 = vector.broadcast %cst_53 : f32 to vector<16x8xf32>
    %146 = arith.cmpf ole, %144, %145 : vector<16x8xf32>
    %147 = math.absf %143 : vector<16x8xf32>
    %cst_54 = arith.constant 5.000000e-01 : f32
    %148 = vector.broadcast %cst_54 : f32 to vector<16x8xf32>
    %149 = arith.cmpf ole, %147, %148 : vector<16x8xf32>
    %150 = arith.andi %146, %149 : vector<16x8xi1>
    %151 = arith.extui %150 : vector<16x8xi1> to vector<16x8xi32>
    %152 = arith.sitofp %151 : vector<16x8xi32> to vector<16x8xf32>
    %cst_55 = arith.constant 1.000000e+00 : f32
    %153 = vector.broadcast %cst_55 : f32 to vector<16x8xf32>
    %154 = arith.subf %153, %152 : vector<16x8xf32>
    %155 = tpu.concatenate %141, %143, %152, %154 in 1 : vector<16x8xf32>, vector<16x8xf32>, vector<16x8xf32>, vector<16x8xf32> -> vector<16x32xf32>
    %156 = vector.extract_strided_slice %119 {offsets = [2, 0], sizes = [1, 8], strides = [1, 1]} : vector<4x8xf32> to vector<1x8xf32>
    %157 = arith.mulf %156, %156 : vector<1x8xf32>
    %158 = vector.extract_strided_slice %119 {offsets = [3, 0], sizes = [1, 8], strides = [1, 1]} : vector<4x8xf32> to vector<1x8xf32>
    %159 = arith.mulf %158, %158 : vector<1x8xf32>
    %160 = arith.addf %157, %159 : vector<1x8xf32>
    %cst_56 = arith.constant 2.500000e-01 : f32
    %161 = vector.broadcast %cst_56 : f32 to vector<1x8xf32>
    %162 = arith.mulf %160, %161 : vector<1x8xf32>
    %163 = math.sqrt %162 : vector<1x8xf32>
    %cst_57 = arith.constant 1.600000e+01 : f32
    %164 = vector.broadcast %cst_57 : f32 to vector<1x8xf32>
    %165 = arith.maximumf %163, %164 : vector<1x8xf32>
    %166 = arith.mulf %124, %124 : vector<16x8xf32>
    %167 = arith.mulf %129, %129 : vector<16x8xf32>
    %168 = arith.addf %166, %167 : vector<16x8xf32>
    %169 = math.sqrt %168 : vector<16x8xf32>
    %170 = vector.broadcast %165 : vector<1x8xf32> to vector<16x8xf32>
    %171 = arith.subf %169, %170 : vector<16x8xf32>
    %cst_58 = arith.constant 0.000000e+00 : f32
    %172 = vector.broadcast %cst_58 : f32 to vector<16x8xf32>
    %173 = arith.maximumf %171, %172 : vector<16x8xf32>
    %cst_59 = arith.constant -1.000000e-01 : f32
    %174 = vector.broadcast %cst_59 : f32 to vector<16x8xf32>
    %175 = arith.mulf %174, %173 : vector<16x8xf32>
    %176 = math.exp %175 : vector<16x8xf32>
    %c0_60 = arith.constant 0 : index
    %c0_61 = arith.constant 0 : index
    %177 = vector.load %arg11[%c0_60, %c0_61] : memref<32x128xf32, #tpu.memory_space<vmem>>, vector<32x128xf32>
    %cst_62 = arith.constant dense<0.000000e+00> : vector<16x128xf32>
    %178 = tpu.matmul %155, %177, %cst_62 {dimension_numbers = #tpu.dot_dimension_numbers<[1], [0], [0], [1], [0, 0, 1, 1], [], []>} : vector<16x32xf32>, vector<32x128xf32>, vector<16x128xf32> -> vector<16x128xf32>
    %c0_63 = arith.constant 0 : index
    %c0_64 = arith.constant 0 : index
    %179 = vector.load %arg12[%c0_63, %c0_64] : memref<1x128xf32, #tpu.memory_space<vmem>>, vector<1x128xf32>
    %180 = vector.broadcast %179 : vector<1x128xf32> to vector<16x128xf32>
    %181 = arith.addf %178, %180 : vector<16x128xf32>
    %cst_65 = arith.constant 0.000000e+00 : f32
    %182 = vector.broadcast %cst_65 : f32 to vector<16x128xf32>
    %183 = arith.maximumf %181, %182 : vector<16x128xf32>
    %c0_66 = arith.constant 0 : index
    %c0_67 = arith.constant 0 : index
    %184 = vector.load %arg13[%c0_66, %c0_67] : memref<128x48xf32, #tpu.memory_space<vmem>>, vector<128x48xf32>
    %cst_68 = arith.constant dense<0.000000e+00> : vector<16x48xf32>
    %185 = tpu.matmul %183, %184, %cst_68 {dimension_numbers = #tpu.dot_dimension_numbers<[1], [0], [0], [1], [0, 0, 1, 1], [], []>} : vector<16x128xf32>, vector<128x48xf32>, vector<16x48xf32> -> vector<16x48xf32>
    %c0_69 = arith.constant 0 : index
    %c0_70 = arith.constant 0 : index
    %186 = vector.load %arg14[%c0_69, %c0_70] : memref<1x48xf32, #tpu.memory_space<vmem>>, vector<1x48xf32>
    %187 = vector.broadcast %186 : vector<1x48xf32> to vector<16x48xf32>
    %188 = arith.addf %185, %187 : vector<16x48xf32>
    %189 = vector.extract_strided_slice %188 {offsets = [0, 0], sizes = [16, 8], strides = [1, 1]} : vector<16x48xf32> to vector<16x8xf32>
    %190 = vector.extract_strided_slice %188 {offsets = [0, 8], sizes = [16, 8], strides = [1, 1]} : vector<16x48xf32> to vector<16x8xf32>
    %c0_71 = arith.constant 0 : index
    %c0_72 = arith.constant 0 : index
    %c0_73 = arith.constant 0 : index
    %191 = vector.load %arg3[%c0_71, %c0_72, %c0_73] : memref<1x16x32xf32, #tpu.memory_space<vmem>>, vector<1x16x32xf32>
    %192 = vector.shape_cast %191 : vector<1x16x32xf32> to vector<16x32xf32>
    %c0_74 = arith.constant 0 : index
    %c0_75 = arith.constant 0 : index
    %193 = vector.load %arg15[%c0_74, %c0_75] : memref<128x32xf32, #tpu.memory_space<vmem>>, vector<128x32xf32>
    %cst_76 = arith.constant dense<0.000000e+00> : vector<16x128xf32>
    %194 = tpu.matmul %192, %193, %cst_76 {dimension_numbers = #tpu.dot_dimension_numbers<[1], [1], [0], [0], [0, 0, 1, 0], [], []>} : vector<16x32xf32>, vector<128x32xf32>, vector<16x128xf32> -> vector<16x128xf32>
    %195 = vector.extract_strided_slice %194 {offsets = [0, 0], sizes = [16, 64], strides = [1, 1]} : vector<16x128xf32> to vector<16x64xf32>
    %196 = vector.extract_strided_slice %194 {offsets = [0, 64], sizes = [16, 64], strides = [1, 1]} : vector<16x128xf32> to vector<16x64xf32>
    %c0_77 = arith.constant 0 : index
    %c0_78 = arith.constant 0 : index
    %197 = vector.load %arg16[%c0_77, %c0_78] : memref<6x32xf32, #tpu.memory_space<vmem>>, vector<6x32xf32>
    %cst_79 = arith.constant dense<0.000000e+00> : vector<16x6xf32>
    %198 = tpu.matmul %192, %197, %cst_79 {dimension_numbers = #tpu.dot_dimension_numbers<[1], [1], [0], [0], [0, 0, 1, 0], [], []>} : vector<16x32xf32>, vector<6x32xf32>, vector<16x6xf32> -> vector<16x6xf32>
    %199 = vector.extract_strided_slice %198 {offsets = [0, 0], sizes = [16, 1], strides = [1, 1]} : vector<16x6xf32> to vector<16x1xf32>
    %200 = vector.extract_strided_slice %198 {offsets = [0, 1], sizes = [16, 1], strides = [1, 1]} : vector<16x6xf32> to vector<16x1xf32>
    %c0_80 = arith.constant 0 : index
    %c0_81 = arith.constant 0 : index
    %201 = vector.load %arg17[%c0_80, %c0_81] : memref<64x32xf32, #tpu.memory_space<vmem>>, vector<64x32xf32>
    %cst_82 = arith.constant dense<0.000000e+00> : vector<8x64xf32>
    %202 = tpu.matmul %115, %201, %cst_82 {dimension_numbers = #tpu.dot_dimension_numbers<[1], [1], [0], [0], [0, 0, 1, 0], [], []>} : vector<8x32xf32>, vector<64x32xf32>, vector<8x64xf32> -> vector<8x64xf32>
    %203 = vector.broadcast %199 : vector<16x1xf32> to vector<16x8xf32>
    %204 = arith.addf %189, %203 : vector<16x8xf32>
    %205 = vector.broadcast %200 : vector<16x1xf32> to vector<16x8xf32>
    %206 = arith.addf %190, %205 : vector<16x8xf32>
    %c0_83 = arith.constant 0 : index
    %c0_84 = arith.constant 0 : index
    %207 = vector.load %arg19[%c0_83, %c0_84] : memref<16x16xf32, #tpu.memory_space<vmem>>, vector<16x16xf32>
    %c0_85 = arith.constant 0 : index
    %c0_86 = arith.constant 0 : index
    %208 = vector.load %arg20[%c0_85, %c0_86] : memref<8x128xf32, #tpu.memory_space<vmem>>, vector<8x128xf32>
    %c0_87 = arith.constant 0 : index
    %c0_88 = arith.constant 0 : index
    %209 = vector.load %arg21[%c0_87, %c0_88] : memref<16x128xf32, #tpu.memory_space<vmem>>, vector<16x128xf32>
    %c0_89 = arith.constant 0 : index
    %c0_90 = arith.constant 0 : index
    %210 = vector.load %arg22[%c0_89, %c0_90] : memref<16x128xf32, #tpu.memory_space<vmem>>, vector<16x128xf32>
    %cst_91 = arith.constant 1.000000e+00 : f32
    %211 = vector.broadcast %cst_91 : f32 to vector<16x128xf32>
    %212 = arith.subf %211, %209 : vector<16x128xf32>
    %213 = arith.mulf %209, %210 : vector<16x128xf32>
    %c0_92 = arith.constant 0 : index
    %c0_93 = arith.constant 0 : index
    %214 = vector.load %arg23[%c0_92, %c0_93] : memref<128x16xf32, #tpu.memory_space<vmem>>, vector<128x16xf32>
    %cst_94 = arith.constant 1.000000e+00 : f32
    %215 = vector.broadcast %cst_94 : f32 to vector<16x16xf32>
    %cst_95 = arith.constant 1.000000e+00 : f32
    %216 = vector.broadcast %cst_95 : f32 to vector<16x16xf32>
    %c0_96 = arith.constant 0 : index
    %c0_97 = arith.constant 0 : index
    %217 = vector.load %arg18[%c0_96, %c0_97] : memref<3x4xf32, #tpu.memory_space<vmem>>, vector<3x4xf32>
    %cst_98 = arith.constant dense<0.000000e+00> : vector<16x128xf32>
    %218 = tpu.matmul %206, %208, %cst_98 {dimension_numbers = #tpu.dot_dimension_numbers<[1], [0], [0], [1], [0, 0, 1, 1], [], []>} : vector<16x8xf32>, vector<8x128xf32>, vector<16x128xf32> -> vector<16x128xf32>
    %219 = vector.extract_strided_slice %217 {offsets = [0, 0], sizes = [1, 1], strides = [1, 1]} : vector<3x4xf32> to vector<1x1xf32>
    %220 = vector.extract_strided_slice %217 {offsets = [1, 0], sizes = [1, 1], strides = [1, 1]} : vector<3x4xf32> to vector<1x1xf32>
    %221 = vector.extract_strided_slice %217 {offsets = [2, 0], sizes = [1, 1], strides = [1, 1]} : vector<3x4xf32> to vector<1x1xf32>
    %222 = vector.extract_strided_slice %188 {offsets = [0, 16], sizes = [16, 8], strides = [1, 1]} : vector<16x48xf32> to vector<16x8xf32>
    %223 = vector.extract_strided_slice %198 {offsets = [0, 2], sizes = [16, 1], strides = [1, 1]} : vector<16x6xf32> to vector<16x1xf32>
    %224 = vector.broadcast %223 : vector<16x1xf32> to vector<16x8xf32>
    %225 = arith.addf %222, %224 : vector<16x8xf32>
    %226 = vector.broadcast %220 : vector<1x1xf32> to vector<16x8xf32>
    %227 = arith.addf %225, %226 : vector<16x8xf32>
    %cst_99 = arith.constant 0.000000e+00 : f32
    %228 = vector.broadcast %cst_99 : f32 to vector<16x8xf32>
    %229 = arith.maximumf %227, %228 : vector<16x8xf32>
    %230 = math.absf %227 : vector<16x8xf32>
    %cst_100 = arith.constant 0.000000e+00 : f32
    %231 = vector.broadcast %cst_100 : f32 to vector<16x8xf32>
    %232 = arith.subf %231, %230 : vector<16x8xf32>
    %233 = math.exp %232 : vector<16x8xf32>
    %cst_101 = arith.constant 1.000000e+00 : f32
    %234 = vector.broadcast %cst_101 : f32 to vector<16x8xf32>
    %235 = arith.addf %234, %233 : vector<16x8xf32>
    %236 = math.log %235 : vector<16x8xf32>
    %237 = arith.addf %229, %236 : vector<16x8xf32>
    %238 = arith.mulf %237, %176 : vector<16x8xf32>
    %239 = vector.broadcast %219 : vector<1x1xf32> to vector<16x8xf32>
    %240 = arith.mulf %238, %239 : vector<16x8xf32>
    %241 = arith.mulf %238, %204 : vector<16x8xf32>
    %242 = vector.extract_strided_slice %196 {offsets = [0, 0], sizes = [16, 16], strides = [1, 1]} : vector<16x64xf32> to vector<16x16xf32>
    %243 = vector.extract_strided_slice %202 {offsets = [0, 0], sizes = [8, 16], strides = [1, 1]} : vector<8x64xf32> to vector<8x16xf32>
    %cst_102 = arith.constant dense<0.000000e+00> : vector<16x8xf32>
    %244 = tpu.matmul %207, %240, %cst_102 {dimension_numbers = #tpu.dot_dimension_numbers<[1], [0], [0], [1], [0, 0, 1, 1], [], []>} : vector<16x16xf32>, vector<16x8xf32>, vector<16x8xf32> -> vector<16x8xf32>
    %245 = arith.subf %244, %240 : vector<16x8xf32>
    %246 = vector.extract_strided_slice %244 {offsets = [15, 0], sizes = [1, 8], strides = [1, 1]} : vector<16x8xf32> to vector<1x8xf32>
    %cst_103 = arith.constant dense<0.000000e+00> : vector<16x128xf32>
    %247 = tpu.matmul %240, %208, %cst_103 {dimension_numbers = #tpu.dot_dimension_numbers<[1], [0], [0], [1], [0, 0, 1, 1], [], []>} : vector<16x8xf32>, vector<8x128xf32>, vector<16x128xf32> -> vector<16x128xf32>
    %cst_104 = arith.constant dense<0.000000e+00> : vector<16x128xf32>
    %248 = tpu.matmul %244, %208, %cst_104 {dimension_numbers = #tpu.dot_dimension_numbers<[1], [0], [0], [1], [0, 0, 1, 1], [], []>} : vector<16x8xf32>, vector<8x128xf32>, vector<16x128xf32> -> vector<16x128xf32>
    %249 = arith.subf %248, %247 : vector<16x128xf32>
    %250 = arith.mulf %210, %247 : vector<16x128xf32>
    %cst_105 = arith.constant dense<0.000000e+00> : vector<16x128xf32>
    %251 = tpu.matmul %215, %250, %cst_105 {dimension_numbers = #tpu.dot_dimension_numbers<[1], [0], [0], [1], [0, 0, 1, 1], [], []>} : vector<16x16xf32>, vector<16x128xf32>, vector<16x128xf32> -> vector<16x128xf32>
    %252 = arith.mulf %212, %247 : vector<16x128xf32>
    %cst_106 = arith.constant dense<0.000000e+00> : vector<16x128xf32>
    %253 = tpu.matmul %215, %252, %cst_106 {dimension_numbers = #tpu.dot_dimension_numbers<[1], [0], [0], [1], [0, 0, 1, 1], [], []>} : vector<16x16xf32>, vector<16x128xf32>, vector<16x128xf32> -> vector<16x128xf32>
    %cst_107 = arith.constant dense<0.000000e+00> : vector<16x128xf32>
    %254 = tpu.matmul %241, %208, %cst_107 {dimension_numbers = #tpu.dot_dimension_numbers<[1], [0], [0], [1], [0, 0, 1, 1], [], []>} : vector<16x8xf32>, vector<8x128xf32>, vector<16x128xf32> -> vector<16x128xf32>
    %255 = arith.mulf %213, %254 : vector<16x128xf32>
    %cst_108 = arith.constant dense<0.000000e+00> : vector<16x128xf32>
    %256 = tpu.matmul %215, %255, %cst_108 {dimension_numbers = #tpu.dot_dimension_numbers<[1], [0], [0], [1], [0, 0, 1, 1], [], []>} : vector<16x16xf32>, vector<16x128xf32>, vector<16x128xf32> -> vector<16x128xf32>
    %257 = arith.subf %248, %251 : vector<16x128xf32>
    %cst_109 = arith.constant 0.000000e+00 : f32
    %258 = vector.broadcast %cst_109 : f32 to vector<16x128xf32>
    %259 = arith.minimumf %257, %258 : vector<16x128xf32>
    %260 = math.exp %259 : vector<16x128xf32>
    %261 = arith.mulf %209, %260 : vector<16x128xf32>
    %262 = arith.subf %253, %249 : vector<16x128xf32>
    %cst_110 = arith.constant 0.000000e+00 : f32
    %263 = vector.broadcast %cst_110 : f32 to vector<16x128xf32>
    %264 = arith.minimumf %262, %263 : vector<16x128xf32>
    %265 = math.exp %264 : vector<16x128xf32>
    %266 = arith.mulf %210, %265 : vector<16x128xf32>
    %267 = arith.addf %261, %266 : vector<16x128xf32>
    %cst_111 = arith.constant 5.000000e-01 : f32
    %268 = vector.broadcast %cst_111 : f32 to vector<16x128xf32>
    %269 = arith.mulf %268, %267 : vector<16x128xf32>
    %270 = arith.mulf %218, %256 : vector<16x128xf32>
    %271 = arith.mulf %270, %269 : vector<16x128xf32>
    %cst_112 = arith.constant dense<0.000000e+00> : vector<16x16xf32>
    %272 = tpu.matmul %271, %214, %cst_112 {dimension_numbers = #tpu.dot_dimension_numbers<[1], [0], [0], [1], [0, 0, 1, 1], [], []>} : vector<16x128xf32>, vector<128x16xf32>, vector<16x16xf32> -> vector<16x16xf32>
    %cst_113 = arith.constant 5.000000e-01 : f32
    %273 = vector.broadcast %cst_113 : f32 to vector<16x8xf32>
    %274 = arith.mulf %273, %206 : vector<16x8xf32>
    %275 = math.exp %244 : vector<16x8xf32>
    %276 = vector.broadcast %246 : vector<1x8xf32> to vector<16x8xf32>
    %277 = arith.subf %276, %245 : vector<16x8xf32>
    %278 = math.exp %277 : vector<16x8xf32>
    %279 = arith.addf %275, %278 : vector<16x8xf32>
    %280 = arith.mulf %274, %279 : vector<16x8xf32>
    %cst_114 = arith.constant 5.000000e-01 : f32
    %281 = vector.broadcast %cst_114 : f32 to vector<16x8xf32>
    %282 = arith.mulf %281, %241 : vector<16x8xf32>
    %283 = vector.broadcast %246 : vector<1x8xf32> to vector<16x8xf32>
    %284 = arith.subf %283, %244 : vector<16x8xf32>
    %285 = math.exp %284 : vector<16x8xf32>
    %286 = math.exp %245 : vector<16x8xf32>
    %287 = arith.addf %285, %286 : vector<16x8xf32>
    %288 = arith.mulf %282, %287 : vector<16x8xf32>
    %cst_115 = arith.constant dense<0.000000e+00> : vector<16x16xf32>
    %289 = tpu.matmul %272, %242, %cst_115 {dimension_numbers = #tpu.dot_dimension_numbers<[1], [0], [0], [1], [0, 0, 1, 1], [], []>} : vector<16x16xf32>, vector<16x16xf32>, vector<16x16xf32> -> vector<16x16xf32>
    %cst_116 = arith.constant dense<0.000000e+00> : vector<16x16xf32>
    %290 = tpu.matmul %280, %243, %cst_116 {dimension_numbers = #tpu.dot_dimension_numbers<[1], [0], [0], [1], [0, 0, 1, 1], [], []>} : vector<16x8xf32>, vector<8x16xf32>, vector<16x16xf32> -> vector<16x16xf32>
    %291 = arith.addf %289, %290 : vector<16x16xf32>
    %292 = vector.broadcast %221 : vector<1x1xf32> to vector<16x16xf32>
    %293 = arith.mulf %242, %292 : vector<16x16xf32>
    %294 = arith.addf %291, %293 : vector<16x16xf32>
    %cst_117 = arith.constant dense<0.000000e+00> : vector<8x16xf32>
    %295 = tpu.matmul %240, %216, %cst_117 {dimension_numbers = #tpu.dot_dimension_numbers<[0], [0], [1], [1], [0, 1, 1, 1], [], []>} : vector<16x8xf32>, vector<16x16xf32>, vector<8x16xf32> -> vector<8x16xf32>
    %296 = math.exp %295 : vector<8x16xf32>
    %297 = arith.mulf %296, %243 : vector<8x16xf32>
    %cst_118 = arith.constant dense<0.000000e+00> : vector<8x16xf32>
    %298 = tpu.matmul %288, %242, %cst_118 {dimension_numbers = #tpu.dot_dimension_numbers<[0], [0], [1], [1], [0, 1, 1, 1], [], []>} : vector<16x8xf32>, vector<16x16xf32>, vector<8x16xf32> -> vector<8x16xf32>
    %299 = arith.addf %297, %298 : vector<8x16xf32>
    %300 = vector.extract_strided_slice %217 {offsets = [0, 1], sizes = [1, 1], strides = [1, 1]} : vector<3x4xf32> to vector<1x1xf32>
    %301 = vector.extract_strided_slice %217 {offsets = [1, 1], sizes = [1, 1], strides = [1, 1]} : vector<3x4xf32> to vector<1x1xf32>
    %302 = vector.extract_strided_slice %217 {offsets = [2, 1], sizes = [1, 1], strides = [1, 1]} : vector<3x4xf32> to vector<1x1xf32>
    %303 = vector.extract_strided_slice %188 {offsets = [0, 24], sizes = [16, 8], strides = [1, 1]} : vector<16x48xf32> to vector<16x8xf32>
    %304 = vector.extract_strided_slice %198 {offsets = [0, 3], sizes = [16, 1], strides = [1, 1]} : vector<16x6xf32> to vector<16x1xf32>
    %305 = vector.broadcast %304 : vector<16x1xf32> to vector<16x8xf32>
    %306 = arith.addf %303, %305 : vector<16x8xf32>
    %307 = vector.broadcast %301 : vector<1x1xf32> to vector<16x8xf32>
    %308 = arith.addf %306, %307 : vector<16x8xf32>
    %cst_119 = arith.constant 0.000000e+00 : f32
    %309 = vector.broadcast %cst_119 : f32 to vector<16x8xf32>
    %310 = arith.maximumf %308, %309 : vector<16x8xf32>
    %311 = math.absf %308 : vector<16x8xf32>
    %cst_120 = arith.constant 0.000000e+00 : f32
    %312 = vector.broadcast %cst_120 : f32 to vector<16x8xf32>
    %313 = arith.subf %312, %311 : vector<16x8xf32>
    %314 = math.exp %313 : vector<16x8xf32>
    %cst_121 = arith.constant 1.000000e+00 : f32
    %315 = vector.broadcast %cst_121 : f32 to vector<16x8xf32>
    %316 = arith.addf %315, %314 : vector<16x8xf32>
    %317 = math.log %316 : vector<16x8xf32>
    %318 = arith.addf %310, %317 : vector<16x8xf32>
    %319 = arith.mulf %318, %176 : vector<16x8xf32>
    %320 = vector.broadcast %300 : vector<1x1xf32> to vector<16x8xf32>
    %321 = arith.mulf %319, %320 : vector<16x8xf32>
    %322 = arith.mulf %319, %204 : vector<16x8xf32>
    %323 = vector.extract_strided_slice %196 {offsets = [0, 16], sizes = [16, 16], strides = [1, 1]} : vector<16x64xf32> to vector<16x16xf32>
    %324 = vector.extract_strided_slice %202 {offsets = [0, 16], sizes = [8, 16], strides = [1, 1]} : vector<8x64xf32> to vector<8x16xf32>
    %cst_122 = arith.constant dense<0.000000e+00> : vector<16x8xf32>
    %325 = tpu.matmul %207, %321, %cst_122 {dimension_numbers = #tpu.dot_dimension_numbers<[1], [0], [0], [1], [0, 0, 1, 1], [], []>} : vector<16x16xf32>, vector<16x8xf32>, vector<16x8xf32> -> vector<16x8xf32>
    %326 = arith.subf %325, %321 : vector<16x8xf32>
    %327 = vector.extract_strided_slice %325 {offsets = [15, 0], sizes = [1, 8], strides = [1, 1]} : vector<16x8xf32> to vector<1x8xf32>
    %cst_123 = arith.constant dense<0.000000e+00> : vector<16x128xf32>
    %328 = tpu.matmul %321, %208, %cst_123 {dimension_numbers = #tpu.dot_dimension_numbers<[1], [0], [0], [1], [0, 0, 1, 1], [], []>} : vector<16x8xf32>, vector<8x128xf32>, vector<16x128xf32> -> vector<16x128xf32>
    %cst_124 = arith.constant dense<0.000000e+00> : vector<16x128xf32>
    %329 = tpu.matmul %325, %208, %cst_124 {dimension_numbers = #tpu.dot_dimension_numbers<[1], [0], [0], [1], [0, 0, 1, 1], [], []>} : vector<16x8xf32>, vector<8x128xf32>, vector<16x128xf32> -> vector<16x128xf32>
    %330 = arith.subf %329, %328 : vector<16x128xf32>
    %331 = arith.mulf %210, %328 : vector<16x128xf32>
    %cst_125 = arith.constant dense<0.000000e+00> : vector<16x128xf32>
    %332 = tpu.matmul %215, %331, %cst_125 {dimension_numbers = #tpu.dot_dimension_numbers<[1], [0], [0], [1], [0, 0, 1, 1], [], []>} : vector<16x16xf32>, vector<16x128xf32>, vector<16x128xf32> -> vector<16x128xf32>
    %333 = arith.mulf %212, %328 : vector<16x128xf32>
    %cst_126 = arith.constant dense<0.000000e+00> : vector<16x128xf32>
    %334 = tpu.matmul %215, %333, %cst_126 {dimension_numbers = #tpu.dot_dimension_numbers<[1], [0], [0], [1], [0, 0, 1, 1], [], []>} : vector<16x16xf32>, vector<16x128xf32>, vector<16x128xf32> -> vector<16x128xf32>
    %cst_127 = arith.constant dense<0.000000e+00> : vector<16x128xf32>
    %335 = tpu.matmul %322, %208, %cst_127 {dimension_numbers = #tpu.dot_dimension_numbers<[1], [0], [0], [1], [0, 0, 1, 1], [], []>} : vector<16x8xf32>, vector<8x128xf32>, vector<16x128xf32> -> vector<16x128xf32>
    %336 = arith.mulf %213, %335 : vector<16x128xf32>
    %cst_128 = arith.constant dense<0.000000e+00> : vector<16x128xf32>
    %337 = tpu.matmul %215, %336, %cst_128 {dimension_numbers = #tpu.dot_dimension_numbers<[1], [0], [0], [1], [0, 0, 1, 1], [], []>} : vector<16x16xf32>, vector<16x128xf32>, vector<16x128xf32> -> vector<16x128xf32>
    %338 = arith.subf %329, %332 : vector<16x128xf32>
    %cst_129 = arith.constant 0.000000e+00 : f32
    %339 = vector.broadcast %cst_129 : f32 to vector<16x128xf32>
    %340 = arith.minimumf %338, %339 : vector<16x128xf32>
    %341 = math.exp %340 : vector<16x128xf32>
    %342 = arith.mulf %209, %341 : vector<16x128xf32>
    %343 = arith.subf %334, %330 : vector<16x128xf32>
    %cst_130 = arith.constant 0.000000e+00 : f32
    %344 = vector.broadcast %cst_130 : f32 to vector<16x128xf32>
    %345 = arith.minimumf %343, %344 : vector<16x128xf32>
    %346 = math.exp %345 : vector<16x128xf32>
    %347 = arith.mulf %210, %346 : vector<16x128xf32>
    %348 = arith.addf %342, %347 : vector<16x128xf32>
    %cst_131 = arith.constant 5.000000e-01 : f32
    %349 = vector.broadcast %cst_131 : f32 to vector<16x128xf32>
    %350 = arith.mulf %349, %348 : vector<16x128xf32>
    %351 = arith.mulf %218, %337 : vector<16x128xf32>
    %352 = arith.mulf %351, %350 : vector<16x128xf32>
    %cst_132 = arith.constant dense<0.000000e+00> : vector<16x16xf32>
    %353 = tpu.matmul %352, %214, %cst_132 {dimension_numbers = #tpu.dot_dimension_numbers<[1], [0], [0], [1], [0, 0, 1, 1], [], []>} : vector<16x128xf32>, vector<128x16xf32>, vector<16x16xf32> -> vector<16x16xf32>
    %cst_133 = arith.constant 5.000000e-01 : f32
    %354 = vector.broadcast %cst_133 : f32 to vector<16x8xf32>
    %355 = arith.mulf %354, %206 : vector<16x8xf32>
    %356 = math.exp %325 : vector<16x8xf32>
    %357 = vector.broadcast %327 : vector<1x8xf32> to vector<16x8xf32>
    %358 = arith.subf %357, %326 : vector<16x8xf32>
    %359 = math.exp %358 : vector<16x8xf32>
    %360 = arith.addf %356, %359 : vector<16x8xf32>
    %361 = arith.mulf %355, %360 : vector<16x8xf32>
    %cst_134 = arith.constant 5.000000e-01 : f32
    %362 = vector.broadcast %cst_134 : f32 to vector<16x8xf32>
    %363 = arith.mulf %362, %322 : vector<16x8xf32>
    %364 = vector.broadcast %327 : vector<1x8xf32> to vector<16x8xf32>
    %365 = arith.subf %364, %325 : vector<16x8xf32>
    %366 = math.exp %365 : vector<16x8xf32>
    %367 = math.exp %326 : vector<16x8xf32>
    %368 = arith.addf %366, %367 : vector<16x8xf32>
    %369 = arith.mulf %363, %368 : vector<16x8xf32>
    %cst_135 = arith.constant dense<0.000000e+00> : vector<16x16xf32>
    %370 = tpu.matmul %353, %323, %cst_135 {dimension_numbers = #tpu.dot_dimension_numbers<[1], [0], [0], [1], [0, 0, 1, 1], [], []>} : vector<16x16xf32>, vector<16x16xf32>, vector<16x16xf32> -> vector<16x16xf32>
    %cst_136 = arith.constant dense<0.000000e+00> : vector<16x16xf32>
    %371 = tpu.matmul %361, %324, %cst_136 {dimension_numbers = #tpu.dot_dimension_numbers<[1], [0], [0], [1], [0, 0, 1, 1], [], []>} : vector<16x8xf32>, vector<8x16xf32>, vector<16x16xf32> -> vector<16x16xf32>
    %372 = arith.addf %370, %371 : vector<16x16xf32>
    %373 = vector.broadcast %302 : vector<1x1xf32> to vector<16x16xf32>
    %374 = arith.mulf %323, %373 : vector<16x16xf32>
    %375 = arith.addf %372, %374 : vector<16x16xf32>
    %cst_137 = arith.constant dense<0.000000e+00> : vector<8x16xf32>
    %376 = tpu.matmul %321, %216, %cst_137 {dimension_numbers = #tpu.dot_dimension_numbers<[0], [0], [1], [1], [0, 1, 1, 1], [], []>} : vector<16x8xf32>, vector<16x16xf32>, vector<8x16xf32> -> vector<8x16xf32>
    %377 = math.exp %376 : vector<8x16xf32>
    %378 = arith.mulf %377, %324 : vector<8x16xf32>
    %cst_138 = arith.constant dense<0.000000e+00> : vector<8x16xf32>
    %379 = tpu.matmul %369, %323, %cst_138 {dimension_numbers = #tpu.dot_dimension_numbers<[0], [0], [1], [1], [0, 1, 1, 1], [], []>} : vector<16x8xf32>, vector<16x16xf32>, vector<8x16xf32> -> vector<8x16xf32>
    %380 = arith.addf %378, %379 : vector<8x16xf32>
    %381 = vector.extract_strided_slice %217 {offsets = [0, 2], sizes = [1, 1], strides = [1, 1]} : vector<3x4xf32> to vector<1x1xf32>
    %382 = vector.extract_strided_slice %217 {offsets = [1, 2], sizes = [1, 1], strides = [1, 1]} : vector<3x4xf32> to vector<1x1xf32>
    %383 = vector.extract_strided_slice %217 {offsets = [2, 2], sizes = [1, 1], strides = [1, 1]} : vector<3x4xf32> to vector<1x1xf32>
    %384 = vector.extract_strided_slice %188 {offsets = [0, 32], sizes = [16, 8], strides = [1, 1]} : vector<16x48xf32> to vector<16x8xf32>
    %385 = vector.extract_strided_slice %198 {offsets = [0, 4], sizes = [16, 1], strides = [1, 1]} : vector<16x6xf32> to vector<16x1xf32>
    %386 = vector.broadcast %385 : vector<16x1xf32> to vector<16x8xf32>
    %387 = arith.addf %384, %386 : vector<16x8xf32>
    %388 = vector.broadcast %382 : vector<1x1xf32> to vector<16x8xf32>
    %389 = arith.addf %387, %388 : vector<16x8xf32>
    %cst_139 = arith.constant 0.000000e+00 : f32
    %390 = vector.broadcast %cst_139 : f32 to vector<16x8xf32>
    %391 = arith.maximumf %389, %390 : vector<16x8xf32>
    %392 = math.absf %389 : vector<16x8xf32>
    %cst_140 = arith.constant 0.000000e+00 : f32
    %393 = vector.broadcast %cst_140 : f32 to vector<16x8xf32>
    %394 = arith.subf %393, %392 : vector<16x8xf32>
    %395 = math.exp %394 : vector<16x8xf32>
    %cst_141 = arith.constant 1.000000e+00 : f32
    %396 = vector.broadcast %cst_141 : f32 to vector<16x8xf32>
    %397 = arith.addf %396, %395 : vector<16x8xf32>
    %398 = math.log %397 : vector<16x8xf32>
    %399 = arith.addf %391, %398 : vector<16x8xf32>
    %400 = arith.mulf %399, %176 : vector<16x8xf32>
    %401 = vector.broadcast %381 : vector<1x1xf32> to vector<16x8xf32>
    %402 = arith.mulf %400, %401 : vector<16x8xf32>
    %403 = arith.mulf %400, %204 : vector<16x8xf32>
    %404 = vector.extract_strided_slice %196 {offsets = [0, 32], sizes = [16, 16], strides = [1, 1]} : vector<16x64xf32> to vector<16x16xf32>
    %405 = vector.extract_strided_slice %202 {offsets = [0, 32], sizes = [8, 16], strides = [1, 1]} : vector<8x64xf32> to vector<8x16xf32>
    %cst_142 = arith.constant dense<0.000000e+00> : vector<16x8xf32>
    %406 = tpu.matmul %207, %402, %cst_142 {dimension_numbers = #tpu.dot_dimension_numbers<[1], [0], [0], [1], [0, 0, 1, 1], [], []>} : vector<16x16xf32>, vector<16x8xf32>, vector<16x8xf32> -> vector<16x8xf32>
    %407 = arith.subf %406, %402 : vector<16x8xf32>
    %408 = vector.extract_strided_slice %406 {offsets = [15, 0], sizes = [1, 8], strides = [1, 1]} : vector<16x8xf32> to vector<1x8xf32>
    %cst_143 = arith.constant dense<0.000000e+00> : vector<16x128xf32>
    %409 = tpu.matmul %402, %208, %cst_143 {dimension_numbers = #tpu.dot_dimension_numbers<[1], [0], [0], [1], [0, 0, 1, 1], [], []>} : vector<16x8xf32>, vector<8x128xf32>, vector<16x128xf32> -> vector<16x128xf32>
    %cst_144 = arith.constant dense<0.000000e+00> : vector<16x128xf32>
    %410 = tpu.matmul %406, %208, %cst_144 {dimension_numbers = #tpu.dot_dimension_numbers<[1], [0], [0], [1], [0, 0, 1, 1], [], []>} : vector<16x8xf32>, vector<8x128xf32>, vector<16x128xf32> -> vector<16x128xf32>
    %411 = arith.subf %410, %409 : vector<16x128xf32>
    %412 = arith.mulf %210, %409 : vector<16x128xf32>
    %cst_145 = arith.constant dense<0.000000e+00> : vector<16x128xf32>
    %413 = tpu.matmul %215, %412, %cst_145 {dimension_numbers = #tpu.dot_dimension_numbers<[1], [0], [0], [1], [0, 0, 1, 1], [], []>} : vector<16x16xf32>, vector<16x128xf32>, vector<16x128xf32> -> vector<16x128xf32>
    %414 = arith.mulf %212, %409 : vector<16x128xf32>
    %cst_146 = arith.constant dense<0.000000e+00> : vector<16x128xf32>
    %415 = tpu.matmul %215, %414, %cst_146 {dimension_numbers = #tpu.dot_dimension_numbers<[1], [0], [0], [1], [0, 0, 1, 1], [], []>} : vector<16x16xf32>, vector<16x128xf32>, vector<16x128xf32> -> vector<16x128xf32>
    %cst_147 = arith.constant dense<0.000000e+00> : vector<16x128xf32>
    %416 = tpu.matmul %403, %208, %cst_147 {dimension_numbers = #tpu.dot_dimension_numbers<[1], [0], [0], [1], [0, 0, 1, 1], [], []>} : vector<16x8xf32>, vector<8x128xf32>, vector<16x128xf32> -> vector<16x128xf32>
    %417 = arith.mulf %213, %416 : vector<16x128xf32>
    %cst_148 = arith.constant dense<0.000000e+00> : vector<16x128xf32>
    %418 = tpu.matmul %215, %417, %cst_148 {dimension_numbers = #tpu.dot_dimension_numbers<[1], [0], [0], [1], [0, 0, 1, 1], [], []>} : vector<16x16xf32>, vector<16x128xf32>, vector<16x128xf32> -> vector<16x128xf32>
    %419 = arith.subf %410, %413 : vector<16x128xf32>
    %cst_149 = arith.constant 0.000000e+00 : f32
    %420 = vector.broadcast %cst_149 : f32 to vector<16x128xf32>
    %421 = arith.minimumf %419, %420 : vector<16x128xf32>
    %422 = math.exp %421 : vector<16x128xf32>
    %423 = arith.mulf %209, %422 : vector<16x128xf32>
    %424 = arith.subf %415, %411 : vector<16x128xf32>
    %cst_150 = arith.constant 0.000000e+00 : f32
    %425 = vector.broadcast %cst_150 : f32 to vector<16x128xf32>
    %426 = arith.minimumf %424, %425 : vector<16x128xf32>
    %427 = math.exp %426 : vector<16x128xf32>
    %428 = arith.mulf %210, %427 : vector<16x128xf32>
    %429 = arith.addf %423, %428 : vector<16x128xf32>
    %cst_151 = arith.constant 5.000000e-01 : f32
    %430 = vector.broadcast %cst_151 : f32 to vector<16x128xf32>
    %431 = arith.mulf %430, %429 : vector<16x128xf32>
    %432 = arith.mulf %218, %418 : vector<16x128xf32>
    %433 = arith.mulf %432, %431 : vector<16x128xf32>
    %cst_152 = arith.constant dense<0.000000e+00> : vector<16x16xf32>
    %434 = tpu.matmul %433, %214, %cst_152 {dimension_numbers = #tpu.dot_dimension_numbers<[1], [0], [0], [1], [0, 0, 1, 1], [], []>} : vector<16x128xf32>, vector<128x16xf32>, vector<16x16xf32> -> vector<16x16xf32>
    %cst_153 = arith.constant 5.000000e-01 : f32
    %435 = vector.broadcast %cst_153 : f32 to vector<16x8xf32>
    %436 = arith.mulf %435, %206 : vector<16x8xf32>
    %437 = math.exp %406 : vector<16x8xf32>
    %438 = vector.broadcast %408 : vector<1x8xf32> to vector<16x8xf32>
    %439 = arith.subf %438, %407 : vector<16x8xf32>
    %440 = math.exp %439 : vector<16x8xf32>
    %441 = arith.addf %437, %440 : vector<16x8xf32>
    %442 = arith.mulf %436, %441 : vector<16x8xf32>
    %cst_154 = arith.constant 5.000000e-01 : f32
    %443 = vector.broadcast %cst_154 : f32 to vector<16x8xf32>
    %444 = arith.mulf %443, %403 : vector<16x8xf32>
    %445 = vector.broadcast %408 : vector<1x8xf32> to vector<16x8xf32>
    %446 = arith.subf %445, %406 : vector<16x8xf32>
    %447 = math.exp %446 : vector<16x8xf32>
    %448 = math.exp %407 : vector<16x8xf32>
    %449 = arith.addf %447, %448 : vector<16x8xf32>
    %450 = arith.mulf %444, %449 : vector<16x8xf32>
    %cst_155 = arith.constant dense<0.000000e+00> : vector<16x16xf32>
    %451 = tpu.matmul %434, %404, %cst_155 {dimension_numbers = #tpu.dot_dimension_numbers<[1], [0], [0], [1], [0, 0, 1, 1], [], []>} : vector<16x16xf32>, vector<16x16xf32>, vector<16x16xf32> -> vector<16x16xf32>
    %cst_156 = arith.constant dense<0.000000e+00> : vector<16x16xf32>
    %452 = tpu.matmul %442, %405, %cst_156 {dimension_numbers = #tpu.dot_dimension_numbers<[1], [0], [0], [1], [0, 0, 1, 1], [], []>} : vector<16x8xf32>, vector<8x16xf32>, vector<16x16xf32> -> vector<16x16xf32>
    %453 = arith.addf %451, %452 : vector<16x16xf32>
    %454 = vector.broadcast %383 : vector<1x1xf32> to vector<16x16xf32>
    %455 = arith.mulf %404, %454 : vector<16x16xf32>
    %456 = arith.addf %453, %455 : vector<16x16xf32>
    %cst_157 = arith.constant dense<0.000000e+00> : vector<8x16xf32>
    %457 = tpu.matmul %402, %216, %cst_157 {dimension_numbers = #tpu.dot_dimension_numbers<[0], [0], [1], [1], [0, 1, 1, 1], [], []>} : vector<16x8xf32>, vector<16x16xf32>, vector<8x16xf32> -> vector<8x16xf32>
    %458 = math.exp %457 : vector<8x16xf32>
    %459 = arith.mulf %458, %405 : vector<8x16xf32>
    %cst_158 = arith.constant dense<0.000000e+00> : vector<8x16xf32>
    %460 = tpu.matmul %450, %404, %cst_158 {dimension_numbers = #tpu.dot_dimension_numbers<[0], [0], [1], [1], [0, 1, 1, 1], [], []>} : vector<16x8xf32>, vector<16x16xf32>, vector<8x16xf32> -> vector<8x16xf32>
    %461 = arith.addf %459, %460 : vector<8x16xf32>
    %462 = vector.extract_strided_slice %217 {offsets = [0, 3], sizes = [1, 1], strides = [1, 1]} : vector<3x4xf32> to vector<1x1xf32>
    %463 = vector.extract_strided_slice %217 {offsets = [1, 3], sizes = [1, 1], strides = [1, 1]} : vector<3x4xf32> to vector<1x1xf32>
    %464 = vector.extract_strided_slice %217 {offsets = [2, 3], sizes = [1, 1], strides = [1, 1]} : vector<3x4xf32> to vector<1x1xf32>
    %465 = vector.extract_strided_slice %188 {offsets = [0, 40], sizes = [16, 8], strides = [1, 1]} : vector<16x48xf32> to vector<16x8xf32>
    %466 = vector.extract_strided_slice %198 {offsets = [0, 5], sizes = [16, 1], strides = [1, 1]} : vector<16x6xf32> to vector<16x1xf32>
    %467 = vector.broadcast %466 : vector<16x1xf32> to vector<16x8xf32>
    %468 = arith.addf %465, %467 : vector<16x8xf32>
    %469 = vector.broadcast %463 : vector<1x1xf32> to vector<16x8xf32>
    %470 = arith.addf %468, %469 : vector<16x8xf32>
    %cst_159 = arith.constant 0.000000e+00 : f32
    %471 = vector.broadcast %cst_159 : f32 to vector<16x8xf32>
    %472 = arith.maximumf %470, %471 : vector<16x8xf32>
    %473 = math.absf %470 : vector<16x8xf32>
    %cst_160 = arith.constant 0.000000e+00 : f32
    %474 = vector.broadcast %cst_160 : f32 to vector<16x8xf32>
    %475 = arith.subf %474, %473 : vector<16x8xf32>
    %476 = math.exp %475 : vector<16x8xf32>
    %cst_161 = arith.constant 1.000000e+00 : f32
    %477 = vector.broadcast %cst_161 : f32 to vector<16x8xf32>
    %478 = arith.addf %477, %476 : vector<16x8xf32>
    %479 = math.log %478 : vector<16x8xf32>
    %480 = arith.addf %472, %479 : vector<16x8xf32>
    %481 = arith.mulf %480, %176 : vector<16x8xf32>
    %482 = vector.broadcast %462 : vector<1x1xf32> to vector<16x8xf32>
    %483 = arith.mulf %481, %482 : vector<16x8xf32>
    %484 = arith.mulf %481, %204 : vector<16x8xf32>
    %485 = vector.extract_strided_slice %196 {offsets = [0, 48], sizes = [16, 16], strides = [1, 1]} : vector<16x64xf32> to vector<16x16xf32>
    %486 = vector.extract_strided_slice %202 {offsets = [0, 48], sizes = [8, 16], strides = [1, 1]} : vector<8x64xf32> to vector<8x16xf32>
    %cst_162 = arith.constant dense<0.000000e+00> : vector<16x8xf32>
    %487 = tpu.matmul %207, %483, %cst_162 {dimension_numbers = #tpu.dot_dimension_numbers<[1], [0], [0], [1], [0, 0, 1, 1], [], []>} : vector<16x16xf32>, vector<16x8xf32>, vector<16x8xf32> -> vector<16x8xf32>
    %488 = arith.subf %487, %483 : vector<16x8xf32>
    %489 = vector.extract_strided_slice %487 {offsets = [15, 0], sizes = [1, 8], strides = [1, 1]} : vector<16x8xf32> to vector<1x8xf32>
    %cst_163 = arith.constant dense<0.000000e+00> : vector<16x128xf32>
    %490 = tpu.matmul %483, %208, %cst_163 {dimension_numbers = #tpu.dot_dimension_numbers<[1], [0], [0], [1], [0, 0, 1, 1], [], []>} : vector<16x8xf32>, vector<8x128xf32>, vector<16x128xf32> -> vector<16x128xf32>
    %cst_164 = arith.constant dense<0.000000e+00> : vector<16x128xf32>
    %491 = tpu.matmul %487, %208, %cst_164 {dimension_numbers = #tpu.dot_dimension_numbers<[1], [0], [0], [1], [0, 0, 1, 1], [], []>} : vector<16x8xf32>, vector<8x128xf32>, vector<16x128xf32> -> vector<16x128xf32>
    %492 = arith.subf %491, %490 : vector<16x128xf32>
    %493 = arith.mulf %210, %490 : vector<16x128xf32>
    %cst_165 = arith.constant dense<0.000000e+00> : vector<16x128xf32>
    %494 = tpu.matmul %215, %493, %cst_165 {dimension_numbers = #tpu.dot_dimension_numbers<[1], [0], [0], [1], [0, 0, 1, 1], [], []>} : vector<16x16xf32>, vector<16x128xf32>, vector<16x128xf32> -> vector<16x128xf32>
    %495 = arith.mulf %212, %490 : vector<16x128xf32>
    %cst_166 = arith.constant dense<0.000000e+00> : vector<16x128xf32>
    %496 = tpu.matmul %215, %495, %cst_166 {dimension_numbers = #tpu.dot_dimension_numbers<[1], [0], [0], [1], [0, 0, 1, 1], [], []>} : vector<16x16xf32>, vector<16x128xf32>, vector<16x128xf32> -> vector<16x128xf32>
    %cst_167 = arith.constant dense<0.000000e+00> : vector<16x128xf32>
    %497 = tpu.matmul %484, %208, %cst_167 {dimension_numbers = #tpu.dot_dimension_numbers<[1], [0], [0], [1], [0, 0, 1, 1], [], []>} : vector<16x8xf32>, vector<8x128xf32>, vector<16x128xf32> -> vector<16x128xf32>
    %498 = arith.mulf %213, %497 : vector<16x128xf32>
    %cst_168 = arith.constant dense<0.000000e+00> : vector<16x128xf32>
    %499 = tpu.matmul %215, %498, %cst_168 {dimension_numbers = #tpu.dot_dimension_numbers<[1], [0], [0], [1], [0, 0, 1, 1], [], []>} : vector<16x16xf32>, vector<16x128xf32>, vector<16x128xf32> -> vector<16x128xf32>
    %500 = arith.subf %491, %494 : vector<16x128xf32>
    %cst_169 = arith.constant 0.000000e+00 : f32
    %501 = vector.broadcast %cst_169 : f32 to vector<16x128xf32>
    %502 = arith.minimumf %500, %501 : vector<16x128xf32>
    %503 = math.exp %502 : vector<16x128xf32>
    %504 = arith.mulf %209, %503 : vector<16x128xf32>
    %505 = arith.subf %496, %492 : vector<16x128xf32>
    %cst_170 = arith.constant 0.000000e+00 : f32
    %506 = vector.broadcast %cst_170 : f32 to vector<16x128xf32>
    %507 = arith.minimumf %505, %506 : vector<16x128xf32>
    %508 = math.exp %507 : vector<16x128xf32>
    %509 = arith.mulf %210, %508 : vector<16x128xf32>
    %510 = arith.addf %504, %509 : vector<16x128xf32>
    %cst_171 = arith.constant 5.000000e-01 : f32
    %511 = vector.broadcast %cst_171 : f32 to vector<16x128xf32>
    %512 = arith.mulf %511, %510 : vector<16x128xf32>
    %513 = arith.mulf %218, %499 : vector<16x128xf32>
    %514 = arith.mulf %513, %512 : vector<16x128xf32>
    %cst_172 = arith.constant dense<0.000000e+00> : vector<16x16xf32>
    %515 = tpu.matmul %514, %214, %cst_172 {dimension_numbers = #tpu.dot_dimension_numbers<[1], [0], [0], [1], [0, 0, 1, 1], [], []>} : vector<16x128xf32>, vector<128x16xf32>, vector<16x16xf32> -> vector<16x16xf32>
    %cst_173 = arith.constant 5.000000e-01 : f32
    %516 = vector.broadcast %cst_173 : f32 to vector<16x8xf32>
    %517 = arith.mulf %516, %206 : vector<16x8xf32>
    %518 = math.exp %487 : vector<16x8xf32>
    %519 = vector.broadcast %489 : vector<1x8xf32> to vector<16x8xf32>
    %520 = arith.subf %519, %488 : vector<16x8xf32>
    %521 = math.exp %520 : vector<16x8xf32>
    %522 = arith.addf %518, %521 : vector<16x8xf32>
    %523 = arith.mulf %517, %522 : vector<16x8xf32>
    %cst_174 = arith.constant 5.000000e-01 : f32
    %524 = vector.broadcast %cst_174 : f32 to vector<16x8xf32>
    %525 = arith.mulf %524, %484 : vector<16x8xf32>
    %526 = vector.broadcast %489 : vector<1x8xf32> to vector<16x8xf32>
    %527 = arith.subf %526, %487 : vector<16x8xf32>
    %528 = math.exp %527 : vector<16x8xf32>
    %529 = math.exp %488 : vector<16x8xf32>
    %530 = arith.addf %528, %529 : vector<16x8xf32>
    %531 = arith.mulf %525, %530 : vector<16x8xf32>
    %cst_175 = arith.constant dense<0.000000e+00> : vector<16x16xf32>
    %532 = tpu.matmul %515, %485, %cst_175 {dimension_numbers = #tpu.dot_dimension_numbers<[1], [0], [0], [1], [0, 0, 1, 1], [], []>} : vector<16x16xf32>, vector<16x16xf32>, vector<16x16xf32> -> vector<16x16xf32>
    %cst_176 = arith.constant dense<0.000000e+00> : vector<16x16xf32>
    %533 = tpu.matmul %523, %486, %cst_176 {dimension_numbers = #tpu.dot_dimension_numbers<[1], [0], [0], [1], [0, 0, 1, 1], [], []>} : vector<16x8xf32>, vector<8x16xf32>, vector<16x16xf32> -> vector<16x16xf32>
    %534 = arith.addf %532, %533 : vector<16x16xf32>
    %535 = vector.broadcast %464 : vector<1x1xf32> to vector<16x16xf32>
    %536 = arith.mulf %485, %535 : vector<16x16xf32>
    %537 = arith.addf %534, %536 : vector<16x16xf32>
    %cst_177 = arith.constant dense<0.000000e+00> : vector<8x16xf32>
    %538 = tpu.matmul %483, %216, %cst_177 {dimension_numbers = #tpu.dot_dimension_numbers<[0], [0], [1], [1], [0, 1, 1, 1], [], []>} : vector<16x8xf32>, vector<16x16xf32>, vector<8x16xf32> -> vector<8x16xf32>
    %539 = math.exp %538 : vector<8x16xf32>
    %540 = arith.mulf %539, %486 : vector<8x16xf32>
    %cst_178 = arith.constant dense<0.000000e+00> : vector<8x16xf32>
    %541 = tpu.matmul %531, %485, %cst_178 {dimension_numbers = #tpu.dot_dimension_numbers<[0], [0], [1], [1], [0, 1, 1, 1], [], []>} : vector<16x8xf32>, vector<16x16xf32>, vector<8x16xf32> -> vector<8x16xf32>
    %542 = arith.addf %540, %541 : vector<8x16xf32>
    %543 = tpu.concatenate %294, %375, %456, %537 in 1 : vector<16x16xf32>, vector<16x16xf32>, vector<16x16xf32>, vector<16x16xf32> -> vector<16x64xf32>
    %544 = tpu.concatenate %299, %380, %461, %542 in 1 : vector<8x16xf32>, vector<8x16xf32>, vector<8x16xf32>, vector<8x16xf32> -> vector<8x64xf32>
    %545 = arith.negf %195 : vector<16x64xf32>
    %546 = math.exp %545 : vector<16x64xf32>
    %cst_179 = arith.constant 1.000000e+00 : f32
    %547 = vector.broadcast %cst_179 : f32 to vector<16x64xf32>
    %548 = arith.addf %547, %546 : vector<16x64xf32>
    %549 = arith.divf %547, %548 : vector<16x64xf32>
    %550 = arith.mulf %195, %549 : vector<16x64xf32>
    %551 = arith.mulf %543, %550 : vector<16x64xf32>
    %552 = arith.mulf %551, %551 : vector<16x64xf32>
    %cst_180 = arith.constant dense<0.000000e+00> : vector<16xf32>
    %553 = vector.multi_reduction <add>, %552, %cst_180 [1] : vector<16x64xf32> to vector<16xf32>
    %554 = vector.shape_cast %553 : vector<16xf32> to vector<16x1xf32>
    %cst_181 = arith.constant 6.400000e+01 : f32
    %555 = vector.broadcast %cst_181 : f32 to vector<16x1xf32>
    %556 = arith.divf %554, %555 : vector<16x1xf32>
    %cst_182 = arith.constant 9.99999974E-6 : f32
    %557 = vector.broadcast %cst_182 : f32 to vector<16x1xf32>
    %558 = arith.addf %556, %557 : vector<16x1xf32>
    %559 = math.rsqrt %558 : vector<16x1xf32>
    %560 = vector.broadcast %559 : vector<16x1xf32> to vector<16x64xf32>
    %561 = arith.mulf %551, %560 : vector<16x64xf32>
    %c0_183 = arith.constant 0 : index
    %c0_184 = arith.constant 0 : index
    %562 = vector.load %arg24[%c0_183, %c0_184] : memref<1x64xf32, #tpu.memory_space<vmem>>, vector<1x64xf32>
    %563 = vector.broadcast %562 : vector<1x64xf32> to vector<16x64xf32>
    %564 = arith.mulf %561, %563 : vector<16x64xf32>
    %c0_185 = arith.constant 0 : index
    %c0_186 = arith.constant 0 : index
    %565 = vector.load %arg25[%c0_185, %c0_186] : memref<32x64xf32, #tpu.memory_space<vmem>>, vector<32x64xf32>
    %cst_187 = arith.constant dense<0.000000e+00> : vector<16x32xf32>
    %566 = tpu.matmul %564, %565, %cst_187 {dimension_numbers = #tpu.dot_dimension_numbers<[1], [1], [0], [0], [0, 0, 1, 0], [], []>} : vector<16x64xf32>, vector<32x64xf32>, vector<16x32xf32> -> vector<16x32xf32>
    %c0_188 = arith.constant 0 : index
    %c0_189 = arith.constant 0 : index
    %567 = vector.load %arg26[%c0_188, %c0_189] : memref<2x64xf32, #tpu.memory_space<vmem>>, vector<1x64xf32>
    %c1_190 = arith.constant 1 : index
    %c0_191 = arith.constant 0 : index
    %568 = vector.load %arg26[%c1_190, %c0_191] : memref<2x64xf32, #tpu.memory_space<vmem>>, vector<1x64xf32>
    %cst_192 = arith.constant dense<0.000000e+00> : vector<8xf32>
    %569 = vector.multi_reduction <add>, %544, %cst_192 [1] : vector<8x64xf32> to vector<8xf32>
    %570 = vector.shape_cast %569 : vector<8xf32> to vector<8x1xf32>
    %cst_193 = arith.constant 6.400000e+01 : f32
    %571 = vector.broadcast %cst_193 : f32 to vector<8x1xf32>
    %572 = arith.divf %570, %571 : vector<8x1xf32>
    %573 = vector.broadcast %572 : vector<8x1xf32> to vector<8x64xf32>
    %574 = arith.subf %544, %573 : vector<8x64xf32>
    %575 = arith.mulf %574, %574 : vector<8x64xf32>
    %cst_194 = arith.constant dense<0.000000e+00> : vector<8xf32>
    %576 = vector.multi_reduction <add>, %575, %cst_194 [1] : vector<8x64xf32> to vector<8xf32>
    %577 = vector.shape_cast %576 : vector<8xf32> to vector<8x1xf32>
    %cst_195 = arith.constant 6.400000e+01 : f32
    %578 = vector.broadcast %cst_195 : f32 to vector<8x1xf32>
    %579 = arith.divf %577, %578 : vector<8x1xf32>
    %580 = vector.broadcast %572 : vector<8x1xf32> to vector<8x64xf32>
    %581 = arith.subf %544, %580 : vector<8x64xf32>
    %cst_196 = arith.constant 9.99999974E-6 : f32
    %582 = vector.broadcast %cst_196 : f32 to vector<8x1xf32>
    %583 = arith.addf %579, %582 : vector<8x1xf32>
    %584 = math.rsqrt %583 : vector<8x1xf32>
    %585 = vector.broadcast %584 : vector<8x1xf32> to vector<8x64xf32>
    %586 = arith.mulf %581, %585 : vector<8x64xf32>
    %587 = vector.broadcast %567 : vector<1x64xf32> to vector<8x64xf32>
    %588 = arith.mulf %586, %587 : vector<8x64xf32>
    %589 = vector.broadcast %568 : vector<1x64xf32> to vector<8x64xf32>
    %590 = arith.addf %588, %589 : vector<8x64xf32>
    %c0_197 = arith.constant 0 : index
    %c0_198 = arith.constant 0 : index
    %591 = vector.load %arg27[%c0_197, %c0_198] : memref<32x64xf32, #tpu.memory_space<vmem>>, vector<32x64xf32>
    %cst_199 = arith.constant dense<0.000000e+00> : vector<8x32xf32>
    %592 = tpu.matmul %590, %591, %cst_199 {dimension_numbers = #tpu.dot_dimension_numbers<[1], [1], [0], [0], [0, 0, 1, 0], [], []>} : vector<8x64xf32>, vector<32x64xf32>, vector<8x32xf32> -> vector<8x32xf32>
    %c0_200 = arith.constant 0 : index
    %c0_201 = arith.constant 0 : index
    %593 = vector.load %arg33[%c0_200, %c0_201] : memref<4x32xf32, #tpu.memory_space<vmem>>, vector<4x32xf32>
    %c0_202 = arith.constant 0 : index
    %c0_203 = arith.constant 0 : index
    %594 = vector.load %arg34[%c0_202, %c0_203] : memref<64x32xf32, #tpu.memory_space<vmem>>, vector<64x32xf32>
    %c0_204 = arith.constant 0 : index
    %c0_205 = arith.constant 0 : index
    %595 = vector.load %arg35[%c0_204, %c0_205] : memref<1x64xf32, #tpu.memory_space<vmem>>, vector<1x64xf32>
    %c0_206 = arith.constant 0 : index
    %c0_207 = arith.constant 0 : index
    %596 = vector.load %arg36[%c0_206, %c0_207] : memref<32x64xf32, #tpu.memory_space<vmem>>, vector<32x64xf32>
    %c0_208 = arith.constant 0 : index
    %c0_209 = arith.constant 0 : index
    %597 = vector.load %arg37[%c0_208, %c0_209] : memref<1x32xf32, #tpu.memory_space<vmem>>, vector<1x32xf32>
    %598 = arith.addf %115, %592 : vector<8x32xf32>
    %599 = vector.extract_strided_slice %593 {offsets = [0, 0], sizes = [1, 32], strides = [1, 1]} : vector<4x32xf32> to vector<1x32xf32>
    %600 = vector.extract_strided_slice %593 {offsets = [1, 0], sizes = [1, 32], strides = [1, 1]} : vector<4x32xf32> to vector<1x32xf32>
    %cst_210 = arith.constant dense<0.000000e+00> : vector<8xf32>
    %601 = vector.multi_reduction <add>, %598, %cst_210 [1] : vector<8x32xf32> to vector<8xf32>
    %602 = vector.shape_cast %601 : vector<8xf32> to vector<8x1xf32>
    %cst_211 = arith.constant 3.200000e+01 : f32
    %603 = vector.broadcast %cst_211 : f32 to vector<8x1xf32>
    %604 = arith.divf %602, %603 : vector<8x1xf32>
    %605 = vector.broadcast %604 : vector<8x1xf32> to vector<8x32xf32>
    %606 = arith.subf %598, %605 : vector<8x32xf32>
    %607 = arith.mulf %606, %606 : vector<8x32xf32>
    %cst_212 = arith.constant dense<0.000000e+00> : vector<8xf32>
    %608 = vector.multi_reduction <add>, %607, %cst_212 [1] : vector<8x32xf32> to vector<8xf32>
    %609 = vector.shape_cast %608 : vector<8xf32> to vector<8x1xf32>
    %cst_213 = arith.constant 3.200000e+01 : f32
    %610 = vector.broadcast %cst_213 : f32 to vector<8x1xf32>
    %611 = arith.divf %609, %610 : vector<8x1xf32>
    %612 = vector.broadcast %604 : vector<8x1xf32> to vector<8x32xf32>
    %613 = arith.subf %598, %612 : vector<8x32xf32>
    %cst_214 = arith.constant 9.99999974E-6 : f32
    %614 = vector.broadcast %cst_214 : f32 to vector<8x1xf32>
    %615 = arith.addf %611, %614 : vector<8x1xf32>
    %616 = math.rsqrt %615 : vector<8x1xf32>
    %617 = vector.broadcast %616 : vector<8x1xf32> to vector<8x32xf32>
    %618 = arith.mulf %613, %617 : vector<8x32xf32>
    %619 = vector.broadcast %599 : vector<1x32xf32> to vector<8x32xf32>
    %620 = arith.mulf %618, %619 : vector<8x32xf32>
    %621 = vector.broadcast %600 : vector<1x32xf32> to vector<8x32xf32>
    %622 = arith.addf %620, %621 : vector<8x32xf32>
    %cst_215 = arith.constant dense<0.000000e+00> : vector<8x64xf32>
    %623 = tpu.matmul %622, %594, %cst_215 {dimension_numbers = #tpu.dot_dimension_numbers<[1], [1], [0], [0], [0, 0, 1, 0], [], []>} : vector<8x32xf32>, vector<64x32xf32>, vector<8x64xf32> -> vector<8x64xf32>
    %624 = vector.broadcast %595 : vector<1x64xf32> to vector<8x64xf32>
    %625 = arith.addf %623, %624 : vector<8x64xf32>
    %cst_216 = arith.constant 0.000000e+00 : f32
    %626 = vector.broadcast %cst_216 : f32 to vector<8x64xf32>
    %627 = arith.maximumf %625, %626 : vector<8x64xf32>
    %cst_217 = arith.constant dense<0.000000e+00> : vector<8x32xf32>
    %628 = tpu.matmul %627, %596, %cst_217 {dimension_numbers = #tpu.dot_dimension_numbers<[1], [1], [0], [0], [0, 0, 1, 0], [], []>} : vector<8x64xf32>, vector<32x64xf32>, vector<8x32xf32> -> vector<8x32xf32>
    %629 = arith.addf %622, %628 : vector<8x32xf32>
    %630 = vector.broadcast %597 : vector<1x32xf32> to vector<8x32xf32>
    %631 = arith.addf %629, %630 : vector<8x32xf32>
    %632 = vector.extract_strided_slice %593 {offsets = [2, 0], sizes = [1, 32], strides = [1, 1]} : vector<4x32xf32> to vector<1x32xf32>
    %633 = vector.extract_strided_slice %593 {offsets = [3, 0], sizes = [1, 32], strides = [1, 1]} : vector<4x32xf32> to vector<1x32xf32>
    %cst_218 = arith.constant dense<0.000000e+00> : vector<8xf32>
    %634 = vector.multi_reduction <add>, %631, %cst_218 [1] : vector<8x32xf32> to vector<8xf32>
    %635 = vector.shape_cast %634 : vector<8xf32> to vector<8x1xf32>
    %cst_219 = arith.constant 3.200000e+01 : f32
    %636 = vector.broadcast %cst_219 : f32 to vector<8x1xf32>
    %637 = arith.divf %635, %636 : vector<8x1xf32>
    %638 = vector.broadcast %637 : vector<8x1xf32> to vector<8x32xf32>
    %639 = arith.subf %631, %638 : vector<8x32xf32>
    %640 = arith.mulf %639, %639 : vector<8x32xf32>
    %cst_220 = arith.constant dense<0.000000e+00> : vector<8xf32>
    %641 = vector.multi_reduction <add>, %640, %cst_220 [1] : vector<8x32xf32> to vector<8xf32>
    %642 = vector.shape_cast %641 : vector<8xf32> to vector<8x1xf32>
    %cst_221 = arith.constant 3.200000e+01 : f32
    %643 = vector.broadcast %cst_221 : f32 to vector<8x1xf32>
    %644 = arith.divf %642, %643 : vector<8x1xf32>
    %645 = vector.broadcast %637 : vector<8x1xf32> to vector<8x32xf32>
    %646 = arith.subf %631, %645 : vector<8x32xf32>
    %cst_222 = arith.constant 9.99999974E-6 : f32
    %647 = vector.broadcast %cst_222 : f32 to vector<8x1xf32>
    %648 = arith.addf %644, %647 : vector<8x1xf32>
    %649 = math.rsqrt %648 : vector<8x1xf32>
    %650 = vector.broadcast %649 : vector<8x1xf32> to vector<8x32xf32>
    %651 = arith.mulf %646, %650 : vector<8x32xf32>
    %652 = vector.broadcast %632 : vector<1x32xf32> to vector<8x32xf32>
    %653 = arith.mulf %651, %652 : vector<8x32xf32>
    %654 = vector.broadcast %633 : vector<1x32xf32> to vector<8x32xf32>
    %655 = arith.addf %653, %654 : vector<8x32xf32>
    %c0_223 = arith.constant 0 : index
    %c0_224 = arith.constant 0 : index
    %c0_225 = arith.constant 0 : index
    %656 = vector.load %arg38[%c0_223, %c0_224, %c0_225] : memref<1x8x32xf32, #tpu.memory_space<vmem>>, vector<1x8x32xf32>
    %657 = vector.shape_cast %656 : vector<1x8x32xf32> to vector<8x32xf32>
    %658 = vector.shape_cast %655 : vector<8x32xf32> to vector<1x8x32xf32>
    tpu.vector_store %arg38[%c0_223, %c0_224, %c0_225], %658 {strides = array<i32>} : memref<1x8x32xf32, #tpu.memory_space<vmem>>, vector<1x8x32xf32>,
    %c0_226 = arith.constant 0 : index
    %c0_227 = arith.constant 0 : index
    %659 = vector.load %arg28[%c0_226, %c0_227] : memref<4x32xf32, #tpu.memory_space<vmem>>, vector<4x32xf32>
    %c0_228 = arith.constant 0 : index
    %c0_229 = arith.constant 0 : index
    %660 = vector.load %arg29[%c0_228, %c0_229] : memref<64x32xf32, #tpu.memory_space<vmem>>, vector<64x32xf32>
    %c0_230 = arith.constant 0 : index
    %c0_231 = arith.constant 0 : index
    %661 = vector.load %arg30[%c0_230, %c0_231] : memref<1x64xf32, #tpu.memory_space<vmem>>, vector<1x64xf32>
    %c0_232 = arith.constant 0 : index
    %c0_233 = arith.constant 0 : index
    %662 = vector.load %arg31[%c0_232, %c0_233] : memref<32x64xf32, #tpu.memory_space<vmem>>, vector<32x64xf32>
    %c0_234 = arith.constant 0 : index
    %c0_235 = arith.constant 0 : index
    %663 = vector.load %arg32[%c0_234, %c0_235] : memref<1x32xf32, #tpu.memory_space<vmem>>, vector<1x32xf32>
    %664 = arith.addf %192, %566 : vector<16x32xf32>
    %665 = vector.extract_strided_slice %659 {offsets = [0, 0], sizes = [1, 32], strides = [1, 1]} : vector<4x32xf32> to vector<1x32xf32>
    %666 = vector.extract_strided_slice %659 {offsets = [1, 0], sizes = [1, 32], strides = [1, 1]} : vector<4x32xf32> to vector<1x32xf32>
    %cst_236 = arith.constant dense<0.000000e+00> : vector<16xf32>
    %667 = vector.multi_reduction <add>, %664, %cst_236 [1] : vector<16x32xf32> to vector<16xf32>
    %668 = vector.shape_cast %667 : vector<16xf32> to vector<16x1xf32>
    %cst_237 = arith.constant 3.200000e+01 : f32
    %669 = vector.broadcast %cst_237 : f32 to vector<16x1xf32>
    %670 = arith.divf %668, %669 : vector<16x1xf32>
    %671 = vector.broadcast %670 : vector<16x1xf32> to vector<16x32xf32>
    %672 = arith.subf %664, %671 : vector<16x32xf32>
    %673 = arith.mulf %672, %672 : vector<16x32xf32>
    %cst_238 = arith.constant dense<0.000000e+00> : vector<16xf32>
    %674 = vector.multi_reduction <add>, %673, %cst_238 [1] : vector<16x32xf32> to vector<16xf32>
    %675 = vector.shape_cast %674 : vector<16xf32> to vector<16x1xf32>
    %cst_239 = arith.constant 3.200000e+01 : f32
    %676 = vector.broadcast %cst_239 : f32 to vector<16x1xf32>
    %677 = arith.divf %675, %676 : vector<16x1xf32>
    %678 = vector.broadcast %670 : vector<16x1xf32> to vector<16x32xf32>
    %679 = arith.subf %664, %678 : vector<16x32xf32>
    %cst_240 = arith.constant 9.99999974E-6 : f32
    %680 = vector.broadcast %cst_240 : f32 to vector<16x1xf32>
    %681 = arith.addf %677, %680 : vector<16x1xf32>
    %682 = math.rsqrt %681 : vector<16x1xf32>
    %683 = vector.broadcast %682 : vector<16x1xf32> to vector<16x32xf32>
    %684 = arith.mulf %679, %683 : vector<16x32xf32>
    %685 = vector.broadcast %665 : vector<1x32xf32> to vector<16x32xf32>
    %686 = arith.mulf %684, %685 : vector<16x32xf32>
    %687 = vector.broadcast %666 : vector<1x32xf32> to vector<16x32xf32>
    %688 = arith.addf %686, %687 : vector<16x32xf32>
    %cst_241 = arith.constant dense<0.000000e+00> : vector<16x64xf32>
    %689 = tpu.matmul %688, %660, %cst_241 {dimension_numbers = #tpu.dot_dimension_numbers<[1], [1], [0], [0], [0, 0, 1, 0], [], []>} : vector<16x32xf32>, vector<64x32xf32>, vector<16x64xf32> -> vector<16x64xf32>
    %690 = vector.broadcast %661 : vector<1x64xf32> to vector<16x64xf32>
    %691 = arith.addf %689, %690 : vector<16x64xf32>
    %cst_242 = arith.constant 0.000000e+00 : f32
    %692 = vector.broadcast %cst_242 : f32 to vector<16x64xf32>
    %693 = arith.maximumf %691, %692 : vector<16x64xf32>
    %cst_243 = arith.constant dense<0.000000e+00> : vector<16x32xf32>
    %694 = tpu.matmul %693, %662, %cst_243 {dimension_numbers = #tpu.dot_dimension_numbers<[1], [1], [0], [0], [0, 0, 1, 0], [], []>} : vector<16x64xf32>, vector<32x64xf32>, vector<16x32xf32> -> vector<16x32xf32>
    %695 = arith.addf %688, %694 : vector<16x32xf32>
    %696 = vector.broadcast %663 : vector<1x32xf32> to vector<16x32xf32>
    %697 = arith.addf %695, %696 : vector<16x32xf32>
    %698 = vector.extract_strided_slice %659 {offsets = [2, 0], sizes = [1, 32], strides = [1, 1]} : vector<4x32xf32> to vector<1x32xf32>
    %699 = vector.extract_strided_slice %659 {offsets = [3, 0], sizes = [1, 32], strides = [1, 1]} : vector<4x32xf32> to vector<1x32xf32>
    %cst_244 = arith.constant dense<0.000000e+00> : vector<16xf32>
    %700 = vector.multi_reduction <add>, %697, %cst_244 [1] : vector<16x32xf32> to vector<16xf32>
    %701 = vector.shape_cast %700 : vector<16xf32> to vector<16x1xf32>
    %cst_245 = arith.constant 3.200000e+01 : f32
    %702 = vector.broadcast %cst_245 : f32 to vector<16x1xf32>
    %703 = arith.divf %701, %702 : vector<16x1xf32>
    %704 = vector.broadcast %703 : vector<16x1xf32> to vector<16x32xf32>
    %705 = arith.subf %697, %704 : vector<16x32xf32>
    %706 = arith.mulf %705, %705 : vector<16x32xf32>
    %cst_246 = arith.constant dense<0.000000e+00> : vector<16xf32>
    %707 = vector.multi_reduction <add>, %706, %cst_246 [1] : vector<16x32xf32> to vector<16xf32>
    %708 = vector.shape_cast %707 : vector<16xf32> to vector<16x1xf32>
    %cst_247 = arith.constant 3.200000e+01 : f32
    %709 = vector.broadcast %cst_247 : f32 to vector<16x1xf32>
    %710 = arith.divf %708, %709 : vector<16x1xf32>
    %711 = vector.broadcast %703 : vector<16x1xf32> to vector<16x32xf32>
    %712 = arith.subf %697, %711 : vector<16x32xf32>
    %cst_248 = arith.constant 9.99999974E-6 : f32
    %713 = vector.broadcast %cst_248 : f32 to vector<16x1xf32>
    %714 = arith.addf %710, %713 : vector<16x1xf32>
    %715 = math.rsqrt %714 : vector<16x1xf32>
    %716 = vector.broadcast %715 : vector<16x1xf32> to vector<16x32xf32>
    %717 = arith.mulf %712, %716 : vector<16x32xf32>
    %718 = vector.broadcast %698 : vector<1x32xf32> to vector<16x32xf32>
    %719 = arith.mulf %717, %718 : vector<16x32xf32>
    %720 = vector.broadcast %699 : vector<1x32xf32> to vector<16x32xf32>
    %721 = arith.addf %719, %720 : vector<16x32xf32>
    %c0_249 = arith.constant 0 : index
    %c0_250 = arith.constant 0 : index
    %c0_251 = arith.constant 0 : index
    %722 = vector.load %arg39[%c0_249, %c0_250, %c0_251] : memref<1x16x32xf32, #tpu.memory_space<vmem>>, vector<1x16x32xf32>
    %723 = vector.shape_cast %722 : vector<1x16x32xf32> to vector<16x32xf32>
    %724 = vector.shape_cast %721 : vector<16x32xf32> to vector<1x16x32xf32>
    tpu.vector_store %arg39[%c0_249, %c0_250, %c0_251], %724 {strides = array<i32>} : memref<1x16x32xf32, #tpu.memory_space<vmem>>, vector<1x16x32xf32>,
    return
  }
  func.func @transform_0(%arg0: i32) -> (i32, i32, i32) {
    %c0_i32 = arith.constant 0 : i32
    %c0_i32_0 = arith.constant 0 : i32
    %c0_i32_1 = arith.constant 0 : i32
    return %arg0, %c0_i32, %c0_i32_0 : i32, i32, i32
  }
  func.func @transform_1(%arg0: i32) -> (i32, i32, i32) {
    %c0_i32 = arith.constant 0 : i32
    %c0_i32_0 = arith.constant 0 : i32
    %c0_i32_1 = arith.constant 0 : i32
    return %arg0, %c0_i32, %c0_i32_0 : i32, i32, i32
  }
  func.func @transform_2(%arg0: i32) -> (i32, i32, i32) {
    %c0_i32 = arith.constant 0 : i32
    %c0_i32_0 = arith.constant 0 : i32
    %c0_i32_1 = arith.constant 0 : i32
    return %arg0, %c0_i32, %c0_i32_0 : i32, i32, i32
  }
  func.func @transform_3(%arg0: i32) -> (i32, i32, i32) {
    %c0_i32 = arith.constant 0 : i32
    %c0_i32_0 = arith.constant 0 : i32
    %c0_i32_1 = arith.constant 0 : i32
    return %arg0, %c0_i32, %c0_i32_0 : i32, i32, i32
  }
  func.func @transform_4(%arg0: i32) -> (i32, i32, i32) {
    %c0_i32 = arith.constant 0 : i32
    %c0_i32_0 = arith.constant 0 : i32
    %c0_i32_1 = arith.constant 0 : i32
    return %arg0, %c0_i32, %c0_i32_0 : i32, i32, i32
  }
  func.func @transform_5(%arg0: i32) -> (i32, i32) {
    %c0_i32 = arith.constant 0 : i32
    %c0_i32_0 = arith.constant 0 : i32
    %c0_i32_1 = arith.constant 0 : i32
    return %c0_i32, %c0_i32_0 : i32, i32
  }
  func.func @transform_6(%arg0: i32) -> (i32, i32) {
    %c0_i32 = arith.constant 0 : i32
    %c0_i32_0 = arith.constant 0 : i32
    %c0_i32_1 = arith.constant 0 : i32
    return %c0_i32, %c0_i32_0 : i32, i32
  }
  func.func @transform_7(%arg0: i32) -> (i32, i32) {
    %c0_i32 = arith.constant 0 : i32
    %c0_i32_0 = arith.constant 0 : i32
    %c0_i32_1 = arith.constant 0 : i32
    return %c0_i32, %c0_i32_0 : i32, i32
  }
  func.func @transform_8(%arg0: i32) -> (i32, i32) {
    %c0_i32 = arith.constant 0 : i32
    %c0_i32_0 = arith.constant 0 : i32
    %c0_i32_1 = arith.constant 0 : i32
    return %c0_i32, %c0_i32_0 : i32, i32
  }
  func.func @transform_9(%arg0: i32) -> (i32, i32) {
    %c0_i32 = arith.constant 0 : i32
    %c0_i32_0 = arith.constant 0 : i32
    %c0_i32_1 = arith.constant 0 : i32
    return %c0_i32, %c0_i32_0 : i32, i32
  }
  func.func @transform_10(%arg0: i32) -> (i32, i32) {
    %c0_i32 = arith.constant 0 : i32
    %c0_i32_0 = arith.constant 0 : i32
    %c0_i32_1 = arith.constant 0 : i32
    return %c0_i32, %c0_i32_0 : i32, i32
  }
  func.func @transform_11(%arg0: i32) -> (i32, i32) {
    %c0_i32 = arith.constant 0 : i32
    %c0_i32_0 = arith.constant 0 : i32
    %c0_i32_1 = arith.constant 0 : i32
    return %c0_i32, %c0_i32_0 : i32, i32
  }
  func.func @transform_12(%arg0: i32) -> (i32, i32) {
    %c0_i32 = arith.constant 0 : i32
    %c0_i32_0 = arith.constant 0 : i32
    %c0_i32_1 = arith.constant 0 : i32
    return %c0_i32, %c0_i32_0 : i32, i32
  }
  func.func @transform_13(%arg0: i32) -> (i32, i32) {
    %c0_i32 = arith.constant 0 : i32
    %c0_i32_0 = arith.constant 0 : i32
    %c0_i32_1 = arith.constant 0 : i32
    return %c0_i32, %c0_i32_0 : i32, i32
  }
  func.func @transform_14(%arg0: i32) -> (i32, i32) {
    %c0_i32 = arith.constant 0 : i32
    %c0_i32_0 = arith.constant 0 : i32
    %c0_i32_1 = arith.constant 0 : i32
    return %c0_i32, %c0_i32_0 : i32, i32
  }
  func.func @transform_15(%arg0: i32) -> (i32, i32) {
    %c0_i32 = arith.constant 0 : i32
    %c0_i32_0 = arith.constant 0 : i32
    %c0_i32_1 = arith.constant 0 : i32
    return %c0_i32, %c0_i32_0 : i32, i32
  }
  func.func @transform_16(%arg0: i32) -> (i32, i32) {
    %c0_i32 = arith.constant 0 : i32
    %c0_i32_0 = arith.constant 0 : i32
    %c0_i32_1 = arith.constant 0 : i32
    return %c0_i32, %c0_i32_0 : i32, i32
  }
  func.func @transform_17(%arg0: i32) -> (i32, i32) {
    %c0_i32 = arith.constant 0 : i32
    %c0_i32_0 = arith.constant 0 : i32
    %c0_i32_1 = arith.constant 0 : i32
    return %c0_i32, %c0_i32_0 : i32, i32
  }
  func.func @transform_18(%arg0: i32) -> (i32, i32) {
    %c0_i32 = arith.constant 0 : i32
    %c0_i32_0 = arith.constant 0 : i32
    %c0_i32_1 = arith.constant 0 : i32
    return %c0_i32, %c0_i32_0 : i32, i32
  }
  func.func @transform_19(%arg0: i32) -> (i32, i32) {
    %c0_i32 = arith.constant 0 : i32
    %c0_i32_0 = arith.constant 0 : i32
    %c0_i32_1 = arith.constant 0 : i32
    return %c0_i32, %c0_i32_0 : i32, i32
  }
  func.func @transform_20(%arg0: i32) -> (i32, i32) {
    %c0_i32 = arith.constant 0 : i32
    %c0_i32_0 = arith.constant 0 : i32
    %c0_i32_1 = arith.constant 0 : i32
    return %c0_i32, %c0_i32_0 : i32, i32
  }
  func.func @transform_21(%arg0: i32) -> (i32, i32) {
    %c0_i32 = arith.constant 0 : i32
    %c0_i32_0 = arith.constant 0 : i32
    %c0_i32_1 = arith.constant 0 : i32
    return %c0_i32, %c0_i32_0 : i32, i32
  }
  func.func @transform_22(%arg0: i32) -> (i32, i32) {
    %c0_i32 = arith.constant 0 : i32
    %c0_i32_0 = arith.constant 0 : i32
    %c0_i32_1 = arith.constant 0 : i32
    return %c0_i32, %c0_i32_0 : i32, i32
  }
  func.func @transform_23(%arg0: i32) -> (i32, i32) {
    %c0_i32 = arith.constant 0 : i32
    %c0_i32_0 = arith.constant 0 : i32
    %c0_i32_1 = arith.constant 0 : i32
    return %c0_i32, %c0_i32_0 : i32, i32
  }
  func.func @transform_24(%arg0: i32) -> (i32, i32) {
    %c0_i32 = arith.constant 0 : i32
    %c0_i32_0 = arith.constant 0 : i32
    %c0_i32_1 = arith.constant 0 : i32
    return %c0_i32, %c0_i32_0 : i32, i32
  }
  func.func @transform_25(%arg0: i32) -> (i32, i32) {
    %c0_i32 = arith.constant 0 : i32
    %c0_i32_0 = arith.constant 0 : i32
    %c0_i32_1 = arith.constant 0 : i32
    return %c0_i32, %c0_i32_0 : i32, i32
  }
  func.func @transform_26(%arg0: i32) -> (i32, i32) {
    %c0_i32 = arith.constant 0 : i32
    %c0_i32_0 = arith.constant 0 : i32
    %c0_i32_1 = arith.constant 0 : i32
    return %c0_i32, %c0_i32_0 : i32, i32
  }
  func.func @transform_27(%arg0: i32) -> (i32, i32) {
    %c0_i32 = arith.constant 0 : i32
    %c0_i32_0 = arith.constant 0 : i32
    %c0_i32_1 = arith.constant 0 : i32
    return %c0_i32, %c0_i32_0 : i32, i32
  }
  func.func @transform_28(%arg0: i32) -> (i32, i32) {
    %c0_i32 = arith.constant 0 : i32
    %c0_i32_0 = arith.constant 0 : i32
    %c0_i32_1 = arith.constant 0 : i32
    return %c0_i32, %c0_i32_0 : i32, i32
  }
  func.func @transform_29(%arg0: i32) -> (i32, i32) {
    %c0_i32 = arith.constant 0 : i32
    %c0_i32_0 = arith.constant 0 : i32
    %c0_i32_1 = arith.constant 0 : i32
    return %c0_i32, %c0_i32_0 : i32, i32
  }
  func.func @transform_30(%arg0: i32) -> (i32, i32) {
    %c0_i32 = arith.constant 0 : i32
    %c0_i32_0 = arith.constant 0 : i32
    %c0_i32_1 = arith.constant 0 : i32
    return %c0_i32, %c0_i32_0 : i32, i32
  }
  func.func @transform_31(%arg0: i32) -> (i32, i32) {
    %c0_i32 = arith.constant 0 : i32
    %c0_i32_0 = arith.constant 0 : i32
    %c0_i32_1 = arith.constant 0 : i32
    return %c0_i32, %c0_i32_0 : i32, i32
  }
  func.func @transform_32(%arg0: i32) -> (i32, i32) {
    %c0_i32 = arith.constant 0 : i32
    %c0_i32_0 = arith.constant 0 : i32
    %c0_i32_1 = arith.constant 0 : i32
    return %c0_i32, %c0_i32_0 : i32, i32
  }
  func.func @transform_33(%arg0: i32) -> (i32, i32) {
    %c0_i32 = arith.constant 0 : i32
    %c0_i32_0 = arith.constant 0 : i32
    %c0_i32_1 = arith.constant 0 : i32
    return %c0_i32, %c0_i32_0 : i32, i32
  }
  func.func @transform_34(%arg0: i32) -> (i32, i32) {
    %c0_i32 = arith.constant 0 : i32
    %c0_i32_0 = arith.constant 0 : i32
    %c0_i32_1 = arith.constant 0 : i32
    return %c0_i32, %c0_i32_0 : i32, i32
  }
  func.func @transform_35(%arg0: i32) -> (i32, i32) {
    %c0_i32 = arith.constant 0 : i32
    %c0_i32_0 = arith.constant 0 : i32
    %c0_i32_1 = arith.constant 0 : i32
    return %c0_i32, %c0_i32_0 : i32, i32
  }
  func.func @transform_36(%arg0: i32) -> (i32, i32) {
    %c0_i32 = arith.constant 0 : i32
    %c0_i32_0 = arith.constant 0 : i32
    %c0_i32_1 = arith.constant 0 : i32
    return %c0_i32, %c0_i32_0 : i32, i32
  }
  func.func @transform_37(%arg0: i32) -> (i32, i32, i32) {
    %c0_i32 = arith.constant 0 : i32
    %c0_i32_0 = arith.constant 0 : i32
    %c0_i32_1 = arith.constant 0 : i32
    return %arg0, %c0_i32, %c0_i32_0 : i32, i32, i32
  }
  func.func @transform_38(%arg0: i32) -> (i32, i32, i32) {
    %c0_i32 = arith.constant 0 : i32
    %c0_i32_0 = arith.constant 0 : i32
    %c0_i32_1 = arith.constant 0 : i32
    return %arg0, %c0_i32, %c0_i32_0 : i32, i32, i32
  }
}

</mosaic_0001>

<bundles_post_ra>
// kernel: tpu_custom_call.1
= control target key start
LH: loop header
LB: loop body
LE: loop exit
PB: predicated region body
PF: predicated region fallthrough
CT: control target
= control target key end

     0   :  { %s10632_s6 = smov 1   ;;  %s10633_s10 = smov 2   ;;  %s12539_s0 = inlined_call_operand.smem [shape: u32[39], index: -1, kind: input, shape index: {}] }
   0x1   :  { %s10707_s5 = sld [smem:[%s12539_s0]]   ;;  %s10634_s14 = smov 3  }
   0x2   :  { %s10712_s9 = sld [smem:[%s12539_s0 + %s10632_s6]]   ;;  %s10635_s18 = smov 4  }
   0x3   :  { %s10717_s13 = sld [smem:[%s12539_s0 + %s10633_s10]]   ;;  %s10636_s22 = smov 5  }
   0x4   :  { %s10722_s17 = sld [smem:[%s12539_s0 + %s10634_s14]]   ;;  %s10637_s26 = smov 6  }
   0x5   :  { %s10727_s21 = sld [smem:[%s12539_s0 + %s10635_s18]]   ;;  %s10638_s30 = smov 7  }
   0x6   :  { %s10732_s25 = sld [smem:[%s12539_s0 + %s10636_s22]]   ;;  %s10639_s4 = smov 8  }
   0x7   :  { %12629 = sst [smem:[#allocation8_spill]] %s10707_s5  ;;  %s10640_s10 = smov 9  }
   0x8   :  { %12630 = sst [smem:[#allocation9_spill]] %s10712_s9  ;;  %s10641_s15 = smov 10  }
   0x9   :  { %12631 = sst [smem:[#allocation10_spill]] %s10717_s13  ;;  %s10642_s20 = smov 11  }
   0xa   :  { %12632 = sst [smem:[#allocation11_spill]] %s10722_s17  ;;  %s10644_s1 = smov 13  }
   0xb   :  { %12633 = sst [smem:[#allocation12_spill]] %s10727_s21  ;;  %s10645_s7 = smov 14  }
   0xc   :  { %12634 = sst [smem:[#allocation13_spill]] %s10732_s25  ;;  %s10647_s22 = smov 16  }
   0xd   :  { %s10737_s29 = sld [smem:[%s12539_s0 + %s10637_s26]]   ;;  %s10643_s26 = smov 12  }
   0xe   :  { %s10742_s3 = sld [smem:[%s12539_s0 + %s10638_s30]]   ;;  %s10648_s28 = smov 17  }
   0xf   :  { %s10747_s8 = sld [smem:[%s12539_s0 + %s10639_s4]]  }
  0x10   :  { %s10752_s14 = sld [smem:[%s12539_s0 + %s10640_s10]]  }
  0x11   :  { %s10757_s19 = sld [smem:[%s12539_s0 + %s10641_s15]]   ;;  %s10646_s15 = smov 15  }
  0x12   :  { %s10762_s24 = sld [smem:[%s12539_s0 + %s10642_s20]]  }
  0x13   :  { %12635 = sst [smem:[#allocation14_spill]] %s10737_s29 }
  0x14   :  { %12636 = sst [smem:[#allocation15_spill]] %s10742_s3 }
  0x15   :  { %12637 = sst [smem:[#allocation16_spill]] %s10747_s8 }
  0x16   :  { %12638 = sst [smem:[#allocation17_spill]] %s10752_s14 }
  0x17   :  { %12639 = sst [smem:[#allocation18_spill]] %s10757_s19 }
  0x18   :  { %12640 = sst [smem:[#allocation19_spill]] %s10762_s24 }
  0x19   :  { %s10767_s30 = sld [smem:[%s12539_s0 + %s10643_s26]]  }
  0x1a   :  { %s10772_s6 = sld [smem:[%s12539_s0 + %s10644_s1]]  }
  0x1b   :  { %s10777_s12 = sld [smem:[%s12539_s0 + %s10645_s7]]   ;;  %s10649_s7 = smov 18  }
  0x1c   :  { %s10782_s20 = sld [smem:[%s12539_s0 + %s10646_s15]]   ;;  %s10650_s15 = smov 19  }
  0x1d   :  { %s10787_s27 = sld [smem:[%s12539_s0 + %s10647_s22]]   ;;  %s10651_s22 = smov 20  }
  0x1e   :  { %s10792_s4 = sld [smem:[%s12539_s0 + %s10648_s28]]   ;;  %s10652_s28 = smov 21  }
  0x1f   :  { %s10797_s14 = sld [smem:[%s12539_s0 + %s10649_s7]]   ;;  %s10653_s7 = smov 22  }
  0x20   :  { %12641 = sst [smem:[#allocation20_spill]] %s10772_s6 }
  0x21   :  { %12642 = sst [smem:[#allocation21_spill]] %s10777_s12 }
  0x22   :  { %12643 = sst [smem:[#allocation22_spill]] %s10782_s20 }
  0x23   :  { %12644 = sst [smem:[#allocation23_spill]] %s10787_s27 }
  0x24   :  { %12645 = sst [smem:[#allocation24_spill]] %s10792_s4 }
  0x25   :  { %12646 = sst [smem:[#allocation25_spill]] %s10797_s14 }
  0x26   :  { %s10802_s6 = sld [smem:[%s12539_s0 + %s10650_s15]]   ;;  %s10654_s15 = smov 23  }
  0x27   :  { %s10807_s27 = sld [smem:[%s12539_s0 + %s10651_s22]]   ;;  %s10655_s22 = smov 24  }
  0x28   :  { %s10812_s12 = sld [smem:[%s12539_s0 + %s10652_s28]]   ;;  %s10656_s28 = smov 25  }
  0x29   :  { %s10817_s14 = sld [smem:[%s12539_s0 + %s10653_s7]]   ;;  %s10657_s7 = smov 26  }
  0x2c   :  { %12647 = sst [smem:[#allocation26_spill]] %s10802_s6 }
  0x2d   :  { %12648 = sst [smem:[#allocation27_spill]] %s10807_s27 }
  0x2e   :  { %12649 = sst [smem:[#allocation28_spill]] %s10812_s12 }
  0x2f   :  { %12650 = sst [smem:[#allocation29_spill]] %s10817_s14 }
  0x30   :  { %s10822_s6 = sld [smem:[%s12539_s0 + %s10654_s15]]   ;;  %s10658_s15 = smov 27  }
  0x31   :  { %s10827_s27 = sld [smem:[%s12539_s0 + %s10655_s22]]   ;;  %s10659_s22 = smov 28  }
  0x32   :  { %s10832_s12 = sld [smem:[%s12539_s0 + %s10656_s28]]   ;;  %s10660_s28 = smov 29  }
  0x33   :  { %s10837_s14 = sld [smem:[%s12539_s0 + %s10657_s7]]   ;;  %s10661_s7 = smov 30  }
  0x36   :  { %12651 = sst [smem:[#allocation30_spill]] %s10822_s6 }
  0x37   :  { %12652 = sst [smem:[#allocation31_spill]] %s10827_s27 }
  0x38   :  { %12653 = sst [smem:[#allocation32_spill]] %s10832_s12 }
  0x39   :  { %12654 = sst [smem:[#allocation33_spill]] %s10837_s14 }
  0x3a   :  { %s10842_s6 = sld [smem:[%s12539_s0 + %s10658_s15]]   ;;  %s10662_s15 = smov 31  }
  0x3b   :  { %s10847_s27 = sld [smem:[%s12539_s0 + %s10659_s22]]   ;;  %s10663_s22 = smov 32  }
  0x3c   :  { %s10852_s12 = sld [smem:[%s12539_s0 + %s10660_s28]]   ;;  %s10664_s28 = smov 33  }
  0x3d   :  { %s10857_s14 = sld [smem:[%s12539_s0 + %s10661_s7]]   ;;  %s10665_s7 = smov 34  }
  0x40   :  { %12655 = sst [smem:[#allocation34_spill]] %s10842_s6 }
  0x41   :  { %12656 = sst [smem:[#allocation35_spill]] %s10847_s27 }
  0x42   :  { %12657 = sst [smem:[#allocation36_spill]] %s10852_s12 }
  0x43   :  { %12658 = sst [smem:[#allocation37_spill]] %s10857_s14 }
  0x44   :  { %s10862_s6 = sld [smem:[%s12539_s0 + %s10662_s15]]   ;;  %s10666_s15 = smov 35  }
  0x45   :  { %s10867_s27 = sld [smem:[%s12539_s0 + %s10663_s22]]   ;;  %s10667_s22 = smov 36  }
  0x46   :  { %s10872_s12 = sld [smem:[%s12539_s0 + %s10664_s28]]   ;;  %s10668_s28 = smov 37  }
  0x47   :  { %s10877_s14 = sld [smem:[%s12539_s0 + %s10665_s7]]   ;;  %s10669_s7 = smov 38  }
  0x4a   :  { %12659 = sst [smem:[#allocation38_spill]] %s10862_s6 }
  0x4b   :  { %12660 = sst [smem:[#allocation39_spill]] %s10867_s27 }
  0x4c   :  { %12661 = sst [smem:[#allocation40_spill]] %s10872_s12 }
  0x4d   :  { %12662 = sst [smem:[#allocation41_spill]] %s10877_s14 }
  0x4e   :  { %s10882_s6 = sld [smem:[%s12539_s0 + %s10666_s15]]  }
  0x4f   :  { %s10887_s27 = sld [smem:[%s12539_s0 + %s10667_s22]]  }
  0x50   :  { %s10892_s12 = sld [smem:[%s12539_s0 + %s10668_s28]]  }
  0x51   :  { %s10897_s14 = sld [smem:[%s12539_s0 + %s10669_s7]]  }
  0x54   :  { %12663 = sst [smem:[#allocation42_spill]] %s10882_s6 }
  0x55   :  { %83 = vsyncpa [#allocation3], 0 }
  0x56   :  { %85 = vsyncpa [#allocation3 + $0x1], 0 }
  0x57   :  { %86 = vsyncpa [#allocation5], 0 }
  0x58   :  { %88 = vsyncpa [#allocation5 + $0x1], 0  ;;  %s10899_s15 = smov 0   ;;  %s10901_s16 = smov 0  }
  0x59   :  { %s10903_s18 = smov 0   ;;  %s10905_s22 = smov 0  }
  0x5a LB: > { %s12664_s6 = sld [smem:[#allocation42_spill]]  ;;  %s10920_s0 = sadd.s32 4294967295, %s10630_s22   ;;  %s10618_s15 = sphi %s10899_s15, %s12765_s15   ;;  %s10630_s22 = sphi %s10905_s22, %s12768_s22   ;;  %s10626_s18 = sphi %s10903_s18, %s12767_s18   ;;  %s10622_s16 = sphi %s10901_s16, %s12766_s16  }
  0x5b   : > { %s12665_s4 = sld [smem:[#allocation24_spill]]  ;;  %s8894_s23 = sadd.s32 4294967294, %s10630_s22  }
  0x5c   : > { %s12666_s25 = sld [smem:[#allocation13_spill]]  ;;  %s10924_s26 = sadd.s32 1, %s10630_s22  }
  0x5d   : > { %s12667_s19 = sld [smem:[#allocation18_spill]]  ;;  %s903_s28 = sadd.s32 1, %s10626_s18 }
  0x5e   : > { %s12668_s3 = sld [smem:[#allocation15_spill]]  ;;  %s900_s1 = ssub.s32 %s10630_s22, %s10924_s26 }
  0x5f   : > { %p913_p0 = scmp.ne.s32.totalorder %s10626_s18, %s10622_s16  ;;  %p901_p1 = scmp.eq.s32.totalorder %s900_s1, 0 }
  0x60   : > { %p914_p2 = scmp.eq.s32.totalorder %s10920_s0, 1  ;;  %p919_p3 = scmp.ne.s32.totalorder %s10622_s16, %s10618_s15 }
  0x61   : > { %p920_p4 = scmp.eq.s32.totalorder %s8894_s23, 1  ;;  %p8897_p7 = scmp.ge.s32.totalorder %s10630_s22, 1 }
  0x62   : > { %s10935_s2 = scalar_select %p901_p1, %s10626_s18, %s903_s28  }
  0x63   : > { %p10937_p5 = por %p914_p2, %p913_p0  ;;  %p10941_p6 = por %p920_p4, %p919_p3 }
  0x64   : > { %p1097_p8 = scmp.lt.s32.totalorder %s10630_s22, 3 }
  0x66   : > { %p1098_p9 = pnand %p8897_p7, %p1097_p8 }
  0x68   : > { %1101 = sbr.rel (%p1098_p9) target bundleno = 8731 (0x221b), region = 168 }
  0x6d   : > { %s12671_s29 = sld [smem:[#allocation14_spill]]  ;;  %v1245_v0 = vld [vmem:[%s12666_s25 + $0x38] sm:$0xff]  ;;  %vm1257_vm0 = vcmask 261120   ;;  %v12580_v1 = vmov 0.0   ;;  %vm10671_vm1 = vmmov 0   ;;  %v1244_v3 = vld [vmem:[%s12666_s25 + $0x30] sm:$0xff] }
  0x6e   : > { %9477 = vmatprep.subr.mxu0 %v12580_v1  ;;  %9493 = vmatprep.mubr.msk.f32.mxu0 %vm10671_vm1, %v12580_v1  ;;  %s12554_s11 = smov 64   ;;  %v1243_v4 = vld [vmem:[%s12666_s25 + $0x28] sm:$0xff]  ;;  %s12672_s5 = sld [smem:[#allocation8_spill]]  ;;  %v1242_v5 = vld [vmem:[%s12666_s25 + $0x20] sm:$0xff]  ;;  %v1241_v6 = vld [vmem:[%s12666_s25 + $0x18] sm:$0xff]  ;;  %vm1446_vm2 = vcmask 64512  }
  0x6f   : > { %9478 = vmatpush3.xpose.msk.msra.mxu0 %vm1257_vm0, %v1245_v0  ;;  %9496 = vmatprep.subr.mxu1 %v12580_v1  ;;  %s12673_s9 = sld [smem:[#allocation9_spill]]  ;;  %p1213_p10 = scmp.lt.s32.totalorder %s10920_s0, 1  ;;  %v1240_v7 = vld [vmem:[%s12666_s25 + $0x10] sm:$0xff]  ;;  %v1239_v8 = vld [vmem:[%s12666_s25 + $0x8] sm:$0xff]  ;;  %v1238_v11 = vld [vmem:[%s12666_s25] sm:$0xff]  ;;  %vm2118_vm15 = vcmask 130048  }
  0x70   : > { %9479 = vmatprep.subr.mxu0 %v12580_v1  ;;  %9504 = vmatprep.mubr.msk.f32.mxu1 %vm10671_vm1, %v12580_v1  ;;  %v1249_v13 = vld [vmem:[%s12666_s25 + $0x58] sm:$0xff]  ;;  %v1248_v14 = vld [vmem:[%s12666_s25 + $0x50] sm:$0xff]  ;;  %v1247_v15 = vld [vmem:[%s12666_s25 + $0x48] sm:$0xff]  ;;  %s12674_s17 = sld [smem:[#allocation11_spill]] }
  0x71   : > { %s10970_s23 = scalar_select %p1213_p10, %s10920_s0, 1  ;;  %9497 = vmatpush3.xpose.msk.msra.mxu1 %vm1257_vm0, %v1249_v13  ;;  %v1246_v16 = vld [vmem:[%s12666_s25 + $0x40] sm:$0xff]  ;;  %v10681_v13 = vmov 0  }
  0x72   : > { %9498 = vmatprep.subr.mxu1 %v12580_v1  ;;  %s12675_s21 = sld [smem:[#allocation12_spill]]  ;;  %10299 = vset.pattern.permute.xlu0 %v10681_v13  ;;  %s12712_s25 = smov 127  }
  0x73   : > { %v8907_v2 = vld [vmem:[%s12671_s29] ss:$0 sm:$0xff]  ;;  %9480 = vmatpush3.xpose.msk.msra.mxu0 %vm1257_vm0, %v1244_v3  ;;  %s8900_s28 = sshll.u32 %s10970_s23, 3  ;;  %s12681_s20 = sld [smem:[#allocation22_spill]] }
  0x74   : > { %1355 = vrot.lane.b32.xlu1 %v8907_v2, %s12554_s11  ;;  %9481 = vmatprep.subr.mxu0 %v12580_v1  ;;  %s1216_s1 = scalar_lea.vmem %s12672_s5, %s8900_s28  ;;  %s12676_s5 = smov 104  }
  0x75   : > { %s1220_s11 = scalar_lea.vmem %s12673_s9, %s8900_s28  ;;  %v10982_v9 = vld [vmem:[%s1216_s1] sm:$0xff]  ;;  %9499 = vmatpush3.xpose.msk.msra.mxu1 %vm1257_vm0, %v1248_v14  ;;  %s12558_s28 = smov 96  }
  0x76   : > { %v1236_v10 = vld [vmem:[%s1220_s11] sm:$0xff]  ;;  %9500 = vmatprep.subr.mxu1 %v12580_v1  ;;  %s12556_s11 = smov 88   ;;  %s12561_s1 = smov 120  }
  0x77   : > { %9482 = vmatpush3.xpose.msk.msra.mxu0 %vm1257_vm0, %v1243_v4  ;;  %v1237_v12 = vadd.f32 %v1236_v10, %v10982_v9  ;;  %s12682_s13 = sld [smem:[#allocation10_spill]] }
  0x78   : > { %9483 = vmatprep.subr.mxu0 %v12580_v1  ;;  %s12683_s24 = sld [smem:[#allocation19_spill]] }
  0x79   : > { %9501 = vmatpush3.xpose.msk.msra.mxu1 %vm1257_vm0, %v1247_v15  ;;  %s12685_s8 = sld [smem:[#allocation16_spill]] }
  0x7a   : > { %9502 = vmatprep.subr.mxu1 %v12580_v1  ;;  %s12693_s9 = sld [smem:[#allocation25_spill]] }
  0x7b   : > { %9484 = vmatpush3.xpose.msk.msra.mxu0 %vm1257_vm0, %v1242_v5 }
  0x7c   : > { %9485 = vmatprep.subr.mxu0 %v12580_v1 }
  0x7d   : > { %9503 = vmatpush3.xpose.msk.msra.mxu1 %vm1257_vm0, %v1246_v16 }
  0x7e   : > { %9507 = vmatprep.subr.mxu1 %v12580_v1 }
  0x7f   : > { %9486 = vmatpush3.xpose.msk.msra.mxu0 %vm1257_vm0, %v1241_v6 }
  0x80   : > { %9487 = vmatprep.subr.mxu0 %v12580_v1  ;;  %9505 = vmatmul.mubr.msk.f32.vlgmr.msra.gmra.mxu1 %vm1257_vm0, %v10982_v9 }
  0x81   : > { %9509 = vmatprep.mubr.msk.f32.mxu1 %vm10671_vm1, %v12580_v1 }
  0x83   : > { %9488 = vmatpush3.xpose.msk.msra.mxu0 %vm1257_vm0, %v1240_v7 }
  0x84   : > { %9489 = vmatprep.subr.mxu0 %v12580_v1 }
  0x87   : > { %9490 = vmatpush3.xpose.msk.msra.mxu0 %vm1257_vm0, %v1239_v8 }
  0x88   : > { %9491 = vmatprep.subr.mxu0 %v12580_v1 }
  0x8b   : > { %9492 = vmatpush3.xpose.msk.msra.mxu0 %vm1257_vm0, %v1238_v11  ;;  %v10680_v11 = vmov 1  }
  0x8c   : > { %9547 = vmatprep.subr.mxu0 %v12580_v1  ;;  %10300 = vset.pattern.permute.xlu1 %v10680_v11 }
  0x8e   : > { %9494 = vmatmul.mubr.msk.f32.vlgmr.msra.gmra.mxu0 %vm1257_vm0, %v1237_v12 }
  0x8f   : > { %9555 = vmatprep.mubr.msk.f32.mxu0 %vm10671_vm1, %v12580_v1 }
  0xe6   : > { %v1356_v22 = vpop.permute.xlu1 %1355 }
 0x140   : > { %v1439_v20 = vpop.f32.mrf.mxu1 }
 0x141   : > { %v11015_v24 = vadd.f32 %v1439_v20, %v1356_v22 }
 0x142   : > { %v9506_v21 = vpop.f32.mrf.mxu1 }
 0x143   : > { %v2259_v21 = vlaneseq }
 0x14e   : > { %v1351_v17 = vpop.f32.mrf.mxu0 }
 0x14f   : > { %v11008_v18 = vadd.f32 %v8907_v2, %v1351_v17 }
 0x150   : > { %v9495_v19 = vpop.f32.mrf.mxu0 }
 0x151   : > { %1608 = vrot.lane.b32.xlu1 %v11008_v18, %s12556_s11  ;;  %1444 = vrot.lane.b32.xlu0 %v11008_v18, %s12558_s28  ;;  %s12560_s11 = smov 80   ;;  %s12563_s28 = smov 112  }
 0x1c3   : > { %v1445_v23 = vpop.permute.xlu0 %1444  ;;  %v1609_v34 = vpop.permute.xlu1 %1608 }
 0x1c4   : > { %9508 = vmatpush3.xpose.msk.msra.mxu1 %vm1446_vm2, %v1445_v23  ;;  %v11091_v23 = vshrl.u32 %v2259_v21, 7 }
 0x1c5   : > { %9512 = vmatprep.subr.mxu1 %v12580_v1 }
 0x1c7   : > { %9510 = vmatmul.mubr.msk.f32.vlgmr.msra.gmra.mxu1 %vm1446_vm2, %v11008_v18 }
 0x1c8   : > { %9513 = vmatpush3.msra.mxu1 %v11015_v24  ;;  %9514 = vmatprep.mubr.msk.f32.mxu1 %vm10671_vm1, %v12580_v1 }
 0x1c9   : > { %9517 = vmatprep.subr.mxu1 %v12580_v1 }
 0x287   : > { %v1517_v25 = vpop.f32.mrf.mxu1 }
 0x288   : > { %v1521_v26 = vmul.f32 0.35355338, %v1517_v25 }
 0x289   : > { %v9511_v27 = vpop.f32.mrf.mxu1 }
 0x28a   : > { %v1522_v28 = vsel %vm1446_vm2, %v1521_v26, -inf }
 0x28b   : > { %1523 = vmax.xlane.f32.xlu0 %v1522_v28 }
 0x2a1   : > { %1697 = vrot.lane.b32.xlu0 %v11015_v24, %s12561_s1 }
 0x314   : > { %v1524_v29 = vpop.xlane.xlu0 %1523 }
 0x315   : > { %v1525_v30 = vsub.f32 %v1521_v26, %v1524_v29  ;;  %v11094_v26 = vsub.s32 2, %v11091_v23  ;;  %v11098_v29 = vsub.s32 0, %v11091_v23 }
 0x317   : > { %v1526_v31 = vmul.f32 1.442695, %v1525_v30  ;;  %12677 = vst [vmem:[#allocation43_spill] sm:$0xff] %v11094_v26  ;;  %12678 = vst [vmem:[#allocation44_spill] sm:$0xff] %v11098_v29 }
 0x318   : > { %v1698_v39 = vpop.permute.xlu0 %1697 }
 0x319   : > { %10316 = vpow2.f32 %v1526_v31 }
 0x326   : > { %v10317_v32 = vpop.eup %10316 }
 0x327   : > { %v1528_v33 = vsel %vm1446_vm2, %v10317_v32, 0.0 }
 0x328   : > { %1529 = vadd.xlane.f32.xlu1 %v1528_v33 }
 0x339   : > { %1606 = vrot.lane.b32.xlu1 %v11008_v18, %s12561_s1  ;;  %s12566_s1 = smov 104  }
 0x3b1   : > { %v1530_v35 = vpop.xlane.xlu1 %1529 }
 0x3b2   : > { %10318 = vrcp.f32 %v1530_v35  ;;  %v11104_v35 = vsub.s32 3, %v11091_v23 }
 0x3b4   : > { %12679 = vst [vmem:[#allocation45_spill] sm:$0xff] %v11104_v35 }
 0x3b5   : > { %v1607_v38 = vpop.permute.xlu1 %1606 }
 0x3bf   : > { %v10319_v36 = vpop.eup %10318 }
 0x3c0   : > { %v1532_v37 = vmul.f32 %v10319_v36, %v10317_v32 }
 0x3c2   : > { %9515 = vmatmul.mubr.msk.f32.vlgmr.msra.gmra.mxu1 %vm1446_vm2, %v1532_v37 }
 0x3c3   : > { %9518 = vmatpush3.xpose.msk.msra.mxu1 %vm1446_vm2, %v1609_v34  ;;  %9519 = vmatprep.mubr.msk.f32.mxu1 %vm10671_vm1, %v12580_v1 }
 0x3c4   : > { %9522 = vmatprep.subr.mxu1 %v12580_v1 }
 0x3c6   : > { %9520 = vmatmul.mubr.msk.f32.vlgmr.msra.gmra.mxu1 %vm1446_vm2, %v1607_v38 }
 0x3c7   : > { %9523 = vmatpush3.msra.mxu1 %v1698_v39  ;;  %9524 = vmatprep.mubr.msk.f32.mxu1 %vm10671_vm1, %v12580_v1 }
 0x3c8   : > { %9527 = vmatprep.subr.mxu1 %v12580_v1 }
 0x482   : > { %v11039_v40 = vpop.f32.mrf.mxu1 }
 0x484   : > { %v9516_v41 = vpop.f32.mrf.mxu1 }
 0x485   : > { %v11108_v41 = vsub.s32 1, %v11091_v23 }
 0x486   : > { %v1680_v42 = vpop.f32.mrf.mxu1 }
 0x487   : > { %v1684_v43 = vmul.f32 0.35355338, %v1680_v42  ;;  %12680 = vst [vmem:[#allocation46_spill] sm:$0xff] %v11108_v41 }
 0x488   : > { %v9521_v44 = vpop.f32.mrf.mxu1 }
 0x489   : > { %v1685_v45 = vsel %vm1446_vm2, %v1684_v43, -inf }
 0x48a   : > { %1686 = vmax.xlane.f32.xlu1 %v1685_v45 }
 0x513   : > { %v1687_v46 = vpop.xlane.xlu1 %1686 }
 0x514   : > { %v1688_v47 = vsub.f32 %v1684_v43, %v1687_v46 }
 0x516   : > { %v1689_v48 = vmul.f32 1.442695, %v1688_v47 }
 0x518   : > { %10320 = vpow2.f32 %v1689_v48 }
 0x525   : > { %v10321_v49 = vpop.eup %10320 }
 0x526   : > { %v1691_v50 = vsel %vm1446_vm2, %v10321_v49, 0.0 }
 0x527   : > { %1692 = vadd.xlane.f32.xlu0 %v1691_v50 }
 0x53d   : > { %1775 = vrot.lane.b32.xlu0 %v11008_v18, %s12560_s11  ;;  %s10678_s11 = smov 72  }
 0x541   : > { %1773 = vrot.lane.b32.xlu0 %v11008_v18, %s12563_s28 }
 0x5b0   : > { %v1693_v51 = vpop.xlane.xlu0 %1692 }
 0x5b1   : > { %10322 = vrcp.f32 %v1693_v51 }
 0x5b4   : > { %v1776_v53 = vpop.permute.xlu0 %1775 }
 0x5b8   : > { %v1774_v55 = vpop.permute.xlu0 %1773 }
 0x5be   : > { %v10323_v52 = vpop.eup %10322 }
 0x5bf   : > { %v1695_v54 = vmul.f32 %v10323_v52, %v10321_v49 }
 0x5c1   : > { %9525 = vmatmul.mubr.msk.f32.vlgmr.msra.gmra.mxu1 %vm1446_vm2, %v1695_v54 }
 0x5c2   : > { %9528 = vmatpush3.xpose.msk.msra.mxu1 %vm1446_vm2, %v1776_v53  ;;  %9529 = vmatprep.mubr.msk.f32.mxu1 %vm10671_vm1, %v12580_v1 }
 0x5c3   : > { %9532 = vmatprep.subr.mxu1 %v12580_v1 }
 0x5c5   : > { %9530 = vmatmul.mubr.msk.f32.vlgmr.msra.gmra.mxu1 %vm1446_vm2, %v1774_v55 }
 0x5c6   : > { %9534 = vmatprep.mubr.msk.f32.mxu1 %vm10671_vm1, %v12580_v1 }
 0x681   : > { %v11055_v56 = vpop.f32.mrf.mxu1 }
 0x683   : > { %v9526_v57 = vpop.f32.mrf.mxu1 }
 0x685   : > { %v1847_v58 = vpop.f32.mrf.mxu1 }
 0x686   : > { %v1851_v59 = vmul.f32 0.35355338, %v1847_v58 }
 0x687   : > { %v9531_v60 = vpop.f32.mrf.mxu1 }
 0x688   : > { %v1852_v61 = vsel %vm1446_vm2, %v1851_v59, -inf }
 0x689   : > { %1853 = vmax.xlane.f32.xlu1 %v1852_v61 }
 0x69a   : > { %1863 = vrot.lane.b32.xlu1 %v11015_v24, %s12563_s28 }
 0x69e   : > { %1941 = vrot.lane.b32.xlu1 %v11008_v18, %s10678_s11  ;;  %s12565_s11 = sshll.u32 %s10970_s23, 4 }
 0x69f   : > { %s1230_s28 = scalar_lea.vmem %s12674_s17, %s12565_s11  ;;  %s8906_s11 = sshll.u32 %s10970_s23, 2 }
 0x6a0   : > { %v2246_v12 = vld [vmem:[%s1230_s28] sm:$0xff]  ;;  %v11083_v20 = vld [vmem:[%s1230_s28 + $0x8] sm:$0xff]  ;;  %s12568_s28 = smov 8   ;;  %s12695_s17 = sld [smem:[#allocation17_spill]] }
 0x6a2   : > { %1939 = vrot.lane.b32.xlu1 %v11008_v18, %s12566_s1  ;;  %s1234_s1 = scalar_lea.vmem %s12675_s21, %s8906_s11  ;;  %s12570_s11 = smov 16  }
 0x6a3   : > { %v2248_v22 = vld [vmem:[%s1234_s1] sm:$0xf]  ;;  %s12572_s1 = smov 24  }
 0x6a4   : > { %v2279_v25 = vmax.f32 %v2248_v22, 1e-06  ;;  %v2262_v30 = vrot.slane %v2248_v22, %v11098_v29  ;;  %v2276_v44 = vrot.slane %v2248_v22, %v11108_v41 }
 0x6a6   : > { %v2280_v27 = vadd.f32 1e-06, %v2279_v25 }
 0x6a8   : > { %v2284_v28 = vrot.slane %v2280_v27, %v11094_v26  ;;  %v2291_v37 = vrot.slane %v2280_v27, %v11104_v35 }
 0x712   : > { %v1854_v62 = vpop.xlane.xlu1 %1853 }
 0x713   : > { %v1855_v63 = vsub.f32 %v1851_v59, %v1854_v62 }
 0x715   : > { %v1856_v0 = vmul.f32 1.442695, %v1855_v63 }
 0x716   : > { %v1864_v2 = vpop.permute.xlu1 %1863 }
 0x717   : > { %10324 = vpow2.f32 %v1856_v0  ;;  %9533 = vmatpush3.msra.mxu1 %v1864_v2 }
 0x718   : > { %9537 = vmatprep.subr.mxu1 %v12580_v1 }
 0x71a   : > { %v1942_v7 = vpop.permute.xlu1 %1941 }
 0x71e   : > { %v1940_v10 = vpop.permute.xlu1 %1939 }
 0x724   : > { %v10325_v3 = vpop.eup %10324 }
 0x725   : > { %v1858_v4 = vsel %vm1446_vm2, %v10325_v3, 0.0 }
 0x726   : > { %1859 = vadd.xlane.f32.xlu0 %v1858_v4 }
 0x73c   : > { %2251 = vperm.xlu0 %10299, %v2246_v12  }
 0x740   : > { %10302 = vset.pattern.permute.xlu0 %v10680_v11 }
 0x7af   : > { %v1860_v5 = vpop.xlane.xlu0 %1859 }
 0x7b0   : > { %10326 = vrcp.f32 %v1860_v5 }
 0x7b1   : > { %10328 = vrcp.f32 %v2284_v28 }
 0x7b2   : > { %10330 = vrcp.f32 %v2291_v37 }
 0x7b7   : > { %v2252_v32 = vpop.permute.xlu0 %2251 }
 0x7b8   : > { %v2263_v33 = vsub.f32 %v2252_v32, %v2262_v30 }
 0x7ba   : > { %v2355_v49 = vmul.f32 %v2263_v33, %v2263_v33 }
 0x7bd   : > { %v10327_v6 = vpop.eup %10326 }
 0x7be   : > { %v1862_v8 = vmul.f32 %v10327_v6, %v10325_v3  ;;  %v10329_v31 = vpop.eup %10328 }
 0x7bf   : > { %v11101_v34 = vmul.f32 %v10329_v31, %v2263_v33  ;;  %v10331_v46 = vpop.eup %10330 }
 0x7c0   : > { %9535 = vmatmul.mubr.msk.f32.vlgmr.msra.gmra.mxu1 %vm1446_vm2, %v1862_v8 }
 0x7c1   : > { %9538 = vmatpush3.xpose.msk.msra.mxu1 %vm1446_vm2, %v1942_v7  ;;  %9539 = vmatprep.mubr.msk.f32.mxu1 %vm10671_vm1, %v12580_v1 }
 0x7c2   : > { %9542 = vmatprep.subr.mxu1 %v12580_v1 }
 0x7c4   : > { %9540 = vmatmul.mubr.msk.f32.vlgmr.msra.gmra.mxu1 %vm1446_vm2, %v1940_v10 }
 0x7c5   : > { %9544 = vmatprep.mubr.msk.f32.mxu1 %vm10671_vm1, %v12580_v1 }
 0x880   : > { %v11080_v14 = vpop.f32.mrf.mxu1 }
 0x882   : > { %v9536_v15 = vpop.f32.mrf.mxu1 }
 0x884   : > { %v2013_v16 = vpop.f32.mrf.mxu1 }
 0x885   : > { %v2017_v17 = vmul.f32 0.35355338, %v2013_v16  ;;  %v2295_v16 = vand.u32 2147483647, %v11101_v34 }
 0x886   : > { %v9541_v18 = vpop.f32.mrf.mxu1 }
 0x887   : > { %v2018_v19 = vsel %vm1446_vm2, %v2017_v17, -inf  ;;  %vm2297_vm8 = vcmp.le.f32.partialorder %v2295_v16, 0.5  ;;  %v2490_v16 = vld [vmem:[%s10767_s30 + $0x38] sm:$0xff] }
 0x888   : > { %2019 = vmax.xlane.f32.xlu1 %v2018_v19 }
 0x899   : > { %2266 = vperm.xlu1 %10300, %v2246_v12  }
 0x89d   : > { %10301 = vset.pattern.permute.xlu1 %v10681_v13 }
 0x89e   : > { %2256 = vperm.xlu1 %10301, %v11083_v20  }
 0x8a2   : > { %2029 = vrot.lane.b32.xlu1 %v11015_v24, %s12676_s5  ;;  %v2341_v24 = vmul.f32 %v2248_v22, %v2248_v22 }
 0x8a4   : > { %v2343_v36 = vrot.slane %v2341_v24, 1 }
 0x8a6   : > { %v2345_v38 = vadd.f32 %v2343_v36, %v2341_v24  ;;  %v2391_v36 = vld [vmem:[%s12667_s19 + $0x10] sm:$0xff] }
 0x8a8   : > { %v2346_v39 = vmul.f32 0.25, %v2345_v38  ;;  %v2390_v38 = vld [vmem:[%s12667_s19 + $0x8] sm:$0xff] }
 0x8aa   : > { %10332 = vrsqrt.f32 %v2346_v39  ;;  %vm2349_vm3 = vcmp.eq.f32.partialorder %v2346_v39, inf  ;;  %v2352_v60 = vand.u32 2147483648, %v2346_v39  ;;  %vm2351_vm4 = vcmp.eq.f32.partialorder %v2346_v39, 0.0 }
 0x8b7   : > { %v10333_v52 = vpop.eup %10332 }
 0x8b8   : > { %v2348_v57 = vmul.f32 %v10333_v52, %v2346_v39 }
 0x8ba   : > { %v2350_v61 = vsel %vm2349_vm3, %v2346_v39, %v2348_v57  ;;  %v2389_v39 = vld [vmem:[%s12667_s19] sm:$0xff]  ;;  %vm2120_vm3 = vcmask 195584  }
 0x8bb   : > { %v2353_v63 = vsel %vm2351_vm4, %v2352_v60, %v2350_v61  ;;  %vm7875_vm4 = vcmask 523264  }
 0x8bc   : > { %v2354_v2 = vmax.f32 %v2353_v63, 16.0 }
 0x8be   : > { %v11116_v5 = vrot.slane %v2354_v2, %v11094_v26 }
 0x911   : > { %v2020_v42 = vpop.xlane.xlu1 %2019 }
 0x912   : > { %v2021_v43 = vsub.f32 %v2017_v17, %v2020_v42  ;;  %v2392_v17 = vld [vmem:[%s12667_s19 + $0x18] sm:$0xff]  ;;  %s12703_s19 = sld [smem:[#allocation28_spill]] }
 0x914   : > { %v2022_v45 = vmul.f32 1.442695, %v2021_v43 }
 0x915   : > { %v2267_v47 = vpop.permute.xlu1 %2266 }
 0x916   : > { %10334 = vpow2.f32 %v2022_v45  ;;  %v2277_v48 = vsub.f32 %v2267_v47, %v2276_v44 }
 0x918   : > { %v2293_v50 = vmul.f32 %v10331_v46, %v2277_v48  ;;  %v2357_v51 = vmul.f32 %v2277_v48, %v2277_v48  ;;  %v2498_v48 = vld [vmem:[%s10767_s30 + $0x78] sm:$0xff] }
 0x919   : > { %v2257_v53 = vpop.permute.xlu1 %2256 }
 0x91a   : > { %v2264_v54 = vsub.f32 %v2257_v53, %v2262_v30  ;;  %2313 = vrot.lane.b32.xlu1 %v2293_v50, %s12568_s28  ;;  %v2359_v55 = vadd.f32 %v2357_v51, %v2355_v49  ;;  %v2299_v15 = vand.u32 2147483647, %v2293_v50  ;;  %v2125_v49 = vld [vmem:[%s12668_s3 + $0x18] sm:$0xff]  ;;  %v2123_v50 = vld [vmem:[%s12668_s3 + $0x8] sm:$0xff]  ;;  %v2122_v51 = vld [vmem:[%s12668_s3] sm:$0xff] }
 0x91b   : > { %9548 = vmatpush3.xpose.msk.msra.mxu0 %vm1257_vm0, %v2125_v49  ;;  %v10685_v49 = vmov 2  }
 0x91c   : > { %v11112_v58 = vmul.f32 %v10329_v31, %v2264_v54  ;;  %10336 = vrsqrt.f32 %v2359_v55  ;;  %vm2363_vm5 = vcmp.eq.f32.partialorder %v2359_v55, inf  ;;  %v2366_v4 = vand.u32 2147483648, %v2359_v55  ;;  %9549 = vmatprep.subr.mxu0 %v12580_v1 }
 0x91d   : > { %v2030_v59 = vpop.permute.xlu1 %2029  ;;  %vm2365_vm6 = vcmp.eq.f32.partialorder %v2359_v55, 0.0  ;;  %vm2301_vm7 = vcmp.le.f32.partialorder %v2299_v15, 0.5  ;;  %v2356_v21 = vmul.f32 %v2264_v54, %v2264_v54  ;;  %v2491_v15 = vld [vmem:[%s10767_s30 + $0x40] sm:$0xff] }
 0x91e   : > { %9543 = vmatpush3.msra.mxu1 %v2030_v59  ;;  %v2296_v19 = vand.u32 2147483647, %v11112_v58  ;;  %vm2303_vm9 = vmand %vm2297_vm8, %vm2301_vm7 }
 0x91f   : > { %9558 = vmatprep.subr.mxu1 %v2392_v17 }
 0x920   : > { %vm2298_vm10 = vcmp.le.f32.partialorder %v2296_v19, 0.5  ;;  %v2487_v19 = vld [vmem:[%s10767_s30 + $0x20] sm:$0xff] }
 0x923   : > { %v10335_v62 = vpop.eup %10334 }
 0x924   : > { %v2024_v0 = vsel %vm1446_vm2, %v10335_v62, 0.0 }
 0x925   : > { %2025 = vadd.xlane.f32.xlu0 %v2024_v0 }
 0x929   : > { %v10337_v3 = vpop.eup %10336 }
 0x92a   : > { %v2362_v6 = vmul.f32 %v10337_v3, %v2359_v55 }
 0x92c   : > { %v2364_v7 = vsel %vm2363_vm5, %v2359_v55, %v2362_v6  ;;  %v2494_v6 = vld [vmem:[%s10767_s30 + $0x58] sm:$0xff] }
 0x92d   : > { %v11118_v8 = vsel %vm2365_vm6, %v2366_v4, %v2364_v7  ;;  %v2497_v4 = vld [vmem:[%s10767_s30 + $0x70] sm:$0xff] }
 0x92e   : > { %v2379_v10 = vsub.f32 %v11118_v8, %v11116_v5  ;;  %v2493_v7 = vld [vmem:[%s10767_s30 + $0x50] sm:$0xff] }
 0x93b   : > { %2270 = vperm.xlu0 %10302, %v11083_v20   ;;  %v8942_v20 = vsel %vm2303_vm9, 1.0, %v12580_v1 }
 0x93c   : > { %v2309_v32 = vsub.f32 1.0, %v8942_v20 }
 0x93f   : > { %10308 = vset.pattern.permute.xlu0 %v10685_v49 }
 0x98c   : > { %v2314_v52 = vpop.permute.xlu1 %2313 }
 0x98d   : > { %v2335_v59 = vsel %vm1446_vm2, %v11101_v34, %v2314_v52  ;;  %v2496_v34 = vld [vmem:[%s10767_s30 + $0x68] sm:$0xff]  ;;  %v8939_v52 = vld [vmem:[%s12685_s8] ss:$0 sm:$0xff] }
 0x9ae   : > { %v2026_v12 = vpop.xlane.xlu0 %2025 }
 0x9af   : > { %10338 = vrcp.f32 %v2026_v12  ;;  %v2492_v12 = vld [vmem:[%s10767_s30 + $0x48] sm:$0xff] }
 0x9b6   : > { %v2271_v18 = vpop.permute.xlu0 %2270 }
 0x9b7   : > { %v2278_v22 = vsub.f32 %v2271_v18, %v2276_v44  ;;  %v2488_v18 = vld [vmem:[%s10767_s30 + $0x28] sm:$0xff] }
 0x9b9   : > { %v2294_v25 = vmul.f32 %v10331_v46, %v2278_v22  ;;  %v2358_v27 = vmul.f32 %v2278_v22, %v2278_v22  ;;  %v2485_v22 = vld [vmem:[%s10767_s30 + $0x10] sm:$0xff] }
 0x9bb   : > { %v2300_v28 = vand.u32 2147483647, %v2294_v25  ;;  %v2360_v30 = vadd.f32 %v2358_v27, %v2356_v21  ;;  %2315 = vrot.lane.b32.xlu0 %v2294_v25, %s12568_s28  ;;  %v2486_v21 = vld [vmem:[%s10767_s30 + $0x18] sm:$0xff]  ;;  %v2484_v25 = vld [vmem:[%s10767_s30 + $0x8] sm:$0xff]  ;;  %v2483_v27 = vld [vmem:[%s10767_s30] sm:$0xff] }
 0x9bc   : > { %v10339_v31 = vpop.eup %10338 }
 0x9bd   : > { %vm2302_vm11 = vcmp.le.f32.partialorder %v2300_v28, 0.5  ;;  %10340 = vrsqrt.f32 %v2360_v30  ;;  %v2028_v33 = vmul.f32 %v10339_v31, %v10335_v62  ;;  %vm2370_vm13 = vcmp.eq.f32.partialorder %v2360_v30, inf }
 0x9be   : > { %vm2304_vm12 = vmand %vm2298_vm10, %vm2302_vm11  ;;  %vm2372_vm14 = vcmp.eq.f32.partialorder %v2360_v30, 0.0 }
 0x9bf   : > { %2329 = vrot.lane.b32.xlu0 %v2309_v32, %s12572_s1  ;;  %v8943_v24 = vsel %vm2304_vm12, 1.0, %v12580_v1  ;;  %9545 = vmatmul.mubr.msk.f32.vlgmr.msra.gmra.mxu1 %vm1446_vm2, %v2028_v33 }
 0x9c0   : > { %v10303_v37 = vpack.i.bf16 %v8943_v24, %v8942_v20  ;;  %9559 = vmatpush3.msra.mxu1 %v2392_v17  ;;  %v2310_v42 = vsub.f32 1.0, %v8943_v24  ;;  %v2489_v17 = vld [vmem:[%s10767_s30 + $0x30] sm:$0xff] }
 0x9c1   : > { %9560 = vmatprep.subr.mxu1 %v2391_v36 }
 0x9c2   : > { %10304 = vrot.lane.b32.xlu1 %v10303_v37, %s12570_s11  ;;  %9561 = vmatpush3.msra.mxu1 %v2391_v36 }
 0x9c3   : > { %2106 = vrot.lane.b32.xlu0 %v11055_v56, %s12568_s28  ;;  %9562 = vmatprep.subr.mxu1 %v2390_v38  ;;  %v2373_v56 = vand.u32 2147483648, %v2360_v30  ;;  %s12684_s28 = sshll.u32 %s10970_s23, 4  ;;  %s12687_s23 = sld [smem:[#allocation21_spill]] }
 0x9c4   : > { %9563 = vmatpush3.msra.mxu1 %v2390_v38 }
 0x9c5   : > { %9564 = vmatprep.subr.mxu1 %v2389_v39 }
 0x9c6   : > { %2331 = vrot.lane.b32.xlu1 %v2310_v42, %s12572_s1  ;;  %9565 = vmatpush3.msra.mxu1 %v2389_v39  ;;  %v8944_v39 = vld [vmem:[%s12683_s24] ss:$0 sm:$0xff]  ;;  %s12706_s24 = smov 64  }
 0x9c7   : > { %9569 = vmatprep.subr.mxu1 %v2498_v48 }
 0x9ca   : > { %v10341_v43 = vpop.eup %10340  ;;  %2110 = vrot.lane.b32.xlu1 %v11080_v14, %s12570_s11  ;;  %v2124_v14 = vld [vmem:[%s12668_s3 + $0x10] sm:$0xff]  ;;  %s11189_s11 = scalar_lea.vmem %s12682_s13, %s12684_s28  ;;  %s12688_s28 = smov 16  }
 0x9cb   : > { %v2369_v44 = vmul.f32 %v10341_v43, %v2360_v30  ;;  %9550 = vmatpush3.xpose.msk.msra.mxu0 %vm1257_vm0, %v2124_v14  ;;  %v2581_v38 = vld [vmem:[%s11189_s11] sm:$0xff]  ;;  %s12690_s3 = sld [smem:[#allocation23_spill]] }
 0x9cc   : > { %9551 = vmatprep.subr.mxu0 %v12580_v1  ;;  %v11208_v14 = vld [vmem:[%s12665_s4] sm:$0x7] }
 0x9cd   : > { %v2371_v45 = vsel %vm2370_vm13, %v2360_v30, %v2369_v44  ;;  %v2728_v30 = vld [vmem:[%s12681_s20] sm:$0x3f]  ;;  %s12705_s20 = smov 24  }
 0x9ce   : > { %v11140_v46 = vsel %vm2372_vm14, %v2373_v56, %v2371_v45 }
 0x9cf   : > { %v2380_v47 = vsub.f32 %v11140_v46, %v11116_v5  ;;  %9552 = vmatpush3.xpose.msk.msra.mxu0 %vm1257_vm0, %v2123_v50  ;;  %v11211_v50 = vrot.slane %v11208_v14, 1  ;;  %v2597_v46 = vld [vmem:[%s12687_s23 + $0x70] sm:$0xff] }
 0x9d0   : > { %9553 = vmatprep.subr.mxu0 %v12580_v1 }
 0x9d1   : > { %10166 = vpush %v11211_v50 }
 0x9d2   : > { %10168 = vpush %v11208_v14 }
 0x9d3   : > { %9554 = vmatpush3.xpose.msk.msra.mxu0 %vm1257_vm0, %v2122_v51 }
 0xa02   : > { %s10167_s8 = spop %10166 }
 0xa03   : > { %s10169_s13 = spop %10168 }
 0xa2d   : > { %v2316_v53 = vpop.permute.xlu0 %2315 }
 0xa2e   : > { %v2336_v60 = vsel %vm1446_vm2, %v11112_v58, %v2316_v53  ;;  %v2495_v58 = vld [vmem:[%s10767_s30 + $0x60] sm:$0xff] }
 0xa31   : > { %v2330_v61 = vpop.permute.xlu0 %2329 }
 0xa34   : > { %v10305_v54 = vpop.permute.xlu1 %10304 }
 0xa35   : > { %v10307_v55 = vunpack.i.h.bf16 %v10305_v54  ;;  %v10306_v57 = vunpack.i.l.bf16 %v10305_v54  ;;  %v2107_v31 = vpop.permute.xlu0 %2106 }
 0xa36   : > { %v2117_v33 = vsel %vm1446_vm2, %v11039_v40, %v2107_v31 }
 0xa37   : > { %v2338_v62 = vsel %vm2118_vm15, %v2336_v60, %v10307_v55  ;;  %v2337_v63 = vsel %vm2118_vm15, %v2335_v59, %v10306_v57  ;;  %v2381_v59 = vmax.f32 %v2379_v10, 0.0 }
 0xa38   : > { %v2332_v0 = vpop.permute.xlu1 %2331  ;;  %v2339_v2 = vsel %vm2120_vm3, %v2337_v63, %v2330_v61 }
 0xa39   : > { %v2340_v3 = vsel %vm2120_vm3, %v2338_v62, %v2332_v0  ;;  %9566 = vmatprep.mubr.msk.f32.mxu1 %vm1257_vm0, %v2339_v2  ;;  %v2383_v61 = vmul.f32 -0.1, %v2381_v59  ;;  %v2382_v62 = vmax.f32 %v2380_v47, 0.0  ;;  %v2596_v47 = vld [vmem:[%s12687_s23 + $0x68] sm:$0xff] }
 0xa3a   : > { %9567 = vmatmul.mubr.msk.f32.vlgmr.msra.gmra.mxu1 %vm1257_vm0, %v2340_v3 }
 0xa3b   : > { %9570 = vmatpush3.msra.mxu1 %v2498_v48  ;;  %v11199_v48 = vld [vmem:[%s11189_s11 + $0x8] sm:$0xff]  ;;  %v2385_v2 = vmul.f32 1.442695, %v2383_v61 }
 0xa3c   : > { %9571 = vmatprep.subr.mxu1 %v2497_v4  ;;  %v2111_v32 = vpop.permute.xlu1 %2110 }
 0xa3d   : > { %9572 = vmatpush3.msra.mxu1 %v2497_v4  ;;  %v2119_v24 = vsel %vm2118_vm15, %v2117_v33, %v2111_v32  ;;  %10342 = vpow2.f32 %v2385_v2  ;;  %v2594_v4 = vld [vmem:[%s12687_s23 + $0x58] sm:$0xff]  ;;  %v2584_v2 = vld [vmem:[%s12687_s23 + $0x8] sm:$0xff] }
 0xa3e   : > { %9573 = vmatprep.subr.mxu1 %v2496_v34 }
 0xa3f   : > { %9574 = vmatpush3.msra.mxu1 %v2496_v34  ;;  %v2593_v34 = vld [vmem:[%s12687_s23 + $0x50] sm:$0xff] }
 0xa40   : > { %9575 = vmatprep.subr.mxu1 %v2495_v58 }
 0xa41   : > { %9576 = vmatpush3.msra.mxu1 %v2495_v58 }
 0xa42   : > { %9577 = vmatprep.subr.mxu1 %v2494_v6 }
 0xa43   : > { %9578 = vmatpush3.msra.mxu1 %v2494_v6  ;;  %v2592_v6 = vld [vmem:[%s12687_s23 + $0x48] sm:$0xff] }
 0xa44   : > { %9579 = vmatprep.subr.mxu1 %v2493_v7 }
 0xa45   : > { %9580 = vmatpush3.msra.mxu1 %v2493_v7 }
 0xa46   : > { %9581 = vmatprep.subr.mxu1 %v2492_v12 }
 0xa47   : > { %9582 = vmatpush3.msra.mxu1 %v2492_v12 }
 0xa48   : > { %9583 = vmatprep.subr.mxu1 %v2491_v15 }
 0xa49   : > { %9584 = vmatpush3.msra.mxu1 %v2491_v15 }
 0xa4a   : > { %9585 = vmatprep.subr.mxu1 %v2490_v16  ;;  %v11233_v5 = vpop.eup %10342 }
 0xa4b   : > { %9586 = vmatpush3.msra.mxu1 %v2490_v16  ;;  %v3060_v16 = vstv %s10167_s8  ;;  %s12691_s8 = smov 120  }
 0xa4c   : > { %9587 = vmatprep.subr.mxu1 %v2489_v17 }
 0xa4d   : > { %9588 = vmatpush3.msra.mxu1 %v2489_v17 }
 0xa4e   : > { %9589 = vmatprep.subr.mxu1 %v2488_v18 }
 0xa4f   : > { %9590 = vmatpush3.msra.mxu1 %v2488_v18 }
 0xa50   : > { %9591 = vmatprep.subr.mxu1 %v2487_v19 }
 0xa51   : > { %9592 = vmatpush3.msra.mxu1 %v2487_v19  ;;  %v2591_v19 = vld [vmem:[%s12687_s23 + $0x40] sm:$0xff] }
 0xa52   : > { %9593 = vmatprep.subr.mxu1 %v2486_v21 }
 0xa53   : > { %9594 = vmatpush3.msra.mxu1 %v2486_v21  ;;  %v2590_v21 = vld [vmem:[%s12687_s23 + $0x38] sm:$0xff] }
 0xa54   : > { %9595 = vmatprep.subr.mxu1 %v2485_v22 }
 0xa55   : > { %9596 = vmatpush3.msra.mxu1 %v2485_v22  ;;  %v2814_v22 = vld [vmem:[%s12690_s3 + $0x38] sm:$0xff] }
 0xa56   : > { %9597 = vmatprep.subr.mxu1 %v2484_v25 }
 0xa57   : > { %9598 = vmatpush3.msra.mxu1 %v2484_v25 }
 0xa58   : > { %9599 = vmatprep.subr.mxu1 %v2483_v27 }
 0xa59   : > { %9600 = vmatpush3.msra.mxu1 %v2483_v27 }
 0xa5a   : > { %9639 = vmatprep.subr.msk.mxu1 %vm1257_vm0, %v2728_v30 }
 0xa7f   : > { %v2101_v20 = vpop.f32.mrf.mxu1 }
 0xa80   : > { %2114 = vrot.lane.b32.xlu0 %v2101_v20, %s12572_s1  ;;  %s12689_s1 = sld [smem:[#allocation20_spill]] }
 0xa81   : > { %v9546_v28 = vpop.f32.mrf.mxu1 }
 0xa86   : > { %v8947_v58 = vld [vmem:[%s12689_s1] ss:$0 sm:$0xff]  ;;  %s12692_s1 = sld [smem:[#allocation26_spill]] }
 0xaf2   : > { %v2115_v36 = vpop.permute.xlu0 %2114 }
 0xaf3   : > { %v2121_v37 = vsel %vm2120_vm3, %v2119_v24, %v2115_v36  ;;  %v2589_v24 = vld [vmem:[%s12687_s23 + $0x30] sm:$0xff] }
 0xaf4   : > { %9556 = vmatmul.mubr.msk.f32.vlgmr.msra.gmra.mxu0 %vm1257_vm0, %v2121_v37 }
 0xaf5   : > { %9636 = vmatprep.mubr.msk.f32.mxu0 %vm1257_vm0, %v2581_v38 }
 0xafa   : > { %v9568_v42 = vpop.f32.mrf.mxu1 }
 0xafb   : > { %v2478_v43 = vadd.f32 %v9568_v42, %v8944_v39 }
 0xafc   : > { %v2472_v40 = vpop.f32.mrf.mxu1 }
 0xafd   : > { %v2473_v44 = vadd.f32 %v8944_v39, %v2472_v40  ;;  %v2482_v45 = vmax.f32 %v2478_v43, 0.0 }
 0xaff   : > { %v2481_v56 = vmax.f32 %v2473_v44, 0.0  ;;  %v2588_v44 = vld [vmem:[%s12687_s23 + $0x28] sm:$0xff] }
 0xb01   : > { %9601 = vmatprep.mubr.f32.mxu1 %v2481_v56 }
 0xb02   : > { %9602 = vmatmul.mubr.f32.vlgmr.msra.gmra.mxu1 %v2482_v45 }
 0xb03   : > { %9640 = vmatpush3.xpose.msk.msra.mxu1 %vm1257_vm0, %v2728_v30  ;;  %9641 = vmatprep.mubr.msk.f32.mxu1 %vm1257_vm0, %v2581_v38  ;;  %v2813_v30 = vld [vmem:[%s12690_s3 + $0x30] sm:$0xff] }
 0xb04   : > { %9644 = vmatprep.subr.mxu1 %v12580_v1 }
 0xb06   : > { %9642 = vmatmul.mubr.msk.f32.vlgmr.msra.gmra.mxu1 %vm1257_vm0, %v11199_v48 }
 0xb07   : > { %9660 = vmatprep.mubr.msk.f32.mxu1 %vm10671_vm1, %v12580_v1  ;;  %9645 = vmatpush3.xpose.msk.msra.mxu1 %vm1257_vm0, %v2814_v22 }
 0xb08   : > { %9646 = vmatprep.subr.mxu1 %v12580_v1 }
 0xb0b   : > { %9647 = vmatpush3.xpose.msk.msra.mxu1 %vm1257_vm0, %v2813_v30 }
 0xb0c   : > { %9648 = vmatprep.subr.mxu1 %v12580_v1 }
 0xbb4   : > { %v2207_v51 = vpop.f32.mrf.mxu0 }
 0xbb5   : > { %v2211_v53 = vadd.f32 %v2207_v51, %v10982_v9  ;;  %v2384_v9 = vmul.f32 -0.1, %v2382_v62  ;;  %v2585_v62 = vld [vmem:[%s12687_s23 + $0x10] sm:$0xff] }
 0xbb6   : > { %v9557_v54 = vpop.f32.mrf.mxu0 }
 0xbb7   : > { %v2219_v55 = vadd.f32 %v8939_v52, %v2211_v53  ;;  %v2387_v8 = vmul.f32 1.442695, %v2384_v9  ;;  %v2812_v52 = vld [vmem:[%s12690_s3 + $0x28] sm:$0xff]  ;;  %v2587_v53 = vld [vmem:[%s12687_s23 + $0x20] sm:$0xff] }
 0xbb8   : > { %9649 = vmatpush3.xpose.msk.msra.mxu1 %vm1257_vm0, %v2812_v52  ;;  %v2811_v54 = vld [vmem:[%s12690_s3 + $0x20] sm:$0xff]  ;;  %v11375_v52 = vld [vmem:[%s12693_s9 + $0x8] sm:$0xff] }
 0xbb9   : > { %v2222_v57 = vsel %vm1257_vm0, %v2219_v55, 0.0  ;;  %10344 = vpow2.f32 %v2387_v8  ;;  %9650 = vmatprep.subr.mxu1 %v12580_v1  ;;  %v2808_v8 = vld [vmem:[%s12690_s3 + $0x8] sm:$0xff] }
 0xbba   : > { %2223 = vadd.xlane.f32.xlu1 %v2222_v57 }
 0xbbc   : > { %9651 = vmatpush3.xpose.msk.msra.mxu1 %vm1257_vm0, %v2811_v54 }
 0xbbd   : > { %9652 = vmatprep.subr.mxu1 %v12580_v1 }
 0xbc2   : > { %v9603_v60 = vpop.f32.mrf.mxu1 }
 0xbc3   : > { %v11270_v25 = vadd.f32 %v9603_v60, %v8947_v58  ;;  %v2810_v60 = vld [vmem:[%s12690_s3 + $0x18] sm:$0xff] }
 0xbc4   : > { %v2572_v63 = vpop.f32.mrf.mxu1  ;;  %9653 = vmatpush3.xpose.msk.msra.mxu1 %vm1257_vm0, %v2810_v60  ;;  %v11406_v60 = vrot.slane %v11208_v14, 2 }
 0xbc5   : > { %v11262_v7 = vadd.f32 %v8947_v58, %v2572_v63  ;;  %9654 = vmatprep.subr.mxu1 %v12580_v1  ;;  %v2809_v63 = vld [vmem:[%s12690_s3 + $0x10] sm:$0xff] }
 0xbc6   : > { %v11224_v0 = vpop.f32.mrf.mxu1  ;;  %v11238_v10 = vpop.eup %10344  ;;  %12699 = vst [vmem:[#allocation51_spill] sm:$0xff] %v11406_v60  ;;  %10170 = vpush %v11406_v60 }
 0xbc7   : > { %12686 = vst [vmem:[#allocation47_spill] sm:$0xff] %v11224_v0 }
 0xbc8   : > { %v11226_v3 = vpop.f32.mrf.mxu1  ;;  %9655 = vmatpush3.xpose.msk.msra.mxu1 %vm1257_vm0, %v2809_v63 }
 0xbc9   : > { %3048 = vperm.xlu0 %10308, %v11226_v3   ;;  %9656 = vmatprep.subr.mxu1 %v12580_v1 }
 0xbcc   : > { %9657 = vmatpush3.xpose.msk.msra.mxu1 %vm1257_vm0, %v2808_v8 }
 0xbcd   : > { %3052 = vperm.xlu0 %10308, %v11224_v0   ;;  %9658 = vmatprep.subr.mxu1 %v12580_v1 }
 0xbd1   : > { %10309 = vset.pattern.permute.xlu0 %v10680_v11  ;;  %v2598_v11 = vld [vmem:[%s12687_s23 + $0x78] sm:$0xff] }
 0xbd2   : > { %2925 = vperm.xlu0 %10309, %v11226_v3   ;;  %9604 = vmatprep.subr.msk.mxu0 %vm1257_vm0, %v2598_v11 }
 0xbd3   : > { %9605 = vmatpush3.xpose.msk.msra.mxu0 %vm1257_vm0, %v2598_v11  ;;  %v2583_v11 = vld [vmem:[%s12687_s23] sm:$0xff] }
 0xbd4   : > { %9606 = vmatprep.subr.msk.mxu0 %vm1257_vm0, %v2597_v46 }
 0xbd6   : > { %2929 = vperm.xlu0 %10309, %v11224_v0  }
 0xbd7   : > { %9607 = vmatpush3.xpose.msk.msra.mxu0 %vm1257_vm0, %v2597_v46  ;;  %v2807_v46 = vld [vmem:[%s12690_s3] sm:$0xff]  ;;  %s12694_s3 = smov 112  }
 0xbd8   : > { %9608 = vmatprep.subr.msk.mxu0 %vm1257_vm0, %v2596_v47  ;;  %9659 = vmatpush3.xpose.msk.msra.mxu1 %vm1257_vm0, %v2807_v46 }
 0xbda   : > { %3084 = vrot.lane.b32.xlu0 %v11233_v5, %s12688_s28 }
 0xbdb   : > { %10310 = vset.pattern.permute.xlu0 %v10681_v13  ;;  %v2595_v13 = vld [vmem:[%s12687_s23 + $0x60] sm:$0xff]  ;;  %9609 = vmatpush3.xpose.msk.msra.mxu0 %vm1257_vm0, %v2596_v47 }
 0xbdc   : > { %9610 = vmatprep.subr.msk.mxu0 %vm1257_vm0, %v2595_v13 }
 0xbde   : > { %3086 = vrot.lane.b32.xlu0 %v11238_v10, %s12688_s28 }
 0xbdf   : > { %9611 = vmatpush3.xpose.msk.msra.mxu0 %vm1257_vm0, %v2595_v13 }
 0xbe0   : > { %9612 = vmatprep.subr.msk.mxu0 %vm1257_vm0, %v2594_v4 }
 0xbe3   : > { %9613 = vmatpush3.xpose.msk.msra.mxu0 %vm1257_vm0, %v2594_v4 }
 0xbe4   : > { %9614 = vmatprep.subr.msk.mxu0 %vm1257_vm0, %v2593_v34 }
 0xbe7   : > { %9615 = vmatpush3.xpose.msk.msra.mxu0 %vm1257_vm0, %v2593_v34 }
 0xbe8   : > { %9616 = vmatprep.subr.msk.mxu0 %vm1257_vm0, %v2592_v6 }
 0xbeb   : > { %9617 = vmatpush3.xpose.msk.msra.mxu0 %vm1257_vm0, %v2592_v6  ;;  %v11346_v6 = vld [vmem:[%s12692_s1] sm:$0xff] }
 0xbec   : > { %9618 = vmatprep.subr.msk.mxu0 %vm1257_vm0, %v2591_v19  ;;  %9663 = vmatprep.subr.mxu1 %v11346_v6 }
 0xbef   : > { %9619 = vmatpush3.xpose.msk.msra.mxu0 %vm1257_vm0, %v2591_v19 }
 0xbf0   : > { %9620 = vmatprep.subr.msk.mxu0 %vm1257_vm0, %v2590_v21 }
 0xbf3   : > { %9621 = vmatpush3.xpose.msk.msra.mxu0 %vm1257_vm0, %v2590_v21 }
 0xbf4   : > { %9622 = vmatprep.subr.msk.mxu0 %vm1257_vm0, %v2589_v24 }
 0xbf7   : > { %9623 = vmatpush3.xpose.msk.msra.mxu0 %vm1257_vm0, %v2589_v24  ;;  %s11487_s21 = spop %10170 }
 0xbf8   : > { %9624 = vmatprep.subr.msk.mxu0 %vm1257_vm0, %v2588_v44 }
 0xbfb   : > { %9625 = vmatpush3.xpose.msk.msra.mxu0 %vm1257_vm0, %v2588_v44  ;;  %v8941_v44 = vld [vmem:[%s12695_s17 + $0x1] ss:$0 sm:$0xff] }
 0xbfc   : > { %9626 = vmatprep.subr.msk.mxu0 %vm1257_vm0, %v2587_v53 }
 0xbff   : > { %9627 = vmatpush3.xpose.msk.msra.mxu0 %vm1257_vm0, %v2587_v53 }
 0xc43   : > { %v2224_v12 = vpop.xlane.xlu1 %2223 }
 0xc44   : > { %v3049_v15 = vpop.permute.xlu0 %3048  ;;  %v2226_v17 = vmul.f32 0.03125, %v2224_v12  ;;  %v11349_v12 = vld [vmem:[%s12693_s9] sm:$0xff] }
 0xc45   : > { %v3055_v18 = vadd.f32 %v3049_v15, %v11262_v7 }
 0xc46   : > { %v11272_v27 = vsub.f32 %v2219_v55, %v2226_v17  ;;  %v2586_v55 = vld [vmem:[%s12687_s23 + $0x18] sm:$0xff] }
 0xc47   : > { %v11274_v20 = vadd.f32 %v3060_v16, %v3055_v18  ;;  %9628 = vmatprep.subr.msk.mxu0 %vm1257_vm0, %v2586_v55 }
 0xc48   : > { %v3053_v28 = vpop.permute.xlu0 %3052  ;;  %v2228_v33 = vmul.f32 %v11272_v27, %v11272_v27  ;;  %9629 = vmatpush3.xpose.msk.msra.mxu0 %vm1257_vm0, %v2586_v55  ;;  %v12582_v55 = vmov 1.0  }
 0xc49   : > { %v3066_v31 = vand.u32 2147483647, %v11274_v20  ;;  %v3056_v32 = vadd.f32 %v3053_v28, %v11270_v25  ;;  %9630 = vmatprep.subr.msk.mxu0 %vm1257_vm0, %v2585_v62  ;;  %v3064_v13 = vmax.f32 %v11274_v20, 0.0 }
 0xc4a   : > { %v2229_v38 = vsel %vm1257_vm0, %v2228_v33, 0.0 }
 0xc4b   : > { %v3068_v36 = vsub.f32 0.0, %v3066_v31  ;;  %v11287_v37 = vadd.f32 %v3060_v16, %v3056_v32  ;;  %2230 = vadd.xlane.f32.xlu0 %v2229_v38  ;;  %v3093_v16 = vstv %s10169_s13  ;;  %s12700_s13 = sld [smem:[#allocation27_spill]] }
 0xc4c   : > { %9631 = vmatpush3.xpose.msk.msra.mxu0 %vm1257_vm0, %v2585_v62 }
 0xc4d   : > { %v3070_v39 = vmul.f32 1.442695, %v3068_v36  ;;  %v3067_v42 = vand.u32 2147483647, %v11287_v37  ;;  %v2926_v43 = vpop.permute.xlu0 %2925  ;;  %9632 = vmatprep.subr.msk.mxu0 %vm1257_vm0, %v2584_v2  ;;  %v3065_v18 = vmax.f32 %v11287_v37, 0.0 }
 0xc4e   : > { %v11296_v40 = vadd.f32 %v2926_v43, %v11262_v7 }
 0xc4f   : > { %10346 = vpow2.f32 %v3070_v39  ;;  %v3069_v56 = vsub.f32 0.0, %v3067_v42  ;;  %v8940_v42 = vld [vmem:[%s12695_s17] ss:$0 sm:$0xff]  ;;  %s12578_s17 = smov 127  }
 0xc50   : > { %2964 = vrot.lane.b32.xlu1 %v11296_v40, %s12691_s8  ;;  %9633 = vmatpush3.xpose.msk.msra.mxu0 %vm1257_vm0, %v2584_v2 }
 0xc51   : > { %v3072_v45 = vmul.f32 1.442695, %v3069_v56  ;;  %v2930_v49 = vpop.permute.xlu0 %2929  ;;  %9634 = vmatprep.subr.msk.mxu0 %vm1257_vm0, %v2583_v11 }
 0xc52   : > { %v11304_v51 = vadd.f32 %v2930_v49, %v11270_v25 }
 0xc53   : > { %10348 = vpow2.f32 %v3072_v45 }
 0xc54   : > { %2966 = vrot.lane.b32.xlu1 %v11304_v51, %s12691_s8  ;;  %9635 = vmatpush3.xpose.msk.msra.mxu0 %vm1257_vm0, %v2583_v11 }
 0xc55   : > { %v3085_v34 = vpop.permute.xlu0 %3084 }
 0xc57   : > { %9637 = vmatmul.mubr.msk.f32.vlgmr.msra.gmra.mxu0 %vm1257_vm0, %v11199_v48 }
 0xc58   : > { %9672 = vmatprep.mubr.msk.f32.mxu0 %vm2118_vm15, %v11349_v12 }
 0xc59   : > { %v3087_v48 = vpop.permute.xlu0 %3086 }
 0xc5c   : > { %v10347_v57 = vpop.eup %10346 }
 0xc5d   : > { %v3074_v59 = vadd.f32 1.0, %v10347_v57 }
 0xc5f   : > { %10350 = vlog2.f32 %v3074_v59 }
 0xc60   : > { %v10349_v61 = vpop.eup %10348 }
 0xc61   : > { %v3075_v9 = vadd.f32 1.0, %v10349_v61  ;;  %2914 = vperm.xlu0 %10310, %v11226_v3  }
 0xc63   : > { %10352 = vlog2.f32 %v3075_v9  ;;  %v11424_v9 = vsub.s32 7, %v11091_v23 }
 0xc6c   : > { %v10351_v47 = vpop.eup %10350 }
 0xc6d   : > { %v3077_v4 = vmul.f32 0.6931472, %v10351_v47  ;;  %v11429_v47 = vld [vmem:[%s12700_s13 + $0x8] sm:$0xff] }
 0xc6e   : > { %v11439_v23 = vsub.f32 1.0, %v11429_v47 }
 0xc6f   : > { %v3080_v58 = vadd.f32 %v3077_v4, %v3064_v13 }
 0xc70   : > { %v10353_v15 = vpop.eup %10352 }
 0xc71   : > { %v3090_v17 = vmul.f32 %v3085_v34, %v3080_v58  ;;  %v3079_v19 = vmul.f32 0.6931472, %v10353_v15  ;;  %v11435_v58 = vld [vmem:[%s12700_s13] sm:$0xff] }
 0xc73   : > { %v3081_v21 = vadd.f32 %v3079_v19, %v3065_v18  ;;  %v3095_v22 = vmul.f32 %v3093_v16, %v3090_v17 }
 0xc75   : > { %v3091_v20 = vmul.f32 %v3087_v48, %v3081_v21  ;;  %3109 = vrot.lane.b32.xlu1 %v3095_v22, %s12694_s3  ;;  %v11447_v21 = vld [vmem:[%s12703_s19 + $0x8] sm:$0xff]  ;;  %v11450_v48 = vsub.f32 1.0, %v11435_v58 }
 0xc77   : > { %v3096_v28 = vmul.f32 %v3093_v16, %v3091_v20 }
 0xc79   : > { %3111 = vrot.lane.b32.xlu1 %v3096_v28, %s12694_s3 }
 0xc7d   : > { %2919 = vperm.xlu1 %10301, %v11224_v0  }
 0xcc2   : > { %v2965_v33 = vpop.permute.xlu1 %2964 }
 0xcc6   : > { %v2967_v37 = vpop.permute.xlu1 %2966 }
 0xcd4   : > { %v2231_v30 = vpop.xlane.xlu0 %2230 }
 0xcd5   : > { %v2232_v31 = vmul.f32 0.03125, %v2231_v30 }
 0xcd7   : > { %v2233_v32 = vadd.f32 1e-05, %v2232_v31  ;;  %v11457_v31 = vld [vmem:[%s12703_s19] sm:$0xff] }
 0xcd9   : > { %10354 = vrsqrt.f32 %v2233_v32 }
 0xcdc   : > { %v2915_v24 = vpop.permute.xlu0 %2914 }
 0xcdd   : > { %v11359_v36 = vadd.f32 %v2915_v24, %v11262_v7 }
 0xcdf   : > { %12696 = vst [vmem:[#allocation48_spill] sm:$0xff] %v11359_v36  ;;  %3099 = vrot.lane.b32.xlu1 %v11359_v36, %s12688_s28 }
 0xce6   : > { %v10355_v38 = vpop.eup %10354 }
 0xce7   : > { %v11363_v39 = vpop.permute.xlu1 %3109  ;;  %v2235_v43 = vmul.f32 %v10355_v38, %v11272_v27  ;;  %v10686_v27 = vmov 3  }
 0xce8   : > { %10311 = vset.pattern.permute.xlu1 %v10686_v27 }
 0xce9   : > { %v2240_v56 = vmul.f32 %v8940_v42, %v2235_v43 }
 0xceb   : > { %v11368_v45 = vpop.permute.xlu1 %3111  ;;  %v11371_v49 = vadd.f32 %v8941_v44, %v2240_v56 }
 0xcec   : > { %9668 = vmatprep.subr.mxu0 %v11368_v45 }
 0xced   : > { %12697 = vst [vmem:[#allocation49_spill] sm:$0xff] %v11371_v49  ;;  %9669 = vmatpush3.msra.mxu0 %v11368_v45  ;;  %9661 = vmatmul.mubr.msk.f32.vlgmr.msra.gmra.mxu1 %vm1257_vm0, %v11371_v49 }
 0xcee   : > { %9670 = vmatprep.subr.mxu0 %v11363_v39  ;;  %9665 = vmatprep.mubr.msk.f32.mxu1 %vm1446_vm2, %v2965_v33 }
 0xcef   : > { %9671 = vmatpush3.msra.mxu0 %v11363_v39  ;;  %9664 = vmatpush3.msra.mxu1 %v11346_v6 }
 0xcf0   : > { %9673 = vmatmul.mubr.msk.f32.vlgmr.msra.gmra.mxu0 %vm2118_vm15, %v11375_v52  ;;  %9675 = vmatprep.subr.mxu1 %v11346_v6 }
 0xcf1   : > { %9680 = vmatprep.subr.mxu0 %v11346_v6  ;;  %9666 = vmatmul.mubr.msk.f32.vlgmr.msra.gmra.mxu1 %vm1446_vm2, %v2967_v37 }
 0xcf2   : > { %9681 = vmatpush3.msra.mxu0 %v11346_v6  ;;  %9677 = vmatprep.mubr.msk.f32.mxu1 %vm1446_vm2, %v11363_v39 }
 0xcf3   : > { %9676 = vmatpush3.msra.mxu1 %v11346_v6 }
 0xcf5   : > { %9678 = vmatmul.mubr.msk.f32.vlgmr.msra.gmra.mxu1 %vm1446_vm2, %v11368_v45 }
 0xcf6   : > { %9689 = vmatprep.mubr.msk.f32.mxu1 %vm2118_vm15, %v12582_v55 }
 0xcf8   : > { %v2920_v53 = vpop.permute.xlu1 %2919 }
 0xcf9   : > { %v11395_v54 = vadd.f32 %v2920_v53, %v11270_v25 }
 0xcfb   : > { %12698 = vst [vmem:[#allocation50_spill] sm:$0xff] %v11395_v54  ;;  %3101 = vrot.lane.b32.xlu1 %v11395_v54, %s12688_s28 }
 0xd17   : > { %v11419_v63 = vpop.f32.mrf.mxu0 }
 0xd18   : > { %12701 = vst [vmem:[#allocation52_spill] sm:$0xff] %v11419_v63 }
 0xd19   : > { %v11421_v2 = vpop.f32.mrf.mxu0 }
 0xd1a   : > { %12702 = vst [vmem:[#allocation53_spill] sm:$0xff] %v11421_v2 }
 0xd51   : > { %v3100_v57 = vpop.permute.xlu1 %3099 }
 0xd52   : > { %v11401_v59 = vmul.f32 %v3100_v57, %v3090_v17 }
 0xd54   : > { %3519 = vrot.lane.b32.xlu1 %v11401_v59, %s12694_s3 }
 0xd6d   : > { %v3102_v61 = vpop.permute.xlu1 %3101 }
 0xd6e   : > { %v11409_v62 = vmul.f32 %v3102_v61, %v3091_v20 }
 0xd70   : > { %3521 = vrot.lane.b32.xlu1 %v11409_v62, %s12694_s3 }
 0xd74   : > { %4256 = vrot.lane.b32.xlu1 %v11211_v50, %s12578_s17 }
 0xd78   : > { %4251 = vperm.xlu1 %10311, %v11224_v0  }
 0xd7c   : > { %4289 = vrot.lane.b32.xlu1 %v11208_v14, %s12578_s17  ;;  %s12704_s17 = smov 8  }
 0xd80   : > { %4247 = vperm.xlu1 %10311, %v11226_v3  }
 0xdad   : > { %v11426_v8 = vpop.f32.mrf.mxu1 }
 0xdaf   : > { %v9662_v11 = vpop.f32.mrf.mxu1 }
 0xdb0   : > { %v9674_v46 = vpop.f32.mrf.mxu0 }
 0xdb1   : > { %v3791_v13 = vrot.slane %v9674_v46, %v11424_v9  ;;  %v11432_v4 = vpop.f32.mrf.mxu1  ;;  %v3197_v15 = vsub.f32 %v9674_v46, %v11368_v45  ;;  %v3786_v53 = vmul.f32 1.442695, %v9674_v46 }
 0xdb2   : > { %v3187_v34 = vpop.f32.mrf.mxu0 }
 0xdb3   : > { %9682 = vmatprep.mubr.msk.f32.mxu0 %vm1446_vm2, %v3187_v34  ;;  %v3196_v16 = vsub.f32 %v3187_v34, %v11363_v39  ;;  %v3784_v17 = vmul.f32 1.442695, %v3187_v34  ;;  %v3812_v18 = vsub.f32 %v3791_v13, %v3187_v34  ;;  %v11443_v19 = vpop.f32.mrf.mxu1  ;;  %v3813_v22 = vsub.f32 %v3791_v13, %v9674_v46 }
 0xdb4   : > { %9683 = vmatmul.mubr.msk.f32.vlgmr.msra.gmra.mxu0 %vm1446_vm2, %v9674_v46  ;;  %v3793_v37 = vsub.f32 %v3791_v13, %v3197_v15  ;;  %v3820_v27 = vmul.f32 1.442695, %v3197_v15 }
 0xdb5   : > { %9696 = vmatprep.mubr.msk.f32.mxu0 %vm2118_vm15, %v12582_v55  ;;  %v3792_v20 = vsub.f32 %v3791_v13, %v3196_v16  ;;  %v3814_v28 = vmul.f32 1.442695, %v3812_v18  ;;  %v11454_v30 = vpop.f32.mrf.mxu1  ;;  %v3818_v32 = vmul.f32 1.442695, %v3196_v16  ;;  %10356 = vpow2.f32 %v3784_v17 }
 0xdb6   : > { %v3361_v33 = vmul.f32 %v11454_v30, %v11447_v21  ;;  %v3441_v24 = vmul.f32 %v11454_v30, %v11439_v23  ;;  %v3816_v43 = vmul.f32 1.442695, %v3813_v22  ;;  %v3796_v57 = vmul.f32 1.442695, %v3793_v37 }
 0xdb7   : > { %v3794_v38 = vmul.f32 1.442695, %v3792_v20  ;;  %v11463_v42 = vpop.f32.mrf.mxu1  ;;  %10358 = vpow2.f32 %v3814_v28 }
 0xdb8   : > { %v3360_v44 = vmul.f32 %v11463_v42, %v11457_v31  ;;  %v3440_v56 = vmul.f32 %v11463_v42, %v11450_v48  ;;  %9685 = vmatprep.subr.mxu1 %v3361_v33  ;;  %9692 = vmatprep.subr.mxu0 %v3441_v24 }
 0xdb9   : > { %10360 = vpow2.f32 %v3794_v38  ;;  %9686 = vmatpush3.msra.mxu1 %v3361_v33  ;;  %9693 = vmatpush3.msra.mxu0 %v3441_v24 }
 0xdba   : > { %10362 = vpow2.f32 %v3818_v32  ;;  %9687 = vmatprep.subr.mxu1 %v3360_v44  ;;  %9694 = vmatprep.subr.mxu0 %v3440_v56 }
 0xdbb   : > { %9688 = vmatpush3.msra.mxu1 %v3360_v44  ;;  %9695 = vmatpush3.msra.mxu0 %v3440_v56  ;;  %10364 = vpow2.f32 %v3816_v43 }
 0xdbc   : > { %9690 = vmatmul.mubr.msk.f32.vlgmr.msra.gmra.mxu1 %vm2118_vm15, %v12582_v55  ;;  %9697 = vmatmul.mubr.msk.f32.vlgmr.msra.gmra.mxu0 %vm2118_vm15, %v12582_v55  ;;  %10366 = vpow2.f32 %v3820_v27 }
 0xdbd   : > { %9699 = vmatprep.subr.mxu1 %v11346_v6  ;;  %9708 = vmatprep.mubr.msk.f32.mxu0 %vm2118_vm15, %v12582_v55  ;;  %10368 = vpow2.f32 %v3786_v53 }
 0xdbe   : > { %9700 = vmatpush3.msra.mxu1 %v11346_v6  ;;  %10370 = vpow2.f32 %v3796_v57 }
 0xdc2   : > { %v10357_v61 = vpop.eup %10356 }
 0xdc4   : > { %v10359_v11 = vpop.eup %10358 }
 0xdc6   : > { %v10361_v46 = vpop.eup %10360  ;;  %v3520_v13 = vpop.permute.xlu1 %3519 }
 0xdc7   : > { %v10363_v34 = vpop.eup %10362  ;;  %9701 = vmatprep.mubr.msk.f32.mxu1 %vm1446_vm2, %v3520_v13  ;;  %v3798_v15 = vadd.f32 %v10361_v46, %v10357_v61 }
 0xdc8   : > { %v3822_v16 = vadd.f32 %v10363_v34, %v10359_v11  ;;  %v10365_v17 = vpop.eup %10364 }
 0xdc9   : > { %3802 = vrot.lane.b32.xlu0 %v3798_v15, %s12704_s17  ;;  %v10367_v18 = vpop.eup %10366 }
 0xdca   : > { %3826 = vrot.lane.b32.xlu1 %v3822_v16, %s12688_s28  ;;  %v10369_v22 = vpop.eup %10368  ;;  %v3823_v20 = vadd.f32 %v10367_v18, %v10365_v17 }
 0xdcb   : > { %v10371_v28 = vpop.eup %10370 }
 0xdcc   : > { %v3799_v32 = vadd.f32 %v10371_v28, %v10369_v22 }
 0xdcd   : > { %4283 = vrot.lane.b32.xlu0 %v11238_v10, %s12705_s20 }
 0xdce   : > { %3828 = vrot.lane.b32.xlu1 %v3823_v20, %s12688_s28  ;;  %v3810_v20 = vmul.f32 0.5, %v11401_v59 }
 0xdd2   : > { %3804 = vrot.lane.b32.xlu1 %v3799_v32, %s12704_s17 }
 0xdd6   : > { %4281 = vrot.lane.b32.xlu1 %v11233_v5, %s12705_s20 }
 0xde2   : > { %v3522_v33 = vpop.permute.xlu1 %3521 }
 0xde3   : > { %9702 = vmatmul.mubr.msk.f32.vlgmr.msra.gmra.mxu1 %vm1446_vm2, %v3522_v33 }
 0xde6   : > { %v4257_v24 = vpop.permute.xlu1 %4256 }
 0xde7   : > { %10172 = vpush %v4257_v24 }
 0xdf3   : > { %v4252_v37 = vpop.permute.xlu1 %4251 }
 0xdf4   : > { %v4255_v44 = vadd.f32 %v4252_v37, %v11270_v25  ;;  %v3811_v37 = vmul.f32 0.5, %v11409_v62 }
 0xdf7   : > { %v4290_v38 = vpop.permute.xlu1 %4289 }
 0xdf8   : > { %10174 = vpush %v4290_v38 }
 0xdfb   : > { %v4248_v43 = vpop.permute.xlu1 %4247 }
 0xdfc   : > { %v4254_v56 = vadd.f32 %v4248_v43, %v11262_v7 }
 0xe18   : > { %s10173_s23 = spop %10172 }
 0xe19   : > { %v4259_v27 = vstv %s10173_s23 }
 0xe1a   : > { %v4261_v53 = vadd.f32 %v4259_v27, %v4254_v56  ;;  %v4262_v57 = vadd.f32 %v4259_v27, %v4255_v44 }
 0xe1c   : > { %v4265_v61 = vand.u32 2147483647, %v4261_v53  ;;  %v4266_v11 = vand.u32 2147483647, %v4262_v57  ;;  %v4264_v43 = vmax.f32 %v4262_v57, 0.0 }
 0xe1e   : > { %v4267_v46 = vsub.f32 0.0, %v4265_v61  ;;  %v4268_v13 = vsub.f32 0.0, %v4266_v11 }
 0xe20   : > { %v4269_v34 = vmul.f32 1.442695, %v4267_v46  ;;  %v4271_v15 = vmul.f32 1.442695, %v4268_v13 }
 0xe22   : > { %10372 = vpow2.f32 %v4269_v34 }
 0xe23   : > { %10374 = vpow2.f32 %v4271_v15  ;;  %v4263_v15 = vmax.f32 %v4261_v53, 0.0  ;;  %v11512_v53 = vmul.f32 0.5, %v11304_v51  ;;  %v11525_v51 = vmul.f32 %v11447_v21, %v11429_v47 }
 0xe25   : > { %12708 = vst [vmem:[#allocation55_spill] sm:$0xff] %v11512_v53  ;;  %12709 = vst [vmem:[#allocation56_spill] sm:$0xff] %v11525_v51 }
 0xe29   : > { %s10175_s23 = spop %10174 }
 0xe2a   : > { %v4292_v46 = vstv %s10175_s23  ;;  %s12711_s23 = sld [smem:[#allocation29_spill]] }
 0xe2f   : > { %v10373_v16 = vpop.eup %10372 }
 0xe30   : > { %v10375_v17 = vpop.eup %10374  ;;  %v4273_v18 = vadd.f32 1.0, %v10373_v16  ;;  %v11503_v16 = vmul.f32 0.5, %v11296_v40  ;;  %v10689_v40 = vmov 4  }
 0xe31   : > { %v4274_v22 = vadd.f32 1.0, %v10375_v17 }
 0xe32   : > { %12707 = vst [vmem:[#allocation54_spill] sm:$0xff] %v11503_v16 }
 0xe33   : > { %10376 = vlog2.f32 %v4274_v22 }
 0xe34   : > { %10378 = vlog2.f32 %v4273_v18 }
 0xe3b   : > { %v3803_v33 = vpop.permute.xlu0 %3802 }
 0xe3c   : > { %v3827_v28 = vpop.permute.xlu1 %3826  ;;  %v3808_v22 = vmul.f32 %v3803_v33, %v11503_v16 }
 0xe3d   : > { %v3832_v32 = vmul.f32 %v3827_v28, %v3810_v20 }
 0xe3f   : > { %4134 = vrot.lane.b32.xlu0 %v3832_v32, %s12694_s3  ;;  %v4284_v11 = vpop.permute.xlu0 %4283 }
 0xe40   : > { %v10377_v24 = vpop.eup %10376  ;;  %v3829_v44 = vpop.permute.xlu1 %3828 }
 0xe41   : > { %v10379_v38 = vpop.eup %10378  ;;  %v4278_v56 = vmul.f32 0.6931472, %v10377_v24  ;;  %v3833_v27 = vmul.f32 %v3829_v44, %v3811_v37  ;;  %v11531_v24 = vmul.f32 %v11457_v31, %v11435_v58 }
 0xe42   : > { %v4276_v59 = vmul.f32 0.6931472, %v10379_v38 }
 0xe43   : > { %v4280_v61 = vadd.f32 %v4278_v56, %v4264_v43  ;;  %4136 = vrot.lane.b32.xlu1 %v3833_v27, %s12694_s3  ;;  %3923 = vrot.lane.b32.xlu0 %v11419_v63, %s12706_s24  ;;  %12710 = vst [vmem:[#allocation57_spill] sm:$0xff] %v11531_v24 }
 0xe44   : > { %v3805_v34 = vpop.permute.xlu1 %3804  ;;  %v4279_v57 = vadd.f32 %v4276_v59, %v4263_v15  ;;  %v11562_v15 = vld [vmem:[%s12711_s23 + $0x70] sm:$0xff] }
 0xe45   : > { %v11497_v13 = vmul.f32 %v4284_v11, %v4280_v61  ;;  %v3809_v28 = vmul.f32 %v3805_v34, %v11512_v53  ;;  %v11555_v34 = vld [vmem:[%s12711_s23 + $0x78] sm:$0xff] }
 0xe46   : > { %9711 = vmatprep.subr.mxu1 %v11555_v34 }
 0xe47   : > { %v4295_v62 = vmul.f32 %v4292_v46, %v11497_v13  ;;  %3921 = vrot.lane.b32.xlu1 %v11421_v2, %s12706_s24  ;;  %9712 = vmatpush3.msra.mxu1 %v11555_v34 }
 0xe48   : > { %v4282_v17 = vpop.permute.xlu1 %4281  ;;  %9713 = vmatprep.subr.mxu1 %v11562_v15 }
 0xe49   : > { %4308 = vrot.lane.b32.xlu0 %v4295_v62, %s12676_s5  ;;  %v11506_v18 = vmul.f32 %v4282_v17, %v4279_v57  ;;  %v11565_v62 = vld [vmem:[%s12711_s23 + $0x68] sm:$0xff]  ;;  %9714 = vmatpush3.msra.mxu1 %v11562_v15  ;;  %v11570_v57 = vld [vmem:[%s12711_s23 + $0x60] sm:$0xff]  ;;  %v11575_v17 = vld [vmem:[%s12711_s23 + $0x58] sm:$0xff] }
 0xe4a   : > { %9715 = vmatprep.subr.mxu1 %v11565_v62 }
 0xe4b   : > { %v4294_v20 = vmul.f32 %v4292_v46, %v11506_v18  ;;  %9716 = vmatpush3.msra.mxu1 %v11565_v62 }
 0xe4c   : > { %9717 = vmatprep.subr.mxu1 %v11570_v57 }
 0xe4d   : > { %3836 = vrot.lane.b32.xlu0 %v3808_v22, %s12691_s8  ;;  %4306 = vrot.lane.b32.xlu1 %v4294_v20, %s12676_s5  ;;  %v11580_v22 = vld [vmem:[%s12711_s23 + $0x50] sm:$0xff]  ;;  %v11585_v20 = vld [vmem:[%s12711_s23 + $0x48] sm:$0xff] }
 0xe4e   : > { %9718 = vmatpush3.msra.mxu1 %v11570_v57 }
 0xe4f   : > { %9719 = vmatprep.subr.mxu1 %v11575_v17 }
 0xe50   : > { %9720 = vmatpush3.msra.mxu1 %v11575_v17 }
 0xe51   : > { %3838 = vrot.lane.b32.xlu1 %v3809_v28, %s12691_s8  ;;  %9721 = vmatprep.subr.mxu1 %v11580_v22  ;;  %v11590_v28 = vld [vmem:[%s12711_s23 + $0x40] sm:$0xff] }
 0xe52   : > { %9722 = vmatpush3.msra.mxu1 %v11580_v22 }
 0xe53   : > { %9723 = vmatprep.subr.mxu1 %v11585_v20 }
 0xe54   : > { %9724 = vmatpush3.msra.mxu1 %v11585_v20 }
 0xe55   : > { %9725 = vmatprep.subr.mxu1 %v11590_v28 }
 0xe56   : > { %9726 = vmatpush3.msra.mxu1 %v11590_v28 }
 0xe6b   : > { %4024 = vxpose.xlu0.b32.start [1/2] (short) (narrow) %v11363_v39, 8 }
 0xe6f   : > { %4025 = vxpose.xlu0.b32.end [2/2] (short) (narrow) %v11368_v45, 8 }
 0xe74   : > { %v9684_v35 = vpop.f32.mrf.mxu0 }
 0xe76   : > { %v3349_v26 = vpop.f32.mrf.mxu0 }
 0xe7c   : > { %v11521_v32 = vpop.f32.mrf.mxu1  ;;  %v9698_v29 = vpop.f32.mrf.mxu0 }
 0xe7e   : > { %v11527_v33 = vpop.f32.mrf.mxu1  ;;  %v3508_v49 = vpop.f32.mrf.mxu0 }
 0xe98   : > { %4296 = vrot.lane.b32.xlu0 %v11359_v36, %s12705_s20  ;;  %v3358_v36 = vsub.f32 %v3349_v26, %v11463_v42 }
 0xe99   : > { %10312 = vset.pattern.permute.xlu0 %v10689_v40 }
 0xea3   : > { %v9703_v39 = vpop.f32.mrf.mxu1 }
 0xea4   : > { %v3603_v45 = vmul.f32 %v9703_v39, %v11525_v51  ;;  %v11600_v39 = vld [vmem:[%s12711_s23 + $0x30] sm:$0xff] }
 0xea5   : > { %v3593_v37 = vpop.f32.mrf.mxu1 }
 0xea6   : > { %v3602_v38 = vmul.f32 %v3593_v37, %v11531_v24  ;;  %9704 = vmatprep.subr.mxu0 %v3603_v45  ;;  %v11610_v37 = vld [vmem:[%s12711_s23 + $0x20] sm:$0xff]  ;;  %v3679_v24 = vsub.f32 %v3349_v26, %v11527_v33 }
 0xea7   : > { %9705 = vmatpush3.msra.mxu0 %v3603_v45  ;;  %v11605_v45 = vld [vmem:[%s12711_s23 + $0x28] sm:$0xff] }
 0xea8   : > { %9706 = vmatprep.subr.mxu0 %v3602_v38  ;;  %v3681_v53 = vmin.f32 %v3679_v24, 0.0 }
 0xea9   : > { %9707 = vmatpush3.msra.mxu0 %v3602_v38  ;;  %v11617_v38 = vld [vmem:[%s12711_s23 + $0x18] sm:$0xff] }
 0xeaa   : > { %9709 = vmatmul.mubr.msk.f32.vlgmr.msra.gmra.mxu0 %vm2118_vm15, %v12582_v55  ;;  %9746 = vmatprep.subr.mxu0 %v11426_v8 }
 0xeab   : > { %9747 = vmatpush3.msra.mxu0 %v11426_v8 }
 0xeb1   : > { %v4135_v43 = vpop.permute.xlu0 %4134 }
 0xeb2   : > { %4140 = vxpose.xlu1.b32.start [1/2] (short) (narrow) %v4135_v43, 8  ;;  %v11622_v43 = vld [vmem:[%s12711_s23 + $0x10] sm:$0xff] }
 0xeb5   : > { %v4137_v44 = vpop.permute.xlu1 %4136  ;;  %v11539_v56 = vpop.permute.xlu0 %3923 }
 0xeb6   : > { %4141 = vxpose.xlu1.b32.end [2/2] (short) (narrow) %v4137_v44, 8  ;;  %9751 = vmatprep.subr.mxu0 %v11539_v56  ;;  %v11625_v44 = vld [vmem:[%s12711_s23 + $0x8] sm:$0xff] }
 0xeb9   : > { %v11542_v27 = vpop.permute.xlu1 %3921 }
 0xebb   : > { %v11544_v61 = vpop.permute.xlu0 %4308 }
 0xebf   : > { %v3837_v11 = vpop.permute.xlu0 %3836  ;;  %v11546_v46 = vpop.permute.xlu1 %4306 }
 0xec0   : > { %9748 = vmatprep.mubr.msk.f32.mxu0 %vm1446_vm2, %v3837_v11  ;;  %v11630_v11 = vld [vmem:[%s12711_s23] sm:$0xff] }
 0xec3   : > { %v3839_v59 = vpop.permute.xlu1 %3838 }
 0xec4   : > { %9749 = vmatmul.mubr.msk.f32.vlgmr.msra.gmra.mxu0 %vm1446_vm2, %v3839_v59 }
 0xec5   : > { %9752 = vmatpush3.msra.mxu0 %v11539_v56 }
 0xec6   : > { %9753 = vmatprep.subr.mxu0 %v11542_v27 }
 0xec7   : > { %9754 = vmatpush3.msra.mxu0 %v11542_v27 }
 0xec8   : > { %9758 = vmatprep.subr.mxu0 %v12580_v1 }
 0xed4   : > { %4298 = vrot.lane.b32.xlu1 %v11395_v54, %s12705_s20  ;;  %v3680_v54 = vsub.f32 %v9684_v35, %v11521_v32 }
 0xed5   : > { %10313 = vset.pattern.permute.xlu1 %v10689_v40  ;;  %v11595_v40 = vld [vmem:[%s12711_s23 + $0x38] sm:$0xff] }
 0xed6   : > { %9727 = vmatprep.subr.mxu1 %v11595_v40  ;;  %v3682_v16 = vmin.f32 %v3680_v54, 0.0 }
 0xed7   : > { %9728 = vmatpush3.msra.mxu1 %v11595_v40 }
 0xed8   : > { %9729 = vmatprep.subr.mxu1 %v11600_v39  ;;  %v3685_v42 = vmul.f32 1.442695, %v3682_v16 }
 0xed9   : > { %9730 = vmatpush3.msra.mxu1 %v11600_v39 }
 0xeda   : > { %9731 = vmatprep.subr.mxu1 %v11605_v45  ;;  %10380 = vpow2.f32 %v3685_v42 }
 0xedb   : > { %9732 = vmatpush3.msra.mxu1 %v11605_v45 }
 0xedc   : > { %9733 = vmatprep.subr.mxu1 %v11610_v37 }
 0xedd   : > { %9734 = vmatpush3.msra.mxu1 %v11610_v37 }
 0xede   : > { %9735 = vmatprep.subr.mxu1 %v11617_v38 }
 0xedf   : > { %9736 = vmatpush3.msra.mxu1 %v11617_v38 }
 0xee0   : > { %9737 = vmatprep.subr.mxu1 %v11622_v43 }
 0xee1   : > { %9738 = vmatpush3.msra.mxu1 %v11622_v43 }
 0xee2   : > { %9739 = vmatprep.subr.mxu1 %v11625_v44 }
 0xee3   : > { %9740 = vmatpush3.msra.mxu1 %v11625_v44 }
 0xee4   : > { %9741 = vmatprep.subr.mxu1 %v11630_v11 }
 0xee5   : > { %9742 = vmatpush3.msra.mxu1 %v11630_v11 }
 0xee7   : > { %v11636_v59 = vpop.trf.xlu0 }
 0xf0a   : > { %v4297_v1 = vpop.permute.xlu0 %4296 }
 0xf0b   : > { %v11639_v55 = vmul.f32 %v4297_v1, %v11506_v18  ;;  %v3359_v18 = vsub.f32 %v9684_v35, %v11454_v30  ;;  %v3683_v35 = vmul.f32 1.442695, %v3681_v53 }
 0xf0d   : > { %4707 = vrot.lane.b32.xlu0 %v11639_v55, %s12676_s5  ;;  %10382 = vpow2.f32 %v3683_v35 }
 0xf11   : > { %5196 = vrot.lane.b32.xlu0 %v11406_v60, %s12712_s25  ;;  %v3689_v60 = vsub.f32 %v3508_v49, %v3358_v36  ;;  %s12613_s25 = smov 126  }
 0xf13   : > { %v3691_v2 = vmin.f32 %v3689_v60, 0.0 }
 0xf15   : > { %5440 = vperm.xlu0 %10312, %v11224_v0   ;;  %v3690_v0 = vsub.f32 %v9698_v29, %v3359_v18  ;;  %v3693_v30 = vmul.f32 1.442695, %v3691_v2  ;;  %v10381_v29 = vpop.eup %10380 }
 0xf16   : > { %v3688_v2 = vmul.f32 %v10381_v29, %v11429_v47 }
 0xf17   : > { %v3692_v63 = vmin.f32 %v3690_v0, 0.0  ;;  %10384 = vpow2.f32 %v3693_v30 }
 0xf19   : > { %v3695_v26 = vmul.f32 1.442695, %v3692_v63 }
 0xf1a   : > { %v10383_v36 = vpop.eup %10382 }
 0xf1b   : > { %10386 = vpow2.f32 %v3695_v26  ;;  %v3687_v54 = vmul.f32 %v10383_v36, %v11435_v58  ;;  %v12713_v58 = vmov 1.0  }
 0xf24   : > { %v10385_v0 = vpop.eup %10384 }
 0xf25   : > { %v3697_v60 = vmul.f32 %v10385_v0, %v11457_v31 }
 0xf28   : > { %v10387_v49 = vpop.eup %10386 }
 0xf29   : > { %v3698_v63 = vmul.f32 %v10387_v49, %v11447_v21  ;;  %v12714_v49 = vmov 0.0  }
 0xf2b   : > { %v3700_v16 = vadd.f32 %v3698_v63, %v3688_v2 }
 0xf2e   : > { %v11646_v41 = vpop.trf.xlu1 }
 0xf46   : > { %v4299_v1 = vpop.permute.xlu1 %4298 }
 0xf47   : > { %v11653_v51 = vmul.f32 %v4299_v1, %v11497_v13  ;;  %v3699_v13 = vadd.f32 %v3697_v60, %v3687_v54  ;;  %v3702_v1 = vmul.f32 0.5, %v3700_v16 }
 0xf49   : > { %4709 = vrot.lane.b32.xlu1 %v11653_v51, %s12676_s5  ;;  %v3701_v33 = vmul.f32 0.5, %v3699_v13 }
 0xf4d   : > { %5445 = vrot.lane.b32.xlu1 %v11211_v50, %s12613_s25 }
 0xf51   : > { %5478 = vrot.lane.b32.xlu1 %v11208_v14, %s12613_s25  ;;  %s12614_s25 = smov 32  }
 0xf55   : > { %5436 = vperm.xlu1 %10313, %v11226_v3  }
 0xf6a   : > { %v9710_v14 = vpop.f32.mrf.mxu0 }
 0xf6b   : > { %v3704_v53 = vmul.f32 %v9710_v14, %v11432_v4 }
 0xf6c   : > { %v3670_v32 = vpop.f32.mrf.mxu0 }
 0xf6d   : > { %v3703_v24 = vmul.f32 %v3670_v32, %v11443_v19  ;;  %v3706_v42 = vmul.f32 %v3704_v53, %v3702_v1 }
 0xf6f   : > { %v3705_v18 = vmul.f32 %v3703_v24, %v3701_v33 }
 0xf71   : > { %9743 = vmatprep.mubr.f32.mxu1 %v3705_v18 }
 0xf72   : > { %9744 = vmatmul.mubr.f32.vlgmr.msra.gmra.mxu1 %v3706_v42 }
 0xf73   : > { %9800 = vmatprep.mubr.msk.f32.mxu1 %vm2118_vm15, %v12713_v58 }
 0xf7f   : > { %v11670_v47 = vpop.permute.xlu0 %4707 }
 0xf83   : > { %v5197_v35 = vpop.permute.xlu0 %5196 }
 0xf84   : > { %10176 = vpush %v5197_v35 }
 0xfbb   : > { %v11672_v30 = vpop.permute.xlu1 %4709 }
 0xfbf   : > { %v5446_v26 = vpop.permute.xlu1 %5445 }
 0xfc0   : > { %10178 = vpush %v5446_v26 }
 0xfc3   : > { %v5479_v29 = vpop.permute.xlu1 %5478 }
 0xfc4   : > { %10180 = vpush %v5479_v29 }
0x1032   : > { %v9745_v36 = vpop.f32.mrf.mxu1 }
0x1034   : > { %v3773_v0 = vpop.f32.mrf.mxu1 }
0x1035   : > { %9755 = vmatprep.mubr.msk.f32.mxu0 %vm2118_vm15, %v3773_v0 }
0x1036   : > { %9756 = vmatmul.mubr.msk.f32.vlgmr.msra.gmra.mxu0 %vm2118_vm15, %v9745_v36 }
0x1037   : > { %9759 = vmatpush3.msra.mxu0 %v12713_v58  ;;  %9762 = vmatprep.mubr.msk.f32.mxu0 %vm10671_vm1, %v12714_v49 }
0x1038   : > { %9760 = vmatprep.subr.mxu0 %v12714_v49 }
0x1039   : > { %9761 = vmatpush3.msra.mxu0 %v12713_v58 }
0x103a   : > { %9765 = vmatprep.subr.mxu0 %v12714_v49  ;;  %9763 = vmatmul.mubr.msk.f32.vlgmr.msra.gmra.mxu0 %vm2118_vm15, %v11636_v59 }
0x103b   : > { %9766 = vmatpush3.msra.mxu0 %v11539_v56  ;;  %9769 = vmatprep.mubr.msk.f32.mxu0 %vm10671_vm1, %v12714_v49 }
0x103c   : > { %9767 = vmatprep.subr.mxu0 %v12714_v49 }
0x103d   : > { %9768 = vmatpush3.msra.mxu0 %v11542_v27 }
0x103e   : > { %9772 = vmatprep.subr.mxu0 %v11544_v61  ;;  %9770 = vmatmul.mubr.msk.f32.vlgmr.msra.gmra.mxu0 %vm2118_vm15, %v11646_v41  ;;  %v11707_v41 = vpop.f32.mrf.mxu0 }
0x103f   : > { %9773 = vmatpush3.msra.mxu0 %v11544_v61  ;;  %9776 = vmatprep.mubr.msk.f32.mxu0 %vm2118_vm15, %v11349_v12  ;;  %12715 = vst [vmem:[#allocation58_spill] sm:$0xff] %v11707_v41 }
0x1040   : > { %9774 = vmatprep.subr.mxu0 %v11546_v46  ;;  %v3910_v12 = vpop.f32.mrf.mxu0 }
0x1041   : > { %9775 = vmatpush3.msra.mxu0 %v11546_v46 }
0x1042   : > { %9777 = vmatmul.mubr.msk.f32.vlgmr.msra.gmra.mxu0 %vm2118_vm15, %v11375_v52  ;;  %9779 = vmatprep.subr.mxu0 %v11346_v6 }
0x1043   : > { %9780 = vmatpush3.msra.mxu0 %v11346_v6  ;;  %9781 = vmatprep.mubr.msk.f32.mxu0 %vm1446_vm2, %v11546_v46 }
0x1044   : > { %9784 = vmatprep.subr.mxu0 %v11346_v6 }
0x1046   : > { %9782 = vmatmul.mubr.msk.f32.vlgmr.msra.gmra.mxu0 %vm1446_vm2, %v11544_v61 }
0x1047   : > { %9785 = vmatpush3.msra.mxu0 %v11346_v6 }
0x10f6   : > { %v11709_v56 = vpop.f32.mrf.mxu0 }
0x10f7   : > { %12716 = vst [vmem:[#allocation59_spill] sm:$0xff] %v11709_v56 }
0x10f8   : > { %v3999_v52 = vpop.f32.mrf.mxu0 }
0x10f9   : > { %v11711_v27 = vadd.f32 %v3999_v52, %v3910_v12 }
0x10fa   : > { %v4125_v59 = vpop.f32.mrf.mxu0 }
0x10fb   : > { %12717 = vst [vmem:[#allocation60_spill] sm:$0xff] %v11711_v27  ;;  %v4129_v54 = vmul.f32 1.442695, %v4125_v59 }
0x10fc   : > { %v9764_v60 = vpop.f32.mrf.mxu0 }
0x10fd   : > { %10388 = vpow2.f32 %v4129_v54 }
0x10fe   : > { %v4241_v2 = vpop.f32.mrf.mxu0 }
0x1100   : > { %v9771_v63 = vpop.f32.mrf.mxu0 }
0x1102   : > { %v9778_v13 = vpop.f32.mrf.mxu0 }
0x1103   : > { %v4388_v14 = vsub.f32 %v9778_v13, %v11544_v61  ;;  %v4977_v16 = vrot.slane %v9778_v13, %v11424_v9  ;;  %v4972_v63 = vmul.f32 1.442695, %v9778_v13 }
0x1104   : > { %v4378_v53 = vpop.f32.mrf.mxu0 }
0x1105   : > { %v4979_v32 = vsub.f32 %v4977_v16, %v4388_v14  ;;  %v4999_v33 = vsub.f32 %v4977_v16, %v9778_v13  ;;  %v5006_v24 = vmul.f32 1.442695, %v4388_v14  ;;  %9786 = vmatprep.mubr.msk.f32.mxu0 %vm1446_vm2, %v4378_v53  ;;  %v4387_v1 = vsub.f32 %v4378_v53, %v11546_v46 }
0x1106   : > { %v4998_v18 = vsub.f32 %v4977_v16, %v4378_v53  ;;  %v11717_v42 = vpop.f32.mrf.mxu0  ;;  %9787 = vmatmul.mubr.msk.f32.vlgmr.msra.gmra.mxu0 %vm1446_vm2, %v9778_v13 }
0x1107   : > { %v5002_v35 = vmul.f32 1.442695, %v4999_v33  ;;  %v4552_v26 = vmul.f32 %v11717_v42, %v11447_v21  ;;  %9793 = vmatprep.mubr.msk.f32.mxu0 %vm2118_vm15, %v12713_v58  ;;  %v4982_v29 = vmul.f32 1.442695, %v4979_v32  ;;  %10390 = vpow2.f32 %v5006_v24 }
0x1108   : > { %v4978_v36 = vsub.f32 %v4977_v16, %v4387_v1  ;;  %v5000_v0 = vmul.f32 1.442695, %v4998_v18  ;;  %v11724_v12 = vpop.f32.mrf.mxu0  ;;  %v5004_v52 = vmul.f32 1.442695, %v4387_v1  ;;  %v4629_v59 = vmul.f32 %v11717_v42, %v11439_v23 }
0x1109   : > { %v4551_v54 = vmul.f32 %v11724_v12, %v11457_v31  ;;  %v4628_v60 = vmul.f32 %v11724_v12, %v11450_v48  ;;  %9789 = vmatprep.subr.mxu0 %v4552_v26  ;;  %10392 = vpow2.f32 %v5002_v35  ;;  %v4970_v31 = vmul.f32 1.442695, %v4378_v53 }
0x110a   : > { %v10389_v21 = vpop.eup %10388  ;;  %9790 = vmatpush3.msra.mxu0 %v4552_v26  ;;  %v4980_v16 = vmul.f32 1.442695, %v4978_v36  ;;  %10394 = vpow2.f32 %v5000_v0  ;;  %9796 = vmatprep.subr.mxu1 %v4629_v59 }
0x110b   : > { %v4131_v14 = vmul.f32 %v10389_v21, %v11426_v8  ;;  %9791 = vmatprep.subr.mxu0 %v4551_v54  ;;  %10396 = vpow2.f32 %v4982_v29  ;;  %9797 = vmatpush3.msra.mxu1 %v4629_v59 }
0x110c   : > { %9792 = vmatpush3.msra.mxu0 %v4551_v54  ;;  %10398 = vpow2.f32 %v5004_v52  ;;  %9798 = vmatprep.subr.mxu1 %v4628_v60 }
0x110d   : > { %v11733_v32 = vadd.f32 %v4241_v2, %v4131_v14  ;;  %9794 = vmatmul.mubr.msk.f32.vlgmr.msra.gmra.mxu0 %vm2118_vm15, %v12713_v58  ;;  %10400 = vpow2.f32 %v4972_v63  ;;  %9799 = vmatpush3.msra.mxu1 %v4628_v60  ;;  %v4997_v14 = vmul.f32 0.5, %v11653_v51 }
0x110e   : > { %9803 = vmatprep.subr.mxu0 %v11346_v6  ;;  %10402 = vpow2.f32 %v4980_v16  ;;  %9801 = vmatmul.mubr.msk.f32.vlgmr.msra.gmra.mxu1 %vm2118_vm15, %v12713_v58 }
0x110f   : > { %12718 = vst [vmem:[#allocation61_spill] sm:$0xff] %v11733_v32  ;;  %9804 = vmatpush3.msra.mxu0 %v11346_v6  ;;  %9805 = vmatprep.mubr.msk.f32.mxu0 %vm1446_vm2, %v11670_v47  ;;  %10404 = vpow2.f32 %v4970_v31 }
0x1110   : > { %9812 = vmatprep.mubr.msk.f32.mxu1 %vm2118_vm15, %v12713_v58  ;;  %9815 = vmatprep.subr.mxu0 %v11555_v34 }
0x1111   : > { %9806 = vmatmul.mubr.msk.f32.vlgmr.msra.gmra.mxu0 %vm1446_vm2, %v11672_v30 }
0x1112   : > { %9816 = vmatpush3.msra.mxu0 %v11555_v34 }
0x1113   : > { %9817 = vmatprep.subr.mxu0 %v11562_v15 }
0x1114   : > { %9818 = vmatpush3.msra.mxu0 %v11562_v15  ;;  %v10391_v2 = vpop.eup %10390 }
0x1115   : > { %9819 = vmatprep.subr.mxu0 %v11565_v62 }
0x1116   : > { %9820 = vmatpush3.msra.mxu0 %v11565_v62  ;;  %v10393_v6 = vpop.eup %10392 }
0x1117   : > { %9821 = vmatprep.subr.mxu0 %v11570_v57  ;;  %v10395_v47 = vpop.eup %10394  ;;  %v5009_v13 = vadd.f32 %v10393_v6, %v10391_v2  ;;  %v4996_v2 = vmul.f32 0.5, %v11639_v55 }
0x1118   : > { %9822 = vmatpush3.msra.mxu0 %v11570_v57  ;;  %v10397_v30 = vpop.eup %10396 }
0x1119   : > { %9823 = vmatprep.subr.mxu0 %v11575_v17  ;;  %v10399_v53 = vpop.eup %10398  ;;  %5014 = vrot.lane.b32.xlu1 %v5009_v13, %s12705_s20 }
0x111a   : > { %9824 = vmatpush3.msra.mxu0 %v11575_v17  ;;  %v10401_v33 = vpop.eup %10400  ;;  %v5008_v24 = vadd.f32 %v10399_v53, %v10395_v47 }
0x111b   : > { %9825 = vmatprep.subr.mxu0 %v11580_v22  ;;  %v10403_v1 = vpop.eup %10402  ;;  %v4985_v18 = vadd.f32 %v10401_v33, %v10397_v30 }
0x111c   : > { %9826 = vmatpush3.msra.mxu0 %v11580_v22  ;;  %5012 = vrot.lane.b32.xlu0 %v5008_v24, %s12705_s20  ;;  %v10405_v35 = vpop.eup %10404  ;;  %s11787_s20 = spop %10176 }
0x111d   : > { %9827 = vmatprep.subr.mxu0 %v11585_v20  ;;  %4990 = vrot.lane.b32.xlu1 %v4985_v18, %s12704_s17  ;;  %v4984_v26 = vadd.f32 %v10405_v35, %v10403_v1  ;;  %v12719_v1 = vld [vmem:[#allocation52_spill] sm:$0xff] }
0x111e   : > { %9828 = vmatpush3.msra.mxu0 %v11585_v20  ;;  %v5441_v20 = vpop.permute.xlu0 %5440 }
0x111f   : > { %9829 = vmatprep.subr.mxu0 %v11590_v28 }
0x1120   : > { %9830 = vmatpush3.msra.mxu0 %v11590_v28  ;;  %4988 = vrot.lane.b32.xlu0 %v4984_v26, %s12704_s17 }
0x1121   : > { %9831 = vmatprep.subr.mxu0 %v11595_v40  ;;  %5470 = vrot.lane.b32.xlu1 %v11233_v5, %s12614_s25 }
0x1122   : > { %9832 = vmatpush3.msra.mxu0 %v11595_v40  ;;  %v5444_v40 = vadd.f32 %v5441_v20, %v11270_v25 }
0x1123   : > { %9833 = vmatprep.subr.mxu0 %v11600_v39 }
0x1124   : > { %9834 = vmatpush3.msra.mxu0 %v11600_v39  ;;  %5472 = vrot.lane.b32.xlu0 %v11238_v10, %s12614_s25  ;;  %s10179_s25 = spop %10178  ;;  %v5437_v39 = vpop.permute.xlu1 %5436 }
0x1125   : > { %9835 = vmatprep.subr.mxu0 %v11605_v45  ;;  %v5448_v28 = vstv %s10179_s25  ;;  %s12618_s25 = smov 48   ;;  %s10181_s29 = spop %10180 }
0x1126   : > { %9836 = vmatpush3.msra.mxu0 %v11605_v45  ;;  %v5451_v45 = vadd.f32 %v5448_v28, %v5444_v40  ;;  %v5481_v26 = vstv %s10181_s29  ;;  %s12726_s29 = smov 32  }
0x1127   : > { %9837 = vmatprep.subr.mxu0 %v11610_v37 }
0x1128   : > { %9838 = vmatpush3.msra.mxu0 %v11610_v37  ;;  %v5443_v37 = vadd.f32 %v5437_v39, %v11262_v7  ;;  %v5455_v29 = vand.u32 2147483647, %v5451_v45  ;;  %v5453_v51 = vmax.f32 %v5451_v45, 0.0 }
0x1129   : > { %9839 = vmatprep.subr.mxu0 %v11617_v38 }
0x112a   : > { %9840 = vmatpush3.msra.mxu0 %v11617_v38  ;;  %v5450_v38 = vadd.f32 %v5448_v28, %v5443_v37  ;;  %v5457_v0 = vsub.f32 0.0, %v5455_v29  ;;  %v12720_v29 = vld [vmem:[#allocation53_spill] sm:$0xff] }
0x112b   : > { %9841 = vmatprep.subr.mxu0 %v11622_v43 }
0x112c   : > { %9842 = vmatpush3.msra.mxu0 %v11622_v43  ;;  %v5454_v36 = vand.u32 2147483647, %v5450_v38  ;;  %v5460_v52 = vmul.f32 1.442695, %v5457_v0  ;;  %v5452_v20 = vmax.f32 %v5450_v38, 0.0 }
0x112d   : > { %9843 = vmatprep.subr.mxu0 %v11625_v44 }
0x112e   : > { %9844 = vmatpush3.msra.mxu0 %v11625_v44  ;;  %v5456_v44 = vsub.f32 0.0, %v5454_v36  ;;  %10406 = vpow2.f32 %v5460_v52  ;;  %v12721_v36 = vld [vmem:[#allocation55_spill] sm:$0xff] }
0x112f   : > { %9845 = vmatprep.subr.mxu0 %v11630_v11 }
0x1130   : > { %9846 = vmatpush3.msra.mxu0 %v11630_v11  ;;  %v5458_v59 = vmul.f32 1.442695, %v5456_v44  ;;  %v12723_v44 = vld [vmem:[#allocation54_spill] sm:$0xff] }
0x1132   : > { %10408 = vpow2.f32 %v5458_v59 }
0x113b   : > { %v10407_v54 = vpop.eup %10406 }
0x113c   : > { %v5463_v60 = vadd.f32 1.0, %v10407_v54 }
0x113e   : > { %10410 = vlog2.f32 %v5463_v60 }
0x113f   : > { %v10409_v21 = vpop.eup %10408 }
0x1140   : > { %v5462_v63 = vadd.f32 1.0, %v10409_v21 }
0x1142   : > { %10412 = vlog2.f32 %v5462_v63 }
0x114b   : > { %v10411_v6 = vpop.eup %10410 }
0x114c   : > { %v5467_v30 = vmul.f32 0.6931472, %v10411_v6 }
0x114e   : > { %v5469_v18 = vadd.f32 %v5467_v30, %v5453_v51  ;;  %v12724_v51 = vld [vmem:[#allocation56_spill] sm:$0xff] }
0x114f   : > { %v10413_v53 = vpop.eup %10412 }
0x1150   : > { %v5465_v55 = vmul.f32 0.6931472, %v10413_v53 }
0x1152   : > { %v5468_v39 = vadd.f32 %v5465_v55, %v5452_v20 }
0x118b   : > { %v5015_v16 = vpop.permute.xlu1 %5014 }
0x118c   : > { %v5019_v31 = vmul.f32 %v5015_v16, %v4997_v14 }
0x118e   : > { %v5013_v47 = vpop.permute.xlu0 %5012  ;;  %5325 = vrot.lane.b32.xlu1 %v5019_v31, %s12676_s5 }
0x118f   : > { %v5018_v13 = vmul.f32 %v5013_v47, %v4996_v2  ;;  %v4991_v33 = vpop.permute.xlu1 %4990 }
0x1190   : > { %v4995_v45 = vmul.f32 %v4991_v33, %v12721_v36 }
0x1191   : > { %5323 = vrot.lane.b32.xlu0 %v5018_v13, %s12676_s5  ;;  %s12722_s5 = smov 96  }
0x1192   : > { %v4989_v24 = vpop.permute.xlu0 %4988  ;;  %5111 = vrot.lane.b32.xlu1 %v12719_v1, %s12618_s25 }
0x1193   : > { %v5471_v40 = vpop.permute.xlu1 %5470  ;;  %v4994_v52 = vmul.f32 %v4989_v24, %v12723_v44 }
0x1194   : > { %v11805_v0 = vmul.f32 %v5471_v40, %v5468_v39  ;;  %v11822_v39 = vld [vmem:[%s12700_s13 + $0x8] sm:$0xff] }
0x1195   : > { %5027 = vrot.lane.b32.xlu0 %v11426_v8, %s12694_s3  ;;  %s12616_s3 = smov 125  }
0x1196   : > { %v5473_v35 = vpop.permute.xlu0 %5472  ;;  %v5483_v38 = vmul.f32 %v5481_v26, %v11805_v0 }
0x1197   : > { %v11799_v28 = vmul.f32 %v5473_v35, %v5469_v18 }
0x1199   : > { %v5484_v37 = vmul.f32 %v5481_v26, %v11799_v28  ;;  %5109 = vrot.lane.b32.xlu0 %v12720_v29, %s12618_s25  ;;  %v12725_v26 = vld [vmem:[#allocation57_spill] sm:$0xff] }
0x119b   : > { %5497 = vrot.lane.b32.xlu1 %v5484_v37, %s12722_s5 }
0x119d   : > { %5024 = vrot.lane.b32.xlu0 %v4995_v45, %s12691_s8 }
0x119f   : > { %5022 = vrot.lane.b32.xlu1 %v4994_v52, %s12691_s8 }
0x11a1   : > { %5495 = vrot.lane.b32.xlu0 %v5483_v38, %s12722_s5  ;;  %v11826_v38 = vld [vmem:[%s12703_s19 + $0x8] sm:$0xff] }
0x11c6   : > { %v9788_v59 = vpop.f32.mrf.mxu0 }
0x11c7   : > { %v4550_v21 = vsub.f32 %v9788_v59, %v11717_v42 }
0x11c8   : > { %5213 = vxpose.xlu1.b32.start [1/2] (short) (narrow) %v11546_v46, 8  ;;  %v4540_v54 = vpop.f32.mrf.mxu0 }
0x11c9   : > { %v4549_v31 = vsub.f32 %v4540_v54, %v11724_v12 }
0x11cc   : > { %5214 = vxpose.xlu1.b32.end [2/2] (short) (narrow) %v11544_v61, 8 }
0x11cd   : > { %v9795_v60 = vpop.f32.mrf.mxu0 }
0x11ce   : > { %v4868_v63 = vsub.f32 %v9788_v59, %v9795_v60  ;;  %v9802_v14 = vpop.f32.mrf.mxu1  ;;  %v11830_v60 = vld [vmem:[%s12700_s13] sm:$0xff] }
0x11cf   : > { %v4619_v16 = vpop.f32.mrf.mxu0  ;;  %v4878_v6 = vsub.f32 %v9802_v14, %v4550_v21  ;;  %v11834_v14 = vld [vmem:[%s12703_s19] sm:$0xff] }
0x11d0   : > { %v4870_v2 = vmin.f32 %v4868_v63, 0.0  ;;  %v4867_v47 = vsub.f32 %v4540_v54, %v4619_v16  ;;  %v4696_v13 = vpop.f32.mrf.mxu1 }
0x11d1   : > { %v9807_v30 = vpop.f32.mrf.mxu0  ;;  %v4880_v33 = vmin.f32 %v4878_v6, 0.0  ;;  %v4877_v46 = vsub.f32 %v4696_v13, %v4549_v31 }
0x11d2   : > { %v4873_v53 = vmul.f32 1.442695, %v4870_v2  ;;  %v4869_v24 = vmin.f32 %v4867_v47, 0.0  ;;  %v4791_v55 = vmul.f32 %v9807_v30, %v12724_v51  ;;  %v12727_v2 = vld [vmem:[#allocation50_spill] sm:$0xff] }
0x11d3   : > { %v4781_v61 = vpop.f32.mrf.mxu0  ;;  %v4883_v42 = vmul.f32 1.442695, %v4880_v33  ;;  %v4879_v35 = vmin.f32 %v4877_v46, 0.0 }
0x11d4   : > { %10414 = vpow2.f32 %v4873_v53  ;;  %v4871_v18 = vmul.f32 1.442695, %v4869_v24  ;;  %v4790_v12 = vmul.f32 %v4781_v61, %v12725_v26  ;;  %9808 = vmatprep.subr.mxu1 %v4791_v55  ;;  %v12728_v61 = vld [vmem:[#allocation48_spill] sm:$0xff] }
0x11d5   : > { %10416 = vpow2.f32 %v4883_v42  ;;  %v4881_v20 = vmul.f32 1.442695, %v4879_v35  ;;  %9809 = vmatpush3.msra.mxu1 %v4791_v55  ;;  %v12617_v55 = vmov 5  }
0x11d6   : > { %10418 = vpow2.f32 %v4871_v18  ;;  %9810 = vmatprep.subr.mxu1 %v4790_v12 }
0x11d7   : > { %10420 = vpow2.f32 %v4881_v20  ;;  %9811 = vmatpush3.msra.mxu1 %v4790_v12  ;;  %v10514_v12 = vld [vmem:[%s12665_s4] sm:$0x7] }
0x11d8   : > { %9813 = vmatmul.mubr.msk.f32.vlgmr.msra.gmra.mxu1 %vm2118_vm15, %v12713_v58 }
0x11e1   : > { %v10415_v40 = vpop.eup %10414 }
0x11e2   : > { %v4876_v37 = vmul.f32 %v11822_v39, %v10415_v40  ;;  %v10417_v45 = vpop.eup %10416 }
0x11e3   : > { %v10419_v52 = vpop.eup %10418  ;;  %v4886_v59 = vmul.f32 %v11826_v38, %v10417_v45 }
0x11e4   : > { %v10421_v54 = vpop.eup %10420  ;;  %v4875_v21 = vmul.f32 %v11830_v60, %v10419_v52 }
0x11e5   : > { %v4888_v63 = vadd.f32 %v4886_v59, %v4876_v37  ;;  %v4885_v16 = vmul.f32 %v11834_v14, %v10421_v54 }
0x11e7   : > { %v4887_v31 = vadd.f32 %v4885_v16, %v4875_v21  ;;  %v4890_v59 = vmul.f32 0.5, %v4888_v63 }
0x11e9   : > { %v4889_v52 = vmul.f32 0.5, %v4887_v31  ;;  %v12730_v31 = vld [vmem:[#allocation51_spill] sm:$0xff] }
0x11ea   : > { %5487 = vrot.lane.b32.xlu1 %v12727_v2, %s12726_s29 }
0x11eb   : > { %10314 = vset.pattern.permute.xlu1 %v12617_v55 }
0x1200   : > { %v5326_v6 = vpop.permute.xlu1 %5325 }
0x1203   : > { %v5324_v47 = vpop.permute.xlu0 %5323 }
0x1204   : > { %5329 = vxpose.xlu0.b32.start [1/2] (short) (narrow) %v5324_v47, 8  ;;  %v5112_v30 = vpop.permute.xlu1 %5111  ;;  %v12731_v47 = vld [vmem:[#allocation47_spill] sm:$0xff] }
0x1207   : > { %v11839_v13 = vpop.permute.xlu0 %5027 }
0x1208   : > { %5330 = vxpose.xlu0.b32.end [2/2] (short) (narrow) %v5326_v6, 8  ;;  %9850 = vmatprep.subr.mxu1 %v11839_v13 }
0x1209   : > { %9851 = vmatpush3.msra.mxu1 %v11839_v13 }
0x120a   : > { %9855 = vmatprep.subr.mxu1 %v5112_v30 }
0x120b   : > { %v5110_v53 = vpop.permute.xlu0 %5109 }
0x120d   : > { %v11843_v33 = vpop.permute.xlu1 %5497 }
0x120f   : > { %v5025_v46 = vpop.permute.xlu0 %5024 }
0x1211   : > { %v5023_v24 = vpop.permute.xlu1 %5022 }
0x1212   : > { %9852 = vmatprep.mubr.msk.f32.mxu1 %vm1446_vm2, %v5023_v24 }
0x1213   : > { %9853 = vmatmul.mubr.msk.f32.vlgmr.msra.gmra.mxu1 %vm1446_vm2, %v5025_v46  ;;  %v11860_v40 = vpop.permute.xlu0 %5495 }
0x1214   : > { %9856 = vmatpush3.msra.mxu1 %v5112_v30 }
0x1215   : > { %9857 = vmatprep.subr.mxu1 %v5110_v53 }
0x1216   : > { %9858 = vmatpush3.msra.mxu1 %v5110_v53 }
0x1217   : > { %9862 = vmatprep.subr.mxu1 %v12714_v49 }
0x1231   : > { %5485 = vrot.lane.b32.xlu0 %v12728_v61, %s12726_s29 }
0x1244   : > { %v5229_v42 = vpop.trf.xlu1 }
0x125c   : > { %v5488_v18 = vpop.permute.xlu1 %5487 }
0x125d   : > { %v11852_v35 = vmul.f32 %v5488_v18, %v11799_v28 }
0x125f   : > { %5898 = vrot.lane.b32.xlu0 %v11852_v35, %s12722_s5 }
0x1263   : > { %6633 = vrot.lane.b32.xlu0 %v11211_v50, %s12616_s3 }
0x1267   : > { %6666 = vrot.lane.b32.xlu0 %v10514_v12, %s12616_s3  ;;  %s12729_s3 = smov 126  }
0x1280   : > { %v5345_v21 = vpop.trf.xlu0 }
0x1298   : > { %v9814_v20 = vpop.f32.mrf.mxu1 }
0x1299   : > { %v4892_v37 = vmul.f32 %v9814_v20, %v11432_v4 }
0x129a   : > { %v4858_v45 = vpop.f32.mrf.mxu1 }
0x129b   : > { %v4891_v28 = vmul.f32 %v4858_v45, %v11443_v19  ;;  %v4894_v16 = vmul.f32 %v4892_v37, %v4890_v59 }
0x129d   : > { %v4893_v54 = vmul.f32 %v4891_v28, %v4889_v52 }
0x129f   : > { %9847 = vmatprep.mubr.f32.mxu0 %v4893_v54 }
0x12a0   : > { %9848 = vmatmul.mubr.f32.vlgmr.msra.gmra.mxu0 %v4894_v16 }
0x12a1   : > { %9904 = vmatprep.mubr.msk.f32.mxu0 %vm2118_vm15, %v12713_v58 }
0x12a3   : > { %v5486_v50 = vpop.permute.xlu0 %5485 }
0x12a4   : > { %v11867_v6 = vmul.f32 %v5486_v50, %v11805_v0 }
0x12a6   : > { %5896 = vrot.lane.b32.xlu1 %v11867_v6, %s12722_s5 }
0x12aa   : > { %6384 = vrot.lane.b32.xlu1 %v12730_v31, %s12729_s3  ;;  %s12620_s3 = smov 40  }
0x12ae   : > { %6628 = vperm.xlu1 %10314, %v12731_v47  }
0x12b2   : > { %6624 = vperm.xlu1 %10314, %v11226_v3   ;;  %v11895_v3 = vld [vmem:[%s12693_s9] sm:$0xff] }
0x12d1   : > { %v11875_v63 = vpop.permute.xlu0 %5898 }
0x12d3   : > { %v11917_v20 = vpop.f32.mrf.mxu1 }
0x12d4   : > { %12732 = vst [vmem:[#allocation52_spill] sm:$0xff] %v11917_v20 }
0x12d5   : > { %v6634_v46 = vpop.permute.xlu0 %6633  ;;  %v5100_v37 = vpop.f32.mrf.mxu1 }
0x1318   : > { %v11877_v24 = vpop.permute.xlu1 %5896 }
0x131c   : > { %v6385_v18 = vpop.permute.xlu1 %6384 }
0x131d   : > { %10182 = vpush %v6385_v18 }
0x131e   : > { %10184 = vpush %v6634_v46 }
0x134e   : > { %s12030_s25 = spop %10182 }
0x1360   : > { %v9849_v0 = vpop.f32.mrf.mxu0 }
0x1362   : > { %v4961_v12 = vpop.f32.mrf.mxu0 }
0x1363   : > { %9859 = vmatprep.mubr.msk.f32.mxu1 %vm2118_vm15, %v4961_v12 }
0x1364   : > { %9860 = vmatmul.mubr.msk.f32.vlgmr.msra.gmra.mxu1 %vm2118_vm15, %v9849_v0 }
0x1365   : > { %9863 = vmatpush3.msra.mxu1 %v12713_v58  ;;  %9866 = vmatprep.mubr.msk.f32.mxu1 %vm10671_vm1, %v12714_v49 }
0x1366   : > { %9864 = vmatprep.subr.mxu1 %v12714_v49 }
0x1367   : > { %9865 = vmatpush3.msra.mxu1 %v12713_v58 }
0x1368   : > { %9869 = vmatprep.subr.mxu1 %v12714_v49  ;;  %9867 = vmatmul.mubr.msk.f32.vlgmr.msra.gmra.mxu1 %vm2118_vm15, %v5229_v42  ;;  %v6667_v42 = vpop.permute.xlu0 %6666 }
0x1369   : > { %9870 = vmatpush3.msra.mxu1 %v5112_v30  ;;  %9873 = vmatprep.mubr.msk.f32.mxu1 %vm10671_vm1, %v12714_v49  ;;  %v11902_v30 = vld [vmem:[%s12693_s9 + $0x8] sm:$0xff]  ;;  %10186 = vpush %v6667_v42 }
0x136a   : > { %9871 = vmatprep.subr.mxu1 %v12714_v49 }
0x136b   : > { %9872 = vmatpush3.msra.mxu1 %v5110_v53  ;;  %v11907_v53 = vld [vmem:[%s12692_s1] sm:$0xff]  ;;  %s12735_s1 = smov 88  }
0x136c   : > { %9876 = vmatprep.subr.mxu1 %v11843_v33  ;;  %9874 = vmatmul.mubr.msk.f32.vlgmr.msra.gmra.mxu1 %vm2118_vm15, %v5345_v21 }
0x136d   : > { %9877 = vmatpush3.msra.mxu1 %v11843_v33  ;;  %9880 = vmatprep.mubr.msk.f32.mxu1 %vm2118_vm15, %v11895_v3 }
0x136e   : > { %9878 = vmatprep.subr.mxu1 %v11860_v40 }
0x136f   : > { %9879 = vmatpush3.msra.mxu1 %v11860_v40 }
0x1370   : > { %9881 = vmatmul.mubr.msk.f32.vlgmr.msra.gmra.mxu1 %vm2118_vm15, %v11902_v30  ;;  %9883 = vmatprep.subr.mxu1 %v11907_v53 }
0x1371   : > { %9884 = vmatpush3.msra.mxu1 %v11907_v53  ;;  %9885 = vmatprep.mubr.msk.f32.mxu1 %vm1446_vm2, %v11860_v40 }
0x1372   : > { %9888 = vmatprep.subr.mxu1 %v11907_v53 }
0x1374   : > { %9886 = vmatmul.mubr.msk.f32.vlgmr.msra.gmra.mxu1 %vm1446_vm2, %v11843_v33 }
0x1375   : > { %9889 = vmatpush3.msra.mxu1 %v11907_v53 }
0x1424   : > { %v11919_v45 = vpop.f32.mrf.mxu1 }
0x1425   : > { %12733 = vst [vmem:[#allocation53_spill] sm:$0xff] %v11919_v45 }
0x1426   : > { %v5187_v52 = vpop.f32.mrf.mxu1 }
0x1427   : > { %v11921_v28 = vadd.f32 %v5187_v52, %v5100_v37 }
0x1428   : > { %v5314_v59 = vpop.f32.mrf.mxu1 }
0x1429   : > { %12734 = vst [vmem:[#allocation55_spill] sm:$0xff] %v11921_v28  ;;  %v5318_v54 = vmul.f32 1.442695, %v5314_v59 }
0x142a   : > { %v9868_v21 = vpop.f32.mrf.mxu1 }
0x142b   : > { %10422 = vpow2.f32 %v5318_v54 }
0x142c   : > { %v5430_v16 = vpop.f32.mrf.mxu1 }
0x142e   : > { %v9875_v50 = vpop.f32.mrf.mxu1 }
0x1430   : > { %v9882_v47 = vpop.f32.mrf.mxu1 }
0x1431   : > { %v5577_v46 = vsub.f32 %v9882_v47, %v11843_v33  ;;  %v6166_v18 = vrot.slane %v9882_v47, %v11424_v9  ;;  %v6161_v32 = vmul.f32 1.442695, %v9882_v47 }
0x1432   : > { %v5567_v0 = vpop.f32.mrf.mxu1 }
0x1433   : > { %v6168_v12 = vsub.f32 %v6166_v18, %v5577_v46  ;;  %v6188_v42 = vsub.f32 %v6166_v18, %v9882_v47  ;;  %v6195_v55 = vmul.f32 1.442695, %v5577_v46  ;;  %9890 = vmatprep.mubr.msk.f32.mxu1 %vm1446_vm2, %v5567_v0  ;;  %v5576_v37 = vsub.f32 %v5567_v0, %v11860_v40 }
0x1434   : > { %v6187_v52 = vsub.f32 %v6166_v18, %v5567_v0  ;;  %v11927_v56 = vpop.f32.mrf.mxu1  ;;  %9891 = vmatmul.mubr.msk.f32.vlgmr.msra.gmra.mxu1 %vm1446_vm2, %v9882_v47  ;;  %v11987_v47 = vld [vmem:[%s12711_s23 + $0x38] sm:$0xff] }
0x1435   : > { %v6191_v59 = vmul.f32 1.442695, %v6188_v42  ;;  %v5741_v54 = vmul.f32 %v11826_v38, %v11927_v56  ;;  %9897 = vmatprep.mubr.msk.f32.mxu1 %vm2118_vm15, %v12713_v58  ;;  %v6171_v21 = vmul.f32 1.442695, %v6168_v12  ;;  %10424 = vpow2.f32 %v6195_v55 }
0x1436   : > { %v6167_v50 = vsub.f32 %v6166_v18, %v5576_v37  ;;  %v6189_v46 = vmul.f32 1.442695, %v6187_v52  ;;  %v11934_v41 = vpop.f32.mrf.mxu1  ;;  %v6193_v27 = vmul.f32 1.442695, %v5576_v37  ;;  %v5818_v45 = vmul.f32 %v11927_v56, %v11439_v23  ;;  %v12001_v52 = vld [vmem:[%s12711_s23 + $0x28] sm:$0xff] }
0x1437   : > { %v5740_v20 = vmul.f32 %v11834_v14, %v11934_v41  ;;  %v5817_v42 = vmul.f32 %v11934_v41, %v11450_v48  ;;  %9893 = vmatprep.subr.mxu1 %v5741_v54  ;;  %10426 = vpow2.f32 %v6191_v59  ;;  %v6159_v37 = vmul.f32 1.442695, %v5567_v0  ;;  %v11994_v0 = vld [vmem:[%s12711_s23 + $0x30] sm:$0xff]  ;;  %v12011_v59 = vld [vmem:[%s12711_s23 + $0x18] sm:$0xff] }
0x1438   : > { %v10423_v28 = vpop.eup %10422  ;;  %9894 = vmatpush3.msra.mxu1 %v5741_v54  ;;  %v6169_v18 = vmul.f32 1.442695, %v6167_v50  ;;  %10428 = vpow2.f32 %v6189_v46  ;;  %9900 = vmatprep.subr.mxu0 %v5818_v45  ;;  %v12021_v54 = vld [vmem:[%s12711_s23 + $0x8] sm:$0xff]  ;;  %v6629_v50 = vpop.permute.xlu1 %6628 }
0x1439   : > { %v5320_v55 = vmul.f32 %v10423_v28, %v11839_v13  ;;  %9895 = vmatprep.subr.mxu1 %v5740_v20  ;;  %10430 = vpow2.f32 %v6171_v21  ;;  %9901 = vmatpush3.msra.mxu0 %v5818_v45  ;;  %v11970_v28 = vld [vmem:[%s12711_s23 + $0x50] sm:$0xff]  ;;  %v12027_v21 = vld [vmem:[%s12711_s23] sm:$0xff]  ;;  %v6632_v46 = vadd.f32 %v6629_v50, %v11270_v25  ;;  %v6186_v25 = vmul.f32 0.5, %v11852_v35 }
0x143a   : > { %9896 = vmatpush3.msra.mxu1 %v5740_v20  ;;  %10432 = vpow2.f32 %v6193_v27  ;;  %9902 = vmatprep.subr.mxu0 %v5817_v42 }
0x143b   : > { %v11943_v12 = vadd.f32 %v5430_v16, %v5320_v55  ;;  %9898 = vmatmul.mubr.msk.f32.vlgmr.msra.gmra.mxu1 %vm2118_vm15, %v12713_v58  ;;  %10434 = vpow2.f32 %v6161_v32  ;;  %9903 = vmatpush3.msra.mxu0 %v5817_v42 }
0x143c   : > { %9907 = vmatprep.subr.mxu1 %v11907_v53  ;;  %10436 = vpow2.f32 %v6169_v18  ;;  %9905 = vmatmul.mubr.msk.f32.vlgmr.msra.gmra.mxu0 %vm2118_vm15, %v12713_v58  ;;  %v6625_v42 = vpop.permute.xlu1 %6624 }
0x143d   : > { %9908 = vmatpush3.msra.mxu1 %v11907_v53  ;;  %9909 = vmatprep.mubr.msk.f32.mxu1 %vm1446_vm2, %v11877_v24  ;;  %10438 = vpow2.f32 %v6159_v37  ;;  %v6631_v18 = vadd.f32 %v6625_v42, %v11262_v7  ;;  %v6185_v7 = vmul.f32 0.5, %v11867_v6 }
0x143e   : > { %9916 = vmatprep.mubr.msk.f32.mxu0 %vm2118_vm15, %v12713_v58  ;;  %9919 = vmatprep.subr.mxu1 %v11555_v34 }
0x143f   : > { %9910 = vmatmul.mubr.msk.f32.vlgmr.msra.gmra.mxu1 %vm1446_vm2, %v11875_v63 }
0x1440   : > { %9920 = vmatpush3.msra.mxu1 %v11555_v34 }
0x1441   : > { %9921 = vmatprep.subr.mxu1 %v11562_v15 }
0x1442   : > { %9922 = vmatpush3.msra.mxu1 %v11562_v15  ;;  %v10425_v27 = vpop.eup %10424 }
0x1443   : > { %9923 = vmatprep.subr.mxu1 %v11565_v62 }
0x1444   : > { %9924 = vmatpush3.msra.mxu1 %v11565_v62  ;;  %v10427_v32 = vpop.eup %10426 }
0x1445   : > { %9925 = vmatprep.subr.mxu1 %v11570_v57  ;;  %v10429_v13 = vpop.eup %10428  ;;  %v6198_v63 = vadd.f32 %v10427_v32, %v10425_v27 }
0x1446   : > { %9926 = vmatpush3.msra.mxu1 %v11570_v57  ;;  %v10431_v24 = vpop.eup %10430  ;;  %v11975_v57 = vld [vmem:[%s12711_s23 + $0x48] sm:$0xff] }
0x1447   : > { %9927 = vmatprep.subr.mxu1 %v11575_v17  ;;  %v10433_v34 = vpop.eup %10432  ;;  %6203 = vrot.lane.b32.xlu1 %v6198_v63, %s12726_s29 }
0x1448   : > { %9928 = vmatpush3.msra.mxu1 %v11575_v17  ;;  %v10435_v15 = vpop.eup %10434  ;;  %v6197_v62 = vadd.f32 %v10433_v34, %v10429_v13 }
0x1449   : > { %9929 = vmatprep.subr.mxu1 %v11580_v22  ;;  %v10437_v20 = vpop.eup %10436  ;;  %v6174_v45 = vadd.f32 %v10435_v15, %v10431_v24  ;;  %v11981_v22 = vld [vmem:[%s12711_s23 + $0x40] sm:$0xff] }
0x144a   : > { %9930 = vmatpush3.msra.mxu1 %v11970_v28  ;;  %6201 = vrot.lane.b32.xlu0 %v6197_v62, %s12726_s29  ;;  %v10439_v16 = vpop.eup %10438 }
0x144b   : > { %9931 = vmatprep.subr.mxu1 %v11975_v57  ;;  %6179 = vrot.lane.b32.xlu1 %v6174_v45, %s12704_s17  ;;  %v6173_v17 = vadd.f32 %v10439_v16, %v10437_v20 }
0x144c   : > { %9932 = vmatpush3.msra.mxu1 %v11975_v57 }
0x144d   : > { %9933 = vmatprep.subr.mxu1 %v11981_v22 }
0x144e   : > { %9934 = vmatpush3.msra.mxu1 %v11981_v22  ;;  %6177 = vrot.lane.b32.xlu0 %v6173_v17, %s12704_s17 }
0x144f   : > { %9935 = vmatprep.subr.mxu1 %v11987_v47  ;;  %6658 = vrot.lane.b32.xlu1 %v11233_v5, %s12620_s3  ;;  %v12006_v5 = vld [vmem:[%s12711_s23 + $0x20] sm:$0xff] }
0x1450   : > { %9936 = vmatpush3.msra.mxu1 %v11987_v47 }
0x1451   : > { %9937 = vmatprep.subr.mxu1 %v11994_v0 }
0x1452   : > { %9938 = vmatpush3.msra.mxu1 %v11994_v0  ;;  %6660 = vrot.lane.b32.xlu0 %v11238_v10, %s12620_s3  ;;  %v12017_v10 = vld [vmem:[%s12711_s23 + $0x10] sm:$0xff]  ;;  %s10185_s3 = spop %10184 }
0x1453   : > { %9939 = vmatprep.subr.mxu1 %v12001_v52 }
0x1454   : > { %9940 = vmatpush3.msra.mxu1 %v12001_v52 }
0x1455   : > { %9941 = vmatprep.subr.mxu1 %v12006_v5 }
0x1456   : > { %9942 = vmatpush3.msra.mxu1 %v12006_v5 }
0x1457   : > { %9943 = vmatprep.subr.mxu1 %v12011_v59 }
0x1458   : > { %9944 = vmatpush3.msra.mxu1 %v12011_v59 }
0x1459   : > { %9945 = vmatprep.subr.mxu1 %v11622_v43  ;;  %v6636_v43 = vstv %s10185_s3  ;;  %s10187_s3 = spop %10186 }
0x145a   : > { %9946 = vmatpush3.msra.mxu1 %v12017_v10  ;;  %v6639_v55 = vadd.f32 %v6636_v43, %v6632_v46  ;;  %v6638_v37 = vadd.f32 %v6636_v43, %v6631_v18 }
0x145b   : > { %9947 = vmatprep.subr.mxu1 %v12021_v54 }
0x145c   : > { %9948 = vmatpush3.msra.mxu1 %v12021_v54  ;;  %v6643_v27 = vand.u32 2147483647, %v6639_v55  ;;  %v6642_v32 = vand.u32 2147483647, %v6638_v37 }
0x145d   : > { %9949 = vmatprep.subr.mxu1 %v11630_v11 }
0x145e   : > { %9950 = vmatpush3.msra.mxu1 %v12027_v21  ;;  %v6645_v13 = vsub.f32 0.0, %v6643_v27  ;;  %v6644_v11 = vsub.f32 0.0, %v6642_v32  ;;  %v6641_v32 = vmax.f32 %v6639_v55, 0.0 }
0x1460   : > { %v6648_v63 = vmul.f32 1.442695, %v6645_v13  ;;  %v6646_v24 = vmul.f32 1.442695, %v6644_v11  ;;  %v6669_v11 = vstv %s10187_s3  ;;  %s12737_s3 = smov 80  }
0x1462   : > { %10440 = vpow2.f32 %v6648_v63  ;;  %v6640_v63 = vmax.f32 %v6638_v37, 0.0 }
0x1463   : > { %10442 = vpow2.f32 %v6646_v24 }
0x146f   : > { %v10441_v34 = vpop.eup %10440 }
0x1470   : > { %v6651_v15 = vadd.f32 1.0, %v10441_v34  ;;  %v10443_v62 = vpop.eup %10442 }
0x1471   : > { %v6650_v20 = vadd.f32 1.0, %v10443_v62 }
0x1472   : > { %10444 = vlog2.f32 %v6651_v15 }
0x1473   : > { %10446 = vlog2.f32 %v6650_v20 }
0x147f   : > { %v10445_v17 = vpop.eup %10444 }
0x1480   : > { %v6655_v46 = vmul.f32 0.6931472, %v10445_v17  ;;  %v10447_v42 = vpop.eup %10446 }
0x1481   : > { %v6653_v35 = vmul.f32 0.6931472, %v10447_v42 }
0x1482   : > { %v6657_v6 = vadd.f32 %v6655_v46, %v6641_v32 }
0x1483   : > { %v6656_v15 = vadd.f32 %v6653_v35, %v6640_v63 }
0x14b9   : > { %v6204_v45 = vpop.permute.xlu1 %6203 }
0x14ba   : > { %v6208_v16 = vmul.f32 %v6204_v45, %v6186_v25 }
0x14bc   : > { %v6202_v50 = vpop.permute.xlu0 %6201  ;;  %6513 = vrot.lane.b32.xlu1 %v6208_v16, %s12722_s5 }
0x14bd   : > { %v6207_v43 = vmul.f32 %v6202_v50, %v6185_v7  ;;  %v6180_v18 = vpop.permute.xlu1 %6179 }
0x14be   : > { %v6184_v55 = vmul.f32 %v6180_v18, %v12721_v36 }
0x14bf   : > { %6511 = vrot.lane.b32.xlu0 %v6207_v43, %s12722_s5 }
0x14c0   : > { %v6178_v27 = vpop.permute.xlu0 %6177  ;;  %6299 = vrot.lane.b32.xlu1 %v12719_v1, %s12726_s29 }
0x14c1   : > { %v6659_v34 = vpop.permute.xlu1 %6658  ;;  %v6183_v25 = vmul.f32 %v6178_v27, %v12723_v44 }
0x14c2   : > { %v12048_v20 = vmul.f32 %v6659_v34, %v6656_v15 }
0x14c3   : > { %6215 = vrot.lane.b32.xlu0 %v11426_v8, %s12722_s5  ;;  %s12736_s5 = smov 40  }
0x14c4   : > { %v6661_v13 = vpop.permute.xlu0 %6660  ;;  %v6671_v37 = vmul.f32 %v6669_v11, %v12048_v20 }
0x14c5   : > { %v12042_v24 = vmul.f32 %v6661_v13, %v6657_v6 }
0x14c7   : > { %v6672_v62 = vmul.f32 %v6669_v11, %v12042_v24  ;;  %6297 = vrot.lane.b32.xlu0 %v12720_v29, %s12726_s29 }
0x14c9   : > { %6685 = vrot.lane.b32.xlu1 %v6672_v62, %s12735_s1 }
0x14cb   : > { %6213 = vrot.lane.b32.xlu0 %v6184_v55, %s12691_s8 }
0x14cd   : > { %6211 = vrot.lane.b32.xlu1 %v6183_v25, %s12691_s8 }
0x14cf   : > { %6683 = vrot.lane.b32.xlu0 %v6671_v37, %s12735_s1 }
0x14f4   : > { %v9892_v45 = vpop.f32.mrf.mxu1 }
0x14f5   : > { %v5739_v17 = vsub.f32 %v9892_v45, %v11927_v56 }
0x14f6   : > { %6401 = vxpose.xlu1.b32.start [1/2] (short) (narrow) %v11860_v40, 8  ;;  %v5729_v16 = vpop.f32.mrf.mxu1 }
0x14f7   : > { %v5738_v42 = vsub.f32 %v5729_v16, %v11934_v41 }
0x14fa   : > { %6402 = vxpose.xlu1.b32.end [2/2] (short) (narrow) %v11843_v33, 8 }
0x14fb   : > { %v9899_v7 = vpop.f32.mrf.mxu1 }
0x14fc   : > { %v6057_v50 = vsub.f32 %v9892_v45, %v9899_v7  ;;  %v9906_v43 = vpop.f32.mrf.mxu0 }
0x14fd   : > { %v5808_v46 = vpop.f32.mrf.mxu1  ;;  %v6067_v27 = vsub.f32 %v9906_v43, %v5739_v17 }
0x14fe   : > { %v6059_v18 = vmin.f32 %v6057_v50, 0.0  ;;  %v6056_v32 = vsub.f32 %v5729_v16, %v5808_v46  ;;  %v5885_v35 = vpop.f32.mrf.mxu0 }
0x14ff   : > { %v9911_v6 = vpop.f32.mrf.mxu1  ;;  %v6069_v11 = vmin.f32 %v6067_v27, 0.0  ;;  %v6066_v40 = vsub.f32 %v5885_v35, %v5738_v42 }
0x1500   : > { %v6062_v13 = vmul.f32 1.442695, %v6059_v18  ;;  %v6058_v63 = vmin.f32 %v6056_v32, 0.0  ;;  %v5980_v34 = vmul.f32 %v9911_v6, %v12724_v51 }
0x1501   : > { %v5970_v33 = vpop.f32.mrf.mxu1  ;;  %v6072_v15 = vmul.f32 1.442695, %v6069_v11  ;;  %v6068_v62 = vmin.f32 %v6066_v40, 0.0 }
0x1502   : > { %10448 = vpow2.f32 %v6062_v13  ;;  %v6060_v56 = vmul.f32 1.442695, %v6058_v63  ;;  %v5979_v55 = vmul.f32 %v5970_v33, %v12725_v26  ;;  %9912 = vmatprep.subr.mxu0 %v5980_v34 }
0x1503   : > { %10450 = vpow2.f32 %v6072_v15  ;;  %v6070_v41 = vmul.f32 1.442695, %v6068_v62  ;;  %9913 = vmatpush3.msra.mxu0 %v5980_v34 }
0x1504   : > { %10452 = vpow2.f32 %v6060_v56  ;;  %9914 = vmatprep.subr.mxu0 %v5979_v55 }
0x1505   : > { %10454 = vpow2.f32 %v6070_v41  ;;  %9915 = vmatpush3.msra.mxu0 %v5979_v55 }
0x1506   : > { %9917 = vmatmul.mubr.msk.f32.vlgmr.msra.gmra.mxu0 %vm2118_vm15, %v12713_v58 }
0x150f   : > { %v10449_v25 = vpop.eup %10448 }
0x1510   : > { %v6065_v37 = vmul.f32 %v11822_v39, %v10449_v25  ;;  %v10451_v45 = vpop.eup %10450 }
0x1511   : > { %v10453_v16 = vpop.eup %10452  ;;  %v6075_v7 = vmul.f32 %v11826_v38, %v10451_v45 }
0x1512   : > { %v10455_v17 = vpop.eup %10454  ;;  %v6064_v50 = vmul.f32 %v11830_v60, %v10453_v16 }
0x1513   : > { %v6077_v43 = vadd.f32 %v6075_v7, %v6065_v37  ;;  %v6074_v46 = vmul.f32 %v11834_v14, %v10455_v17 }
0x1515   : > { %v6076_v42 = vadd.f32 %v6074_v46, %v6064_v50  ;;  %v6079_v55 = vmul.f32 0.5, %v6077_v43 }
0x1517   : > { %v6078_v56 = vmul.f32 0.5, %v6076_v42 }
0x1518   : > { %6675 = vrot.lane.b32.xlu1 %v12727_v2, %s12736_s5 }
0x152e   : > { %v6514_v18 = vpop.permute.xlu1 %6513 }
0x1531   : > { %v6512_v27 = vpop.permute.xlu0 %6511 }
0x1532   : > { %6517 = vxpose.xlu0.b32.start [1/2] (short) (narrow) %v6512_v27, 8  ;;  %v6300_v39 = vpop.permute.xlu1 %6299 }
0x1535   : > { %v12070_v32 = vpop.permute.xlu0 %6215 }
0x1536   : > { %6518 = vxpose.xlu0.b32.end [2/2] (short) (narrow) %v6514_v18, 8  ;;  %9954 = vmatprep.subr.mxu0 %v12070_v32 }
0x1537   : > { %9955 = vmatpush3.msra.mxu0 %v12070_v32 }
0x1538   : > { %9959 = vmatprep.subr.mxu0 %v6300_v39 }
0x1539   : > { %v6298_v60 = vpop.permute.xlu0 %6297 }
0x153b   : > { %v12074_v35 = vpop.permute.xlu1 %6685 }
0x153d   : > { %v6214_v13 = vpop.permute.xlu0 %6213 }
0x153f   : > { %v6212_v6 = vpop.permute.xlu1 %6211 }
0x1540   : > { %9956 = vmatprep.mubr.msk.f32.mxu0 %vm1446_vm2, %v6212_v6 }
0x1541   : > { %9957 = vmatmul.mubr.msk.f32.vlgmr.msra.gmra.mxu0 %vm1446_vm2, %v6214_v13  ;;  %v12086_v34 = vpop.permute.xlu0 %6683 }
0x1542   : > { %9960 = vmatpush3.msra.mxu0 %v6300_v39 }
0x1543   : > { %9961 = vmatprep.subr.mxu0 %v6298_v60 }
0x1544   : > { %9962 = vmatpush3.msra.mxu0 %v6298_v60 }
0x1545   : > { %9966 = vmatprep.subr.mxu0 %v12714_v49 }
0x155f   : > { %6673 = vrot.lane.b32.xlu0 %v12728_v61, %s12736_s5 }
0x1572   : > { %v6417_v2 = vpop.trf.xlu1 }
0x158a   : > { %v6676_v11 = vpop.permute.xlu1 %6675 }
0x158b   : > { %v12082_v63 = vmul.f32 %v6676_v11, %v12042_v24 }
0x158d   : > { %7086 = vrot.lane.b32.xlu0 %v12082_v63, %s12735_s1 }
0x15ae   : > { %v6533_v61 = vpop.trf.xlu0 }
0x15c6   : > { %v9918_v40 = vpop.f32.mrf.mxu0 }
0x15c7   : > { %v6081_v33 = vmul.f32 %v9918_v40, %v11432_v4 }
0x15c8   : > { %v6047_v15 = vpop.f32.mrf.mxu0 }
0x15c9   : > { %v6080_v62 = vmul.f32 %v6047_v15, %v11443_v19  ;;  %v6083_v25 = vmul.f32 %v6081_v33, %v6079_v55 }
0x15cb   : > { %v6082_v41 = vmul.f32 %v6080_v62, %v6078_v56 }
0x15cd   : > { %9951 = vmatprep.mubr.f32.mxu1 %v6082_v41 }
0x15ce   : > { %9952 = vmatmul.mubr.f32.vlgmr.msra.gmra.mxu1 %v6083_v25 }
0x15cf   : > { %10008 = vmatprep.mubr.msk.f32.mxu1 %vm2118_vm15, %v12713_v58 }
0x15d1   : > { %v6674_v24 = vpop.permute.xlu0 %6673 }
0x15d2   : > { %v12093_v37 = vmul.f32 %v6674_v24, %v12048_v20 }
0x15d4   : > { %7084 = vrot.lane.b32.xlu1 %v12093_v37, %s12735_s1 }
0x168e   : > { %v9953_v45 = vpop.f32.mrf.mxu1 }
0x1690   : > { %v6150_v16 = vpop.f32.mrf.mxu1 }
0x1691   : > { %9963 = vmatprep.mubr.msk.f32.mxu0 %vm2118_vm15, %v6150_v16 }
0x1692   : > { %9964 = vmatmul.mubr.msk.f32.vlgmr.msra.gmra.mxu0 %vm2118_vm15, %v9953_v45 }
0x1693   : > { %9967 = vmatpush3.msra.mxu0 %v12713_v58  ;;  %9970 = vmatprep.mubr.msk.f32.mxu0 %vm10671_vm1, %v12714_v49 }
0x1694   : > { %9968 = vmatprep.subr.mxu0 %v12714_v49 }
0x1695   : > { %9969 = vmatpush3.msra.mxu0 %v12713_v58 }
0x1696   : > { %9973 = vmatprep.subr.mxu0 %v12714_v49  ;;  %9971 = vmatmul.mubr.msk.f32.vlgmr.msra.gmra.mxu0 %vm2118_vm15, %v6417_v2 }
0x1697   : > { %9974 = vmatpush3.msra.mxu0 %v6300_v39  ;;  %9977 = vmatprep.mubr.msk.f32.mxu0 %vm10671_vm1, %v12714_v49 }
0x1698   : > { %9975 = vmatprep.subr.mxu0 %v12714_v49 }
0x1699   : > { %9976 = vmatpush3.msra.mxu0 %v6298_v60 }
0x169a   : > { %9980 = vmatprep.subr.mxu0 %v12074_v35  ;;  %9978 = vmatmul.mubr.msk.f32.vlgmr.msra.gmra.mxu0 %vm2118_vm15, %v6533_v61 }
0x169b   : > { %9981 = vmatpush3.msra.mxu0 %v12074_v35  ;;  %9984 = vmatprep.mubr.msk.f32.mxu0 %vm2118_vm15, %v11895_v3  ;;  %v12126_v3 = vpop.f32.mrf.mxu0 }
0x169c   : > { %9982 = vmatprep.subr.mxu0 %v12086_v34 }
0x169d   : > { %9983 = vmatpush3.msra.mxu0 %v12086_v34  ;;  %v6288_v20 = vpop.f32.mrf.mxu0 }
0x169e   : > { %9985 = vmatmul.mubr.msk.f32.vlgmr.msra.gmra.mxu0 %vm2118_vm15, %v11902_v30  ;;  %9987 = vmatprep.subr.mxu0 %v11907_v53 }
0x169f   : > { %9988 = vmatpush3.msra.mxu0 %v11907_v53  ;;  %9989 = vmatprep.mubr.msk.f32.mxu0 %vm1446_vm2, %v12086_v34 }
0x16a0   : > { %9992 = vmatprep.subr.mxu0 %v11907_v53 }
0x16a2   : > { %9990 = vmatmul.mubr.msk.f32.vlgmr.msra.gmra.mxu0 %vm1446_vm2, %v12074_v35 }
0x16a3   : > { %9993 = vmatpush3.msra.mxu0 %v11907_v53 }
0x1752   : > { %v12128_v7 = vpop.f32.mrf.mxu0 }
0x1754   : > { %v6375_v30 = vpop.f32.mrf.mxu0 }
0x1755   : > { %v12130_v17 = vadd.f32 %v6375_v30, %v6288_v20 }
0x1756   : > { %v6502_v50 = vpop.f32.mrf.mxu0 }
0x1757   : > { %v6506_v43 = vmul.f32 1.442695, %v6502_v50 }
0x1758   : > { %v9972_v46 = vpop.f32.mrf.mxu0 }
0x1759   : > { %10456 = vpow2.f32 %v6506_v43  ;;  %v10529_v43 = vld [vmem:[%s12711_s23 + $0x78] sm:$0xff]  ;;  %v10530_v46 = vld [vmem:[%s12711_s23 + $0x70] sm:$0xff] }
0x175a   : > { %v6618_v42 = vpop.f32.mrf.mxu0 }
0x175c   : > { %v9979_v18 = vpop.f32.mrf.mxu0 }
0x175d   : > { %v10531_v18 = vld [vmem:[%s12711_s23 + $0x68] sm:$0xff] }
0x175e   : > { %v9986_v27 = vpop.f32.mrf.mxu0 }
0x175f   : > { %v6765_v39 = vsub.f32 %v9986_v27, %v12074_v35  ;;  %v7354_v60 = vrot.slane %v9986_v27, %v11424_v9  ;;  %v7349_v20 = vmul.f32 1.442695, %v9986_v27 }
0x1760   : > { %v6755_v6 = vpop.f32.mrf.mxu0 }
0x1761   : > { %v7356_v13 = vsub.f32 %v7354_v60, %v6765_v39  ;;  %v7376_v2 = vsub.f32 %v7354_v60, %v9986_v27  ;;  %v7383_v11 = vmul.f32 1.442695, %v6765_v39  ;;  %9994 = vmatprep.mubr.msk.f32.mxu0 %vm1446_vm2, %v6755_v6  ;;  %v6764_v40 = vsub.f32 %v6755_v6, %v12086_v34 }
0x1762   : > { %v7375_v33 = vsub.f32 %v7354_v60, %v6755_v6  ;;  %v12136_v15 = vpop.f32.mrf.mxu0  ;;  %9995 = vmatmul.mubr.msk.f32.vlgmr.msra.gmra.mxu0 %vm1446_vm2, %v9986_v27  ;;  %v10532_v27 = vld [vmem:[%s12711_s23 + $0x60] sm:$0xff] }
0x1763   : > { %v7379_v56 = vmul.f32 1.442695, %v7376_v2  ;;  %v6929_v62 = vmul.f32 %v11826_v38, %v12136_v15  ;;  %10001 = vmatprep.mubr.msk.f32.mxu0 %vm2118_vm15, %v12713_v58  ;;  %v7359_v9 = vmul.f32 1.442695, %v7356_v13  ;;  %10458 = vpow2.f32 %v7383_v11  ;;  %v10533_v13 = vld [vmem:[%s12711_s23 + $0x58] sm:$0xff] }
0x1764   : > { %v7355_v55 = vsub.f32 %v7354_v60, %v6764_v40  ;;  %v7377_v41 = vmul.f32 1.442695, %v7375_v33  ;;  %v12143_v61 = vpop.f32.mrf.mxu0  ;;  %v7381_v25 = vmul.f32 1.442695, %v6764_v40  ;;  %v7006_v24 = vmul.f32 %v12136_v15, %v11439_v23 }
0x1765   : > { %v6928_v45 = vmul.f32 %v11834_v14, %v12143_v61  ;;  %v7005_v16 = vmul.f32 %v12143_v61, %v11450_v48  ;;  %9997 = vmatprep.subr.mxu0 %v6929_v62  ;;  %10460 = vpow2.f32 %v7379_v56  ;;  %v7347_v14 = vmul.f32 1.442695, %v6755_v6  ;;  %v7085_v48 = vpop.permute.xlu1 %7084 }
0x1766   : > { %v10457_v38 = vpop.eup %10456  ;;  %9998 = vmatpush3.msra.mxu0 %v6929_v62  ;;  %v7357_v50 = vmul.f32 1.442695, %v7355_v55  ;;  %10462 = vpow2.f32 %v7377_v41  ;;  %10004 = vmatprep.subr.mxu1 %v7006_v24 }
0x1767   : > { %v6508_v30 = vmul.f32 %v10457_v38, %v12070_v32  ;;  %9999 = vmatprep.subr.mxu0 %v6928_v45  ;;  %10464 = vpow2.f32 %v7359_v9  ;;  %10005 = vmatpush3.msra.mxu1 %v7006_v24  ;;  %v7087_v32 = vpop.permute.xlu0 %7086 }
0x1768   : > { %10000 = vmatpush3.msra.mxu0 %v6928_v45  ;;  %10466 = vpow2.f32 %v7381_v25  ;;  %10006 = vmatprep.subr.mxu1 %v7005_v16 }
0x1769   : > { %v12152_v23 = vadd.f32 %v6618_v42, %v6508_v30  ;;  %10002 = vmatmul.mubr.msk.f32.vlgmr.msra.gmra.mxu0 %vm2118_vm15, %v12713_v58  ;;  %10468 = vpow2.f32 %v7349_v20  ;;  %10007 = vmatpush3.msra.mxu1 %v7005_v16 }
0x176a   : > { %10011 = vmatprep.subr.mxu0 %v11907_v53  ;;  %10470 = vpow2.f32 %v7357_v50  ;;  %10009 = vmatmul.mubr.msk.f32.vlgmr.msra.gmra.mxu1 %vm2118_vm15, %v12713_v58 }
0x176b   : > { %10012 = vmatpush3.msra.mxu0 %v11907_v53  ;;  %10013 = vmatprep.mubr.msk.f32.mxu0 %vm1446_vm2, %v7085_v48  ;;  %10472 = vpow2.f32 %v7347_v14 }
0x176c   : > { %10020 = vmatprep.mubr.msk.f32.mxu1 %vm2118_vm15, %v12713_v58  ;;  %10023 = vmatprep.subr.mxu0 %v10529_v43 }
0x176d   : > { %10014 = vmatmul.mubr.msk.f32.vlgmr.msra.gmra.mxu0 %vm1446_vm2, %v7087_v32 }
0x176e   : > { %10024 = vmatpush3.msra.mxu0 %v10529_v43 }
0x176f   : > { %10025 = vmatprep.subr.mxu0 %v10530_v46 }
0x1770   : > { %10026 = vmatpush3.msra.mxu0 %v10530_v46  ;;  %v10459_v42 = vpop.eup %10458  ;;  %v10534_v46 = vld [vmem:[%s12700_s13 + $0x8] sm:$0xff] }
0x1771   : > { %10027 = vmatprep.subr.mxu0 %v10531_v18 }
0x1772   : > { %10028 = vmatpush3.msra.mxu0 %v10531_v18  ;;  %v10461_v53 = vpop.eup %10460  ;;  %v12738_v18 = vmov 5  }
0x1773   : > { %10029 = vmatprep.subr.mxu0 %v10532_v27  ;;  %v10463_v39 = vpop.eup %10462  ;;  %v7386_v60 = vadd.f32 %v10461_v53, %v10459_v42 }
0x1774   : > { %10030 = vmatpush3.msra.mxu0 %v10532_v27  ;;  %v10465_v6 = vpop.eup %10464  ;;  %v10535_v27 = vld [vmem:[%s12703_s19 + $0x8] sm:$0xff] }
0x1775   : > { %10031 = vmatprep.subr.mxu0 %v10533_v13  ;;  %v10467_v2 = vpop.eup %10466  ;;  %7391 = vrot.lane.b32.xlu0 %v7386_v60, %s12736_s5 }
0x1776   : > { %10032 = vmatpush3.msra.mxu0 %v10533_v13  ;;  %v10469_v11 = vpop.eup %10468  ;;  %v7385_v40 = vadd.f32 %v10467_v2, %v10463_v39 }
0x1777   : > { %10033 = vmatprep.subr.mxu0 %v11970_v28  ;;  %v10471_v33 = vpop.eup %10470  ;;  %v7362_v56 = vadd.f32 %v10469_v11, %v10465_v6  ;;  %v10536_v6 = vld [vmem:[%s12700_s13] sm:$0xff] }
0x1778   : > { %10034 = vmatpush3.msra.mxu0 %v11970_v28  ;;  %7389 = vrot.lane.b32.xlu1 %v7385_v40, %s12736_s5  ;;  %v10473_v62 = vpop.eup %10472  ;;  %v7374_v28 = vmul.f32 0.5, %v12082_v63  ;;  %v10537_v11 = vld [vmem:[%s12703_s19] sm:$0xff]  ;;  %s12742_s5 = sld [smem:[#allocation33_spill]] }
0x1779   : > { %10035 = vmatprep.subr.mxu0 %v11975_v57  ;;  %7367 = vrot.lane.b32.xlu0 %v7362_v56, %s12704_s17  ;;  %v7361_v9 = vadd.f32 %v10473_v62, %v10471_v33 }
0x177a   : > { %10036 = vmatpush3.msra.mxu0 %v11975_v57 }
0x177b   : > { %10037 = vmatprep.subr.mxu0 %v11981_v22 }
0x177c   : > { %10038 = vmatpush3.msra.mxu0 %v11981_v22  ;;  %7365 = vrot.lane.b32.xlu1 %v7361_v9, %s12704_s17 }
0x177d   : > { %10039 = vmatprep.subr.mxu0 %v11987_v47 }
0x177e   : > { %10040 = vmatpush3.msra.mxu0 %v11987_v47  ;;  %v7373_v47 = vmul.f32 0.5, %v12093_v37 }
0x177f   : > { %10041 = vmatprep.subr.mxu0 %v11994_v0 }
0x1780   : > { %10042 = vmatpush3.msra.mxu0 %v11994_v0 }
0x1781   : > { %10043 = vmatprep.subr.mxu0 %v12001_v52 }
0x1782   : > { %10044 = vmatpush3.msra.mxu0 %v12001_v52 }
0x1783   : > { %10045 = vmatprep.subr.mxu0 %v12006_v5 }
0x1784   : > { %10046 = vmatpush3.msra.mxu0 %v12006_v5 }
0x1785   : > { %10047 = vmatprep.subr.mxu0 %v12011_v59 }
0x1786   : > { %10048 = vmatpush3.msra.mxu0 %v12011_v59 }
0x1787   : > { %10049 = vmatprep.subr.mxu0 %v12017_v10 }
0x1788   : > { %10050 = vmatpush3.msra.mxu0 %v12017_v10 }
0x1789   : > { %10051 = vmatprep.subr.mxu0 %v12021_v54 }
0x178a   : > { %10052 = vmatpush3.msra.mxu0 %v12021_v54 }
0x178b   : > { %10053 = vmatprep.subr.mxu0 %v12027_v21 }
0x178c   : > { %10054 = vmatpush3.msra.mxu0 %v12027_v21 }
0x178d   : > { %10095 = vmatprep.subr.mxu0 %v12714_v49 }
0x17e7   : > { %v7392_v57 = vpop.permute.xlu0 %7391 }
0x17e8   : > { %v7396_v22 = vmul.f32 %v7392_v57, %v7374_v28 }
0x17ea   : > { %v7390_v0 = vpop.permute.xlu1 %7389  ;;  %7701 = vrot.lane.b32.xlu0 %v7396_v22, %s12735_s1 }
0x17eb   : > { %v7395_v52 = vmul.f32 %v7390_v0, %v7373_v47  ;;  %v7368_v10 = vpop.permute.xlu0 %7367 }
0x17ec   : > { %v7372_v54 = vmul.f32 %v7368_v10, %v12721_v36 }
0x17ed   : > { %7699 = vrot.lane.b32.xlu1 %v7395_v52, %s12735_s1  ;;  %s12740_s1 = smov 125  }
0x17ee   : > { %v7366_v5 = vpop.permute.xlu1 %7365  ;;  %7487 = vrot.lane.b32.xlu0 %v12719_v1, %s12688_s28 }
0x17ef   : > { %v7371_v59 = vmul.f32 %v7366_v5, %v12723_v44 }
0x17f1   : > { %7403 = vrot.lane.b32.xlu1 %v11426_v8, %s12737_s3 }
0x17f2   : > { %7399 = vrot.lane.b32.xlu0 %v7371_v59, %s12691_s8 }
0x17f5   : > { %7401 = vrot.lane.b32.xlu1 %v7372_v54, %s12691_s8  ;;  %s12739_s8 = smov 48  }
0x17f9   : > { %7485 = vrot.lane.b32.xlu1 %v12720_v29, %s12688_s28 }
0x1810   : > { %7589 = vxpose.xlu0.b32.start [1/2] (short) (narrow) %v12086_v34, 8 }
0x1814   : > { %7590 = vxpose.xlu0.b32.end [2/2] (short) (narrow) %v12074_v35, 8 }
0x1822   : > { %v9996_v21 = vpop.f32.mrf.mxu0 }
0x1823   : > { %v6927_v37 = vsub.f32 %v9996_v21, %v12136_v15 }
0x1824   : > { %v6917_v63 = vpop.f32.mrf.mxu0 }
0x1825   : > { %v6926_v25 = vsub.f32 %v6917_v63, %v12143_v61 }
0x1829   : > { %v10003_v44 = vpop.f32.mrf.mxu0 }
0x182a   : > { %v7245_v55 = vsub.f32 %v9996_v21, %v10003_v44  ;;  %v10010_v8 = vpop.f32.mrf.mxu1 }
0x182b   : > { %v6996_v41 = vpop.f32.mrf.mxu0  ;;  %v7255_v24 = vsub.f32 %v10010_v8, %v6927_v37 }
0x182c   : > { %v7247_v36 = vmin.f32 %v7245_v55, 0.0  ;;  %v7244_v45 = vsub.f32 %v6917_v63, %v6996_v41  ;;  %v7073_v16 = vpop.f32.mrf.mxu1 }
0x182d   : > { %v10015_v38 = vpop.f32.mrf.mxu0  ;;  %v7257_v30 = vmin.f32 %v7255_v24, 0.0  ;;  %v7254_v50 = vsub.f32 %v7073_v16, %v6926_v25 }
0x182e   : > { %v7250_v20 = vmul.f32 1.442695, %v7247_v36  ;;  %v7246_v34 = vmin.f32 %v7244_v45, 0.0  ;;  %v7168_v35 = vmul.f32 %v10015_v38, %v12724_v51 }
0x182f   : > { %v7158_v14 = vpop.f32.mrf.mxu0  ;;  %v7260_v15 = vmul.f32 1.442695, %v7257_v30  ;;  %v7256_v32 = vmin.f32 %v7254_v50, 0.0  ;;  %v12741_v50 = vld [vmem:[#allocation61_spill] sm:$0xff] }
0x1830   : > { %10474 = vpow2.f32 %v7250_v20  ;;  %v7248_v48 = vmul.f32 1.442695, %v7246_v34  ;;  %v7167_v43 = vmul.f32 %v7158_v14, %v12725_v26  ;;  %10016 = vmatprep.subr.mxu1 %v7168_v35 }
0x1831   : > { %10476 = vpow2.f32 %v7260_v15  ;;  %v7258_v61 = vmul.f32 1.442695, %v7256_v32  ;;  %10017 = vmatpush3.msra.mxu1 %v7168_v35 }
0x1832   : > { %10478 = vpow2.f32 %v7248_v48  ;;  %10018 = vmatprep.subr.mxu1 %v7167_v43 }
0x1833   : > { %10480 = vpow2.f32 %v7258_v61  ;;  %10019 = vmatpush3.msra.mxu1 %v7167_v43  ;;  %v5199_v61 = vstv %s11787_s20  ;;  %s12753_s20 = sld [smem:[#allocation40_spill]] }
0x1834   : > { %10021 = vmatmul.mubr.msk.f32.vlgmr.msra.gmra.mxu1 %vm2118_vm15, %v12713_v58 }
0x183d   : > { %v10475_v51 = vpop.eup %10474  ;;  %7843 = vrot.lane.b32.xlu0 %v11943_v12, %s12688_s28 }
0x183e   : > { %v7253_v26 = vmul.f32 %v10534_v46, %v10475_v51  ;;  %v10477_v42 = vpop.eup %10476  ;;  %10315 = vset.pattern.permute.xlu0 %v12738_v18  ;;  %v6387_v51 = vstv %s12030_s25  ;;  %s12754_s25 = sld [smem:[#allocation39_spill]] }
0x183f   : > { %v10479_v53 = vpop.eup %10478  ;;  %v7263_v39 = vmul.f32 %v10535_v27, %v10477_v42  ;;  %v6389_v46 = vmul.f32 %v6387_v51, %v12720_v29 }
0x1840   : > { %v10481_v60 = vpop.eup %10480  ;;  %v7252_v13 = vmul.f32 %v10536_v6, %v10479_v53  ;;  %v4010_v53 = vstv %s11487_s21  ;;  %s12746_s21 = sld [smem:[#allocation32_spill]] }
0x1841   : > { %v7265_v2 = vadd.f32 %v7263_v39, %v7253_v26  ;;  %v7262_v40 = vmul.f32 %v10537_v11, %v10481_v60  ;;  %v6390_v26 = vmul.f32 %v12719_v1, %v6387_v51  ;;  %v4013_v27 = vmul.f32 %v12719_v1, %v4010_v53  ;;  %v12749_v51 = vld [vmem:[#allocation59_spill] sm:$0xff] }
0x1842   : > { %v5202_v11 = vmul.f32 %v12719_v1, %v5199_v61 }
0x1843   : > { %v7264_v33 = vadd.f32 %v7262_v40, %v7252_v13  ;;  %v7267_v10 = vmul.f32 0.5, %v7265_v2  ;;  %v8025_v40 = vld [vmem:[%s12742_s5 + $0x18] sm:$0xff] }
0x1845   : > { %v7266_v5 = vmul.f32 0.5, %v7264_v33 }
0x185c   : > { %v7702_v56 = vpop.permute.xlu0 %7701 }
0x185f   : > { %v7700_v62 = vpop.permute.xlu1 %7699 }
0x1860   : > { %7705 = vxpose.xlu1.b32.start [1/2] (short) (narrow) %v7700_v62, 8  ;;  %v7488_v9 = vpop.permute.xlu0 %7487 }
0x1863   : > { %v7404_v12 = vpop.permute.xlu1 %7403 }
0x1864   : > { %10058 = vmatprep.subr.mxu1 %v7404_v12  ;;  %7706 = vxpose.xlu1.b32.end [2/2] (short) (narrow) %v7702_v56, 8  ;;  %v7400_v28 = vpop.permute.xlu0 %7399  ;;  %v8024_v56 = vld [vmem:[%s12742_s5 + $0x10] sm:$0xff] }
0x1865   : > { %10059 = vmatpush3.msra.mxu1 %v7404_v12  ;;  %10060 = vmatprep.mubr.msk.f32.mxu1 %vm1446_vm2, %v7400_v28  ;;  %v8022_v28 = vld [vmem:[%s12742_s5] sm:$0xff] }
0x1866   : > { %10063 = vmatprep.subr.mxu1 %v7488_v9 }
0x1867   : > { %v7402_v57 = vpop.permute.xlu1 %7401 }
0x1868   : > { %10061 = vmatmul.mubr.msk.f32.vlgmr.msra.gmra.mxu1 %vm1446_vm2, %v7402_v57  ;;  %vm7839_vm2 = vcmask 392192   ;;  %v12743_v57 = vld [vmem:[#allocation55_spill] sm:$0xff] }
0x1869   : > { %10064 = vmatpush3.msra.mxu1 %v7488_v9 }
0x186b   : > { %v7486_v22 = vpop.permute.xlu1 %7485 }
0x186c   : > { %10065 = vmatprep.subr.mxu1 %v7486_v22 }
0x186d   : > { %10066 = vmatpush3.msra.mxu1 %v7486_v22 }
0x186e   : > { %10070 = vmatprep.subr.mxu1 %v12714_v49 }
0x1882   : > { %7847 = vrot.lane.b32.xlu1 %v12152_v23, %s12726_s29 }
0x18f4   : > { %v10022_v47 = vpop.f32.mrf.mxu1 }
0x18f5   : > { %v7269_v0 = vmul.f32 %v10022_v47, %v11432_v4  ;;  %v7605_v4 = vpop.trf.xlu0 }
0x18f6   : > { %v7235_v52 = vpop.f32.mrf.mxu1 }
0x18f7   : > { %v7268_v59 = vmul.f32 %v7235_v52, %v11443_v19  ;;  %v7271_v21 = vmul.f32 %v7269_v0, %v7267_v10  ;;  %v7721_v19 = vpop.trf.xlu1  ;;  %v12745_v10 = vld [vmem:[#allocation53_spill] sm:$0xff] }
0x18f9   : > { %v7270_v54 = vmul.f32 %v7268_v59, %v7266_v5  ;;  %v7844_v30 = vpop.permute.xlu0 %7843  ;;  %v12744_v59 = vld [vmem:[#allocation52_spill] sm:$0xff] }
0x18fa   : > { %v7854_v35 = vsel %vm2118_vm15, %v12741_v50, %v7844_v30 }
0x18fb   : > { %10055 = vmatprep.mubr.f32.mxu0 %v7270_v54  ;;  %v7848_v34 = vpop.permute.xlu1 %7847  ;;  %v5193_v54 = vadd.f32 %v12745_v10, %v12744_v59 }
0x18fc   : > { %10056 = vmatmul.mubr.f32.vlgmr.msra.gmra.mxu0 %v7271_v21  ;;  %v7855_v14 = vsel %vm1257_vm0, %v7854_v35, %v7848_v34 }
0x18fd   : > { %10103 = vmatprep.mubr.msk.f32.mxu0 %vm10671_vm1, %v12714_v49  ;;  %10096 = vmatpush3.xpose.msk.msra.mxu0 %vm7875_vm4, %v8025_v40 }
0x18fe   : > { %10097 = vmatprep.subr.mxu0 %v12714_v49 }
0x1901   : > { %10098 = vmatpush3.xpose.msk.msra.mxu0 %vm7875_vm4, %v8024_v56 }
0x1902   : > { %10099 = vmatprep.subr.mxu0 %v12714_v49 }
0x1928   : > { %v12247_v23 = vpop.f32.mrf.mxu1 }
0x192a   : > { %v7476_v37 = vpop.f32.mrf.mxu1 }
0x19bc   : > { %v10057_v63 = vpop.f32.mrf.mxu0 }
0x19be   : > { %v7338_v44 = vpop.f32.mrf.mxu0 }
0x19bf   : > { %10067 = vmatprep.mubr.msk.f32.mxu1 %vm2118_vm15, %v7338_v44 }
0x19c0   : > { %10068 = vmatmul.mubr.msk.f32.vlgmr.msra.gmra.mxu1 %vm2118_vm15, %v10057_v63 }
0x19c1   : > { %10071 = vmatpush3.msra.mxu1 %v12713_v58  ;;  %10074 = vmatprep.mubr.msk.f32.mxu1 %vm10671_vm1, %v12714_v49 }
0x19c2   : > { %10072 = vmatprep.subr.mxu1 %v12714_v49 }
0x19c3   : > { %10073 = vmatpush3.msra.mxu1 %v12713_v58 }
0x19c4   : > { %10077 = vmatprep.subr.mxu1 %v12714_v49  ;;  %10075 = vmatmul.mubr.msk.f32.vlgmr.msra.gmra.mxu1 %vm2118_vm15, %v7605_v4 }
0x19c5   : > { %10078 = vmatpush3.msra.mxu1 %v7488_v9  ;;  %10081 = vmatprep.mubr.msk.f32.mxu1 %vm10671_vm1, %v12714_v49  ;;  %v4012_v9 = vmul.f32 %v4010_v53, %v12720_v29 }
0x19c6   : > { %10079 = vmatprep.subr.mxu1 %v12714_v49 }
0x19c7   : > { %10080 = vmatpush3.msra.mxu1 %v7486_v22 }
0x19c8   : > { %10082 = vmatmul.mubr.msk.f32.vlgmr.msra.gmra.mxu1 %vm2118_vm15, %v7721_v19  ;;  %v6381_v19 = vadd.f32 %v12128_v7, %v12126_v3  ;;  %v9070_v7 = vld [vmem:[%s12746_s21 + $0x1] ss:$0 sm:$0xff] }
0x1a80   : > { %v12249_v55 = vpop.f32.mrf.mxu1 }
0x1a82   : > { %v7563_v58 = vpop.f32.mrf.mxu1 }
0x1a83   : > { %v12251_v8 = vadd.f32 %v7563_v58, %v7476_v37 }
0x1a84   : > { %v7690_v41 = vpop.f32.mrf.mxu1 }
0x1a85   : > { %v7694_v25 = vmul.f32 1.442695, %v7690_v41 }
0x1a86   : > { %v10076_v36 = vpop.f32.mrf.mxu1 }
0x1a87   : > { %10482 = vpow2.f32 %v7694_v25  ;;  %v7569_v25 = vadd.f32 %v12249_v55, %v12247_v23  ;;  %v9060_v23 = vmul.f32 -1.442695, %v12720_v29  ;;  %v9061_v55 = vmul.f32 -1.442695, %v12719_v1 }
0x1a88   : > { %v7806_v24 = vpop.f32.mrf.mxu1 }
0x1a8a   : > { %v10083_v45 = vpop.f32.mrf.mxu1 }
0x1a8b   : > { %v9069_v45 = vld [vmem:[%s12746_s21] ss:$0 sm:$0xff] }
0x1a94   : > { %v10483_v16 = vpop.eup %10482 }
0x1a95   : > { %v7696_v38 = vmul.f32 %v10483_v16, %v7404_v12  ;;  %v8023_v12 = vld [vmem:[%s12742_s5 + $0x8] sm:$0xff] }
0x1a96   : > { %10100 = vmatpush3.xpose.msk.msra.mxu0 %vm7875_vm4, %v8023_v12 }
0x1a97   : > { %v7810_v20 = vadd.f32 %v7806_v24, %v7696_v38  ;;  %10101 = vmatprep.subr.mxu0 %v12714_v49 }
0x1a99   : > { %7851 = vrot.lane.b32.xlu0 %v7810_v20, %s12739_s8 }
0x1a9a   : > { %10102 = vmatpush3.xpose.msk.msra.mxu0 %vm7875_vm4, %v8022_v28 }
0x1a9b   : > { %10125 = vmatprep.subr.mxu0 %v12714_v49 }
0x1a9d   : > { %7572 = vrot.lane.b32.xlu0 %v12730_v31, %s12740_s1  ;;  %v5201_v31 = vmul.f32 %v5199_v61, %v12720_v29  ;;  %s12760_s1 = sld [smem:[#allocation37_spill]] }
0x1b0b   : > { %v7852_v15 = vpop.permute.xlu0 %7851 }
0x1b0c   : > { %v7856_v48 = vsel %vm7839_vm2, %v7855_v14, %v7852_v15 }
0x1b0d   : > { %v7999_v32 = vsel %vm7875_vm4, %v7856_v48, 0.0 }
0x1b0e   : > { %8000 = vadd.xlane.f32.xlu1 %v7999_v32 }
0x1b0f   : > { %v7573_v43 = vpop.permute.xlu0 %7572 }
0x1b10   : > { %10188 = vpush %v7573_v43  ;;  %v12747_v43 = vld [vmem:[#allocation60_spill] sm:$0xff] }
0x1b1f   : > { %5205 = vrot.lane.b32.xlu1 %v5201_v31, %s12739_s8  ;;  %v12748_v31 = vld [vmem:[#allocation58_spill] sm:$0xff] }
0x1b23   : > { %6393 = vrot.lane.b32.xlu1 %v6389_v46, %s12726_s29  ;;  %v4005_v46 = vadd.f32 %v12749_v51, %v12748_v31 }
0x1b27   : > { %6395 = vrot.lane.b32.xlu1 %v6390_v26, %s12726_s29 }
0x1b41   : > { %s10189_s3 = spop %10188 }
0x1b42   : > { %v7575_v42 = vstv %s10189_s3  ;;  %s12761_s3 = sld [smem:[#allocation36_spill]] }
0x1b43   : > { %v7578_v18 = vmul.f32 %v12719_v1, %v7575_v42  ;;  %v7577_v33 = vmul.f32 %v7575_v42, %v12720_v29 }
0x1b45   : > { %7583 = vrot.lane.b32.xlu1 %v7578_v18, %s12688_s28 }
0x1b49   : > { %4018 = vrot.lane.b32.xlu1 %v4013_v27, %s12706_s24 }
0x1b97   : > { %v8001_v39 = vpop.xlane.xlu1 %8000 }
0x1b98   : > { %v8002_v60 = vmul.f32 0.015625, %v8001_v39 }
0x1b9a   : > { %v8003_v6 = vsub.f32 %v7856_v48, %v8002_v60 }
0x1b9b   : > { %v5206_v62 = vpop.permute.xlu1 %5205 }
0x1b9c   : > { %v8004_v13 = vmul.f32 %v8003_v6, %v8003_v6  ;;  %v5211_v22 = vadd.f32 %v5206_v62, %v12743_v57 }
0x1b9e   : > { %v8005_v2 = vsel %vm7875_vm4, %v8004_v13, 0.0 }
0x1b9f   : > { %8006 = vadd.xlane.f32.xlu0 %v8005_v2  ;;  %v6394_v47 = vpop.permute.xlu1 %6393 }
0x1ba0   : > { %v6399_v0 = vadd.f32 %v6394_v47, %v12130_v17 }
0x1ba3   : > { %v6396_v4 = vpop.permute.xlu1 %6395 }
0x1ba4   : > { %v6400_v37 = vadd.f32 %v6396_v4, %v6381_v19 }
0x1bb5   : > { %5207 = vrot.lane.b32.xlu0 %v5202_v11, %s12739_s8 }
0x1bb7   : > { %v7584_v41 = vpop.permute.xlu1 %7583 }
0x1bb8   : > { %v7588_v36 = vadd.f32 %v7584_v41, %v7569_v25 }
0x1bb9   : > { %7581 = vrot.lane.b32.xlu0 %v7577_v33, %s12688_s28 }
0x1bbb   : > { %v4019_v14 = vpop.permute.xlu1 %4018 }
0x1bbc   : > { %v4023_v60 = vadd.f32 %v4019_v14, %v4005_v46 }
0x1bbd   : > { %4016 = vrot.lane.b32.xlu0 %v4012_v9, %s12706_s24  ;;  %s12750_s24 = sld [smem:[#allocation31_spill]] }
0x1bc1   : > { %7813 = vrot.lane.b32.xlu0 %v5211_v22, %s12688_s28 }
0x1bc3   : > { %v7903_v57 = vld [vmem:[%s12750_s24 + $0x18] sm:$0xff]  ;;  %v7902_v22 = vld [vmem:[%s12750_s24 + $0x10] sm:$0xff]  ;;  %v7900_v47 = vld [vmem:[%s12750_s24] sm:$0xff] }
0x1bc4   : > { %10084 = vmatprep.subr.msk.mxu1 %vm7875_vm4, %v7903_v57 }
0x1bc5   : > { %7821 = vrot.lane.b32.xlu0 %v6399_v0, %s12726_s29  ;;  %10085 = vmatpush3.xpose.msk.msra.mxu1 %vm7875_vm4, %v7903_v57 }
0x1bc6   : > { %10086 = vmatprep.subr.msk.mxu1 %vm7875_vm4, %v7902_v22 }
0x1bc9   : > { %10087 = vmatpush3.xpose.msk.msra.mxu1 %vm7875_vm4, %v7902_v22 }
0x1c28   : > { %v8007_v52 = vpop.xlane.xlu0 %8006 }
0x1c29   : > { %v8008_v5 = vmul.f32 0.015625, %v8007_v52  ;;  %v12752_v52 = vld [vmem:[#allocation49_spill] sm:$0xff] }
0x1c2b   : > { %v8009_v21 = vadd.f32 1e-05, %v8008_v5 }
0x1c2c   : > { %v5208_v63 = vpop.permute.xlu0 %5207 }
0x1c2d   : > { %10484 = vrsqrt.f32 %v8009_v21  ;;  %v5212_v44 = vadd.f32 %v5208_v63, %v5193_v54 }
0x1c2e   : > { %10486 = vpow2.f32 %v9060_v23  ;;  %v8119_v23 = vld [vmem:[%s12753_s20 + $0x38] sm:$0xff] }
0x1c2f   : > { %7815 = vrot.lane.b32.xlu1 %v5212_v44, %s12688_s28  ;;  %10488 = vpow2.f32 %v9061_v55  ;;  %s12751_s28 = sld [smem:[#allocation30_spill]]  ;;  %v8118_v55 = vld [vmem:[%s12753_s20 + $0x30] sm:$0xff] }
0x1c30   : > { %v7582_v17 = vpop.permute.xlu0 %7581 }
0x1c31   : > { %v7587_v58 = vadd.f32 %v7582_v17, %v12251_v8 }
0x1c33   : > { %7823 = vrot.lane.b32.xlu1 %v6400_v37, %s12726_s29  ;;  %7829 = vrot.lane.b32.xlu0 %v7587_v58, %s12739_s8  ;;  %s12758_s29 = sld [smem:[#allocation41_spill]] }
0x1c34   : > { %v4017_v34 = vpop.permute.xlu0 %4016 }
0x1c35   : > { %v4022_v61 = vadd.f32 %v4017_v34, %v12747_v43  ;;  %v9062_v37 = vld [vmem:[%s12751_s28] ss:$0 sm:$0xff]  ;;  %v8114_v34 = vld [vmem:[%s12753_s20 + $0x10] sm:$0xff]  ;;  %s12762_s28 = sld [smem:[#allocation38_spill]] }
0x1c36   : > { %v10539_v43 = vld [vmem:[%s11189_s11] sm:$0xff] }
0x1c37   : > { %7831 = vrot.lane.b32.xlu1 %v7588_v36, %s12739_s8  ;;  %s12759_s8 = sld [smem:[#allocation34_spill]] }
0x1c38   : > { %v7814_v35 = vpop.permute.xlu0 %7813 }
0x1c39   : > { %v7835_v26 = vsel %vm2118_vm15, %v4022_v61, %v7814_v35  ;;  %v8112_v35 = vld [vmem:[%s12753_s20] sm:$0xff] }
0x1c3a   : > { %v10485_v24 = vpop.eup %10484 }
0x1c3b   : > { %v8011_v3 = vmul.f32 %v10485_v24, %v8003_v6  ;;  %v10487_v8 = vpop.eup %10486 }
0x1c3c   : > { %v7863_v20 = vadd.f32 1.0, %v10487_v8  ;;  %v10489_v30 = vpop.eup %10488  ;;  %v7822_v15 = vpop.permute.xlu0 %7821  ;;  %v8117_v8 = vld [vmem:[%s12753_s20 + $0x28] sm:$0xff] }
0x1c3d   : > { %v8016_v16 = vmul.f32 %v9069_v45, %v8011_v3  ;;  %v7864_v50 = vadd.f32 1.0, %v10489_v30  ;;  %v7837_v42 = vsel %vm1257_vm0, %v7835_v26, %v7822_v15  ;;  %v8115_v30 = vld [vmem:[%s12753_s20 + $0x18] sm:$0xff]  ;;  %v10538_v15 = vld [vmem:[%s11189_s11 + $0x8] sm:$0xff]  ;;  %s12755_s11 = sld [smem:[#allocation35_spill]] }
0x1c3e   : > { %10490 = vrcp.f32 %v7863_v20  ;;  %v8116_v20 = vld [vmem:[%s12753_s20 + $0x20] sm:$0xff] }
0x1c3f   : > { %v8021_v38 = vadd.f32 %v9070_v7, %v8016_v16  ;;  %10492 = vrcp.f32 %v7864_v50  ;;  %v8113_v50 = vld [vmem:[%s12753_s20 + $0x8] sm:$0xff] }
0x1c41   : > { %10104 = vmatmul.mubr.msk.f32.vlgmr.msra.gmra.mxu0 %vm7875_vm4, %v8021_v38 }
0x1c42   : > { %10133 = vmatprep.mubr.msk.f32.mxu0 %vm10671_vm1, %v12714_v49 }
0x1c4b   : > { %v10491_v32 = vpop.eup %10490 }
0x1c4c   : > { %v7869_v53 = vmul.f32 %v10491_v32, %v12720_v29  ;;  %v10493_v39 = vpop.eup %10492 }
0x1c4d   : > { %v7870_v40 = vmul.f32 %v10493_v39, %v12719_v1  ;;  %v7901_v1 = vld [vmem:[%s12750_s24 + $0x8] sm:$0xff] }
0x1c4e   : > { %10088 = vmatprep.subr.msk.mxu1 %vm7875_vm4, %v7901_v1  ;;  %v8122_v39 = vld [vmem:[%s12664_s6 + $0x8] sm:$0xff] }
0x1c4f   : > { %10089 = vmatpush3.xpose.msk.msra.mxu1 %vm7875_vm4, %v7901_v1 }
0x1c50   : > { %10090 = vmatprep.subr.msk.mxu1 %vm7875_vm4, %v7900_v47 }
0x1c53   : > { %10091 = vmatpush3.xpose.msk.msra.mxu1 %vm7875_vm4, %v7900_v47 }
0x1c54   : > { %10106 = vmatprep.subr.mxu1 %v12714_v49 }
0x1ca1   : > { %v7816_v48 = vpop.permute.xlu1 %7815 }
0x1ca2   : > { %v7836_v2 = vsel %vm2118_vm15, %v4023_v60, %v7816_v48  ;;  %v12756_v60 = vld [vmem:[#allocation44_spill] sm:$0xff] }
0x1ca5   : > { %v7824_v18 = vpop.permute.xlu1 %7823  ;;  %v7830_v27 = vpop.permute.xlu0 %7829 }
0x1ca6   : > { %v7840_v6 = vsel %vm7839_vm2, %v7837_v42, %v7830_v27  ;;  %v7838_v11 = vsel %vm1257_vm0, %v7836_v2, %v7824_v18  ;;  %v8124_v18 = vld [vmem:[%s12664_s6 + $0x18] sm:$0xff]  ;;  %v12382_v27 = vld [vmem:[%s12754_s25] sm:$0xf]  ;;  %v12757_v2 = vld [vmem:[#allocation46_spill] sm:$0xff]  ;;  %s12468_s25 = sand.u32 1, %s10622_s16  }
0x1ca7   : > { %v7871_v13 = vmul.f32 %v7869_v53, %v7840_v6  ;;  %10126 = vmatpush3.xpose.msk.msra.mxu0 %vm7875_vm4, %v8124_v18  ;;  %v8123_v53 = vld [vmem:[%s12664_s6 + $0x10] sm:$0xff]  ;;  %v8143_v6 = vrot.slane %v12382_v27, %v12756_v60  ;;  %s8683_s4 = scalar_lea.sflag [#allocation3], %s12468_s25 }
0x1ca8   : > { %10127 = vmatprep.subr.mxu0 %v12714_v49 }
0x1ca9   : > { %v7832_v33 = vpop.permute.xlu1 %7831  ;;  %v7873_v56 = vmul.f32 %v7871_v13, %v7871_v13 }
0x1caa   : > { %v7841_v29 = vsel %vm7839_vm2, %v7838_v11, %v7832_v33  ;;  %v8148_v11 = vrot.slane %v12382_v27, %v12757_v2 }
0x1cab   : > { %v7872_v62 = vmul.f32 %v7870_v40, %v7841_v29  ;;  %v7876_v9 = vsel %vm7875_vm4, %v7873_v56, 0.0  ;;  %10128 = vmatpush3.xpose.msk.msra.mxu0 %vm7875_vm4, %v8123_v53  ;;  %v8121_v29 = vld [vmem:[%s12664_s6] sm:$0xff]  ;;  %s10696_s6 = smov [#allocation2]  }
0x1cac   : > { %7877 = vadd.xlane.f32.xlu0 %v7876_v9  ;;  %10129 = vmatprep.subr.mxu0 %v12714_v49  ;;  %s10544_s9 = sshll.u32 %s10696_s6, 4  ;;  %s10545_s9 = int_to_ptr.vmem [resolvable:$false] %s10544_s9 }
0x1cad   : > { %v7874_v12 = vmul.f32 %v7872_v62, %v7872_v62 }
0x1caf   : > { %v7879_v28 = vsel %vm7875_vm4, %v7874_v12, 0.0  ;;  %10130 = vmatpush3.xpose.msk.msra.mxu0 %vm7875_vm4, %v8122_v39 }
0x1cb0   : > { %7880 = vadd.xlane.f32.xlu1 %v7879_v28  ;;  %10131 = vmatprep.subr.mxu0 %v12714_v49 }
0x1cb3   : > { %10132 = vmatpush3.xpose.msk.msra.mxu0 %vm7875_vm4, %v8121_v29 }
0x1d01   : > { %v8107_v0 = vpop.f32.mrf.mxu0 }
0x1d02   : > { %v8126_v5 = vadd.f32 %v8107_v0, %v12752_v52 }
0x1d03   : > { %v10105_v59 = vpop.f32.mrf.mxu0 }
0x1d04   : > { %v8127_v10 = vsel %vm1257_vm0, %v8126_v5, 0.0 }
0x1d05   : > { %8128 = vadd.xlane.f32.xlu0 %v8127_v10 }
0x1d35   : > { %v7878_v54 = vpop.xlane.xlu0 %7877 }
0x1d36   : > { %v7883_v21 = vmul.f32 0.015625, %v7878_v54 }
0x1d38   : > { %v7885_v63 = vadd.f32 1e-05, %v7883_v21 }
0x1d39   : > { %v7881_v44 = vpop.xlane.xlu1 %7880 }
0x1d3a   : > { %10494 = vrsqrt.f32 %v7885_v63  ;;  %v7884_v4 = vmul.f32 0.015625, %v7881_v44  ;;  %v8378_v63 = vld [vmem:[%s12755_s11 + $0x30] sm:$0xff]  ;;  %v8377_v44 = vld [vmem:[%s12755_s11 + $0x28] sm:$0xff] }
0x1d3c   : > { %v7886_v19 = vadd.f32 1e-05, %v7884_v4  ;;  %v8376_v4 = vld [vmem:[%s12755_s11 + $0x20] sm:$0xff] }
0x1d3e   : > { %10496 = vrsqrt.f32 %v7886_v19  ;;  %v8375_v19 = vld [vmem:[%s12755_s11 + $0x18] sm:$0xff] }
0x1d47   : > { %v10495_v17 = vpop.eup %10494 }
0x1d48   : > { %v7889_v58 = vmul.f32 %v10495_v17, %v7871_v13  ;;  %v8374_v17 = vld [vmem:[%s12755_s11 + $0x10] sm:$0xff] }
0x1d4a   : > { %v7898_v41 = vmul.f32 %v9062_v37, %v7889_v58  ;;  %v8372_v58 = vld [vmem:[%s12755_s11] sm:$0xff] }
0x1d4b   : > { %v10497_v25 = vpop.eup %10496 }
0x1d4c   : > { %v7890_v36 = vmul.f32 %v10497_v25, %v7872_v62  ;;  %10092 = vmatprep.mubr.msk.f32.mxu1 %vm7875_vm4, %v7898_v41  ;;  %v8379_v62 = vld [vmem:[%s12755_s11 + $0x38] sm:$0xff] }
0x1d4d   : > { %10136 = vmatprep.subr.msk.mxu0 %vm1257_vm0, %v8379_v62 }
0x1d4e   : > { %v7899_v24 = vmul.f32 %v9062_v37, %v7890_v36  ;;  %v8373_v37 = vld [vmem:[%s12755_s11 + $0x8] sm:$0xff]  ;;  %s10546_s11 = scalar_lea.vmem %s10545_s9, 256 }
0x1d50   : > { %10093 = vmatmul.mubr.msk.f32.vlgmr.msra.gmra.mxu1 %vm7875_vm4, %v7899_v24 }
0x1d51   : > { %10122 = vmatprep.mubr.msk.f32.mxu1 %vm10671_vm1, %v12714_v49  ;;  %10107 = vmatpush3.xpose.msk.msra.mxu1 %vm1257_vm0, %v8119_v23 }
0x1d52   : > { %10108 = vmatprep.subr.mxu1 %v12714_v49 }
0x1d55   : > { %10109 = vmatpush3.xpose.msk.msra.mxu1 %vm1257_vm0, %v8118_v55 }
0x1d56   : > { %10110 = vmatprep.subr.mxu1 %v12714_v49 }
0x1d59   : > { %10111 = vmatpush3.xpose.msk.msra.mxu1 %vm1257_vm0, %v8117_v8 }
0x1d5a   : > { %10112 = vmatprep.subr.mxu1 %v12714_v49 }
0x1d5d   : > { %10113 = vmatpush3.xpose.msk.msra.mxu1 %vm1257_vm0, %v8116_v20  ;;  %v8384_v20 = vld [vmem:[%s12760_s1 + $0x18] sm:$0xff] }
0x1d5e   : > { %10114 = vmatprep.subr.mxu1 %v12714_v49 }
0x1d61   : > { %10115 = vmatpush3.xpose.msk.msra.mxu1 %vm1257_vm0, %v8115_v30  ;;  %v8383_v30 = vld [vmem:[%s12760_s1 + $0x10] sm:$0xff] }
0x1d62   : > { %10116 = vmatprep.subr.mxu1 %v12714_v49 }
0x1d65   : > { %10117 = vmatpush3.xpose.msk.msra.mxu1 %vm1257_vm0, %v8114_v34 }
0x1d66   : > { %10118 = vmatprep.subr.mxu1 %v12714_v49 }
0x1d69   : > { %10119 = vmatpush3.xpose.msk.msra.mxu1 %vm1257_vm0, %v8113_v50 }
0x1d6a   : > { %10120 = vmatprep.subr.mxu1 %v12714_v49 }
0x1d6d   : > { %10121 = vmatpush3.xpose.msk.msra.mxu1 %vm1257_vm0, %v8112_v35 }
0x1d6e   : > { %10155 = vmatprep.subr.msk.mxu1 %vm7875_vm4, %v8384_v20 }
0x1d8e   : > { %v8129_v45 = vpop.xlane.xlu0 %8128 }
0x1d8f   : > { %v8130_v3 = vmul.f32 0.03125, %v8129_v45 }
0x1d91   : > { %v8131_v7 = vsub.f32 %v8126_v5, %v8130_v3  ;;  %v9076_v5 = vld [vmem:[%s12758_s29] ss:$0 sm:$0xff]  ;;  %s8898_s29 = sshll.u32 %s12468_s25, 3 }
0x1d93   : > { %v8132_v16 = vmul.f32 %v8131_v7, %v8131_v7 }
0x1d95   : > { %v8133_v38 = vsel %vm1257_vm0, %v8132_v16, 0.0 }
0x1d96   : > { %8134 = vadd.xlane.f32.xlu0 %v8133_v38 }
0x1e10   : > { %v10094_v14 = vpop.f32.mrf.mxu1 }
0x1e11   : > { %v8387_v48 = vadd.f32 %v10538_v15, %v10094_v14 }
0x1e12   : > { %v7988_v32 = vpop.f32.mrf.mxu1 }
0x1e13   : > { %v8386_v61 = vadd.f32 %v10539_v43, %v7988_v32  ;;  %v8391_v31 = vsel %vm1257_vm0, %v8387_v48, 0.0  ;;  %v8381_v32 = vld [vmem:[%s12760_s1] sm:$0xff] }
0x1e14   : > { %8392 = vadd.xlane.f32.xlu0 %v8391_v31  ;;  %v9091_v43 = vld [vmem:[%s10887_s27] ss:$0 sm:$0xff] }
0x1e15   : > { %v8388_v51 = vsel %vm1257_vm0, %v8386_v61, 0.0 }
0x1e16   : > { %8389 = vadd.xlane.f32.xlu1 %v8388_v51 }
0x1e1f   : > { %v8135_v46 = vpop.xlane.xlu0 %8134 }
0x1e20   : > { %v8136_v26 = vmul.f32 0.03125, %v8135_v46 }
0x1e22   : > { %v8137_v42 = vadd.f32 1e-05, %v8136_v26 }
0x1e24   : > { %10498 = vrsqrt.f32 %v8137_v42  ;;  %v9092_v42 = vld [vmem:[%s12761_s3] ss:$0 sm:$0xff]  ;;  %s9112_s3 = sshll.u32 %s10920_s0, 7 }
0x1e31   : > { %v10499_v13 = vpop.eup %10498 }
0x1e32   : > { %v8139_v40 = vmul.f32 %v10499_v13, %v8131_v7  ;;  %v12427_v7 = vld [vmem:[%s12759_s8] sm:$0xf]  ;;  %s1205_s8 = scalar_lea.vmem [#allocation2], %s8898_s29 }
0x1e33   : > { %v8417_v38 = vrot.slane %v12427_v7, %v12756_v60  ;;  %v8423_v50 = vrot.slane %v12427_v7, %v12757_v2 }
0x1e34   : > { %v8144_v33 = vmul.f32 %v8143_v6, %v8139_v40  ;;  %v9109_v40 = vld [vmem:[%s12762_s28] ss:$0 sm:$0xff]  ;;  %s8701_s28 = sshll.u32 %s1205_s8, 4  ;;  %s8702_s28 = int_to_ptr.vmem [resolvable:$true] %s8701_s28 }
0x1e35   : > { %s10540_s5 = scalar_lea.vmem %s8702_s28, 128  ;;  %p10547_p0 = scmp.lt.s32.totalorder %s8702_s28, %s10545_s9 }
0x1e36   : > { %v12392_v56 = vadd.f32 %v8148_v11, %v8144_v33  ;;  %p10541_p11 = scmp.ne.s32.totalorder %s8702_s28, %s10540_s5  ;;  %p10548_p1 = scmp.lt.s32.totalorder %s10546_s11, %s10540_s5 }
0x1e38   : > { %10123 = vmatmul.mubr.msk.f32.vlgmr.msra.gmra.mxu1 %vm1257_vm0, %v12392_v56  ;;  %p10542_p12 = pnand %p10541_p11, %p10937_p5  ;;  %p10549_p2 = por %p10548_p1, %p10547_p0 }
0x1e39   : > { %10156 = vmatpush3.xpose.msk.msra.mxu1 %vm7875_vm4, %v8384_v20 }
0x1e3a   : > { %10157 = vmatprep.subr.msk.mxu1 %vm7875_vm4, %v8383_v30  ;;  %p10543_p13 = pneg %p10542_p12 }
0x1e3c   : > { %p10550_p3 = pnand %p10549_p2, %p10543_p13 }
0x1e3d   : > { %10158 = vmatpush3.xpose.msk.msra.mxu1 %vm7875_vm4, %v8383_v30 }
0x1e9d   : > { %v8393_v9 = vpop.xlane.xlu0 %8392 }
0x1e9e   : > { %v8395_v12 = vmul.f32 0.03125, %v8393_v9 }
0x1e9f   : > { %v8390_v49 = vpop.xlane.xlu1 %8389 }
0x1ea0   : > { %v8397_v28 = vsub.f32 %v8387_v48, %v8395_v12  ;;  %v8394_v57 = vmul.f32 0.03125, %v8390_v49  ;;  %v8382_v48 = vld [vmem:[%s12760_s1 + $0x8] sm:$0xff]  ;;  %s8699_s1 = scalar_lea.hbm %s10892_s12, %s9112_s3 }
0x1ea1   : > { %10159 = vmatprep.subr.msk.mxu1 %vm7875_vm4, %v8382_v48 }
0x1ea2   : > { %v8396_v22 = vsub.f32 %v8386_v61, %v8394_v57  ;;  %v8399_v1 = vmul.f32 %v8397_v28, %v8397_v28  ;;  %10160 = vmatpush3.xpose.msk.msra.mxu1 %vm7875_vm4, %v8382_v48 }
0x1ea3   : > { %10161 = vmatprep.subr.msk.mxu1 %vm7875_vm4, %v8381_v32 }
0x1ea4   : > { %v8403_v47 = vsel %vm1257_vm0, %v8399_v1, 0.0  ;;  %v8398_v0 = vmul.f32 %v8396_v22, %v8396_v22 }
0x1ea5   : > { %8404 = vadd.xlane.f32.xlu0 %v8403_v47 }
0x1ea6   : > { %v8400_v52 = vsel %vm1257_vm0, %v8398_v0, 0.0  ;;  %10162 = vmatpush3.xpose.msk.msra.mxu1 %vm7875_vm4, %v8381_v32 }
0x1ea7   : > { %8401 = vadd.xlane.f32.xlu1 %v8400_v52 }
0x1ef8   : > { %v8249_v59 = vpop.f32.mrf.mxu1 }
0x1ef9   : > { %v8250_v10 = vadd.f32 %v9076_v5, %v8249_v59 }
0x1efa   : > { %v10124_v54 = vpop.f32.mrf.mxu1 }
0x1efb   : > { %v8253_v21 = vmax.f32 %v8250_v10, 0.0 }
0x1efd   : > { %10134 = vmatmul.mubr.msk.f32.vlgmr.msra.gmra.mxu0 %vm7875_vm4, %v8253_v21 }
0x1efe   : > { %10137 = vmatpush3.xpose.msk.msra.mxu0 %vm1257_vm0, %v8379_v62 }
0x1eff   : > { %10138 = vmatprep.subr.msk.mxu0 %vm1257_vm0, %v8378_v63 }
0x1f02   : > { %10139 = vmatpush3.xpose.msk.msra.mxu0 %vm1257_vm0, %v8378_v63 }
0x1f03   : > { %10140 = vmatprep.subr.msk.mxu0 %vm1257_vm0, %v8377_v44 }
0x1f06   : > { %10141 = vmatpush3.xpose.msk.msra.mxu0 %vm1257_vm0, %v8377_v44 }
0x1f07   : > { %10142 = vmatprep.subr.msk.mxu0 %vm1257_vm0, %v8376_v4 }
0x1f0a   : > { %10143 = vmatpush3.xpose.msk.msra.mxu0 %vm1257_vm0, %v8376_v4 }
0x1f0b   : > { %10144 = vmatprep.subr.msk.mxu0 %vm1257_vm0, %v8375_v19 }
0x1f0e   : > { %10145 = vmatpush3.xpose.msk.msra.mxu0 %vm1257_vm0, %v8375_v19 }
0x1f0f   : > { %10146 = vmatprep.subr.msk.mxu0 %vm1257_vm0, %v8374_v17 }
0x1f12   : > { %10147 = vmatpush3.xpose.msk.msra.mxu0 %vm1257_vm0, %v8374_v17 }
0x1f13   : > { %10148 = vmatprep.subr.msk.mxu0 %vm1257_vm0, %v8373_v37 }
0x1f16   : > { %10149 = vmatpush3.xpose.msk.msra.mxu0 %vm1257_vm0, %v8373_v37  ;;  %v12763_v37 = vld [vmem:[#allocation43_spill] sm:$0xff] }
0x1f17   : > { %10150 = vmatprep.subr.msk.mxu0 %vm1257_vm0, %v8372_v58 }
0x1f1a   : > { %10151 = vmatpush3.xpose.msk.msra.mxu0 %vm1257_vm0, %v8372_v58  ;;  %v8363_v58 = vrot.slane %v12382_v27, %v12763_v37 }
0x1f2e   : > { %v8405_v41 = vpop.xlane.xlu0 %8404 }
0x1f2f   : > { %v8407_v25 = vmul.f32 0.03125, %v8405_v41 }
0x1f30   : > { %v8402_v36 = vpop.xlane.xlu1 %8401 }
0x1f31   : > { %v8409_v24 = vadd.f32 1e-05, %v8407_v25  ;;  %v8406_v45 = vmul.f32 0.03125, %v8402_v36  ;;  %v12764_v36 = vld [vmem:[#allocation45_spill] sm:$0xff] }
0x1f33   : > { %10500 = vrsqrt.f32 %v8409_v24  ;;  %v8408_v3 = vadd.f32 1e-05, %v8406_v45  ;;  %v8368_v24 = vrot.slane %v12382_v27, %v12764_v36 }
0x1f35   : > { %10502 = vrsqrt.f32 %v8408_v3 }
0x1f40   : > { %v10501_v16 = vpop.eup %10500 }
0x1f41   : > { %v8413_v23 = vmul.f32 %v10501_v16, %v8397_v28 }
0x1f42   : > { %v10503_v55 = vpop.eup %10502 }
0x1f43   : > { %v8412_v8 = vmul.f32 %v10503_v55, %v8396_v22  ;;  %v8419_v34 = vmul.f32 %v8417_v38, %v8413_v23 }
0x1f45   : > { %v8418_v35 = vmul.f32 %v8417_v38, %v8412_v8  ;;  %v8425_v15 = vadd.f32 %v8423_v50, %v8419_v34 }
0x1f47   : > { %v8424_v14 = vadd.f32 %v8423_v50, %v8418_v35 }
0x1f49   : > { %10152 = vmatprep.mubr.msk.f32.mxu0 %vm1257_vm0, %v8424_v14 }
0x1f4a   : > { %10153 = vmatmul.mubr.msk.f32.vlgmr.msra.gmra.mxu0 %vm1257_vm0, %v8425_v15 }
0x1fbd   : > { %v8335_v61 = vpop.f32.mrf.mxu0 }
0x1fbe   : > { %v8339_v31 = vadd.f32 %v8335_v61, %v12392_v56 }
0x1fbf   : > { %v10135_v51 = vpop.f32.mrf.mxu0 }
0x1fc0   : > { %v8346_v46 = vadd.f32 %v9091_v43, %v8339_v31 }
0x1fc2   : > { %v8347_v26 = vsel %vm1257_vm0, %v8346_v46, 0.0 }
0x1fc3   : > { %8348 = vadd.xlane.f32.xlu1 %v8347_v26 }
0x200a   : > { %v10154_v18 = vpop.f32.mrf.mxu0 }
0x200b   : > { %v8534_v53 = vadd.f32 %v10154_v18, %v9092_v42 }
0x200c   : > { %v8528_v39 = vpop.f32.mrf.mxu0 }
0x200d   : > { %v8529_v60 = vadd.f32 %v9092_v42, %v8528_v39  ;;  %v8538_v13 = vmax.f32 %v8534_v53, 0.0 }
0x200f   : > { %v8537_v6 = vmax.f32 %v8529_v60, 0.0 }
0x2011   : > { %10163 = vmatprep.mubr.msk.f32.mxu1 %vm7875_vm4, %v8537_v6 }
0x2012   : > { %10164 = vmatmul.mubr.msk.f32.vlgmr.msra.gmra.mxu1 %vm7875_vm4, %v8538_v13 }
0x204c   : > { %v8349_v2 = vpop.xlane.xlu1 %8348 }
0x204d   : > { %v8350_v11 = vmul.f32 0.03125, %v8349_v2 }
0x204f   : > { %v8351_v62 = vsub.f32 %v8346_v46, %v8350_v11 }
0x2051   : > { %v8352_v22 = vmul.f32 %v8351_v62, %v8351_v62 }
0x2053   : > { %v8353_v1 = vsel %vm1257_vm0, %v8352_v22, 0.0 }
0x20d2   : > { %v10165_v33 = vpop.f32.mrf.mxu1 }
0x20d3   : > { %v8633_v56 = vadd.f32 %v10165_v33, %v8425_v15 }
0x20d4   : > { %v8623_v29 = vpop.f32.mrf.mxu1 }
0x20d5   : > { %v8641_v9 = vadd.f32 %v9109_v40, %v8633_v56  ;;  %v8632_v12 = vadd.f32 %v8623_v29, %v8424_v14 }
0x20d7   : > { %v8640_v49 = vadd.f32 %v9109_v40, %v8632_v12  ;;  %v8645_v28 = vsel %vm1257_vm0, %v8641_v9, 0.0 }
0x20d8   : > { %8646 = vadd.xlane.f32.xlu1 %v8645_v28 }
0x20d9   : > { %v8642_v57 = vsel %vm1257_vm0, %v8640_v49, 0.0 }
0x20da   : > { %8643 = vadd.xlane.f32.xlu0 %v8642_v57 }
0x20de   : > { %8354 = vadd.xlane.f32.xlu0 %v8353_v1 }
0x2161   : > { %v8647_v47 = vpop.xlane.xlu1 %8646 }
0x2162   : > { %v8649_v0 = vmul.f32 0.03125, %v8647_v47 }
0x2163   : > { %v8644_v52 = vpop.xlane.xlu0 %8643 }
0x2164   : > { %v12457_v5 = vsub.f32 %v8641_v9, %v8649_v0  ;;  %v8648_v59 = vmul.f32 0.03125, %v8644_v52 }
0x2166   : > { %v12459_v10 = vsub.f32 %v8640_v49, %v8648_v59  ;;  %v8653_v54 = vmul.f32 %v12457_v5, %v12457_v5 }
0x2167   : > { %v8355_v21 = vpop.xlane.xlu0 %8354 }
0x2168   : > { %v8356_v63 = vmul.f32 0.03125, %v8355_v21  ;;  %v8657_v44 = vsel %vm1257_vm0, %v8653_v54, 0.0  ;;  %v8652_v4 = vmul.f32 %v12459_v10, %v12459_v10 }
0x2169   : > { %8658 = vadd.xlane.f32.xlu0 %v8657_v44 }
0x216a   : > { %v8357_v19 = vadd.f32 1e-05, %v8356_v63  ;;  %v8654_v17 = vsel %vm1257_vm0, %v8652_v4, 0.0 }
0x216b   : > { %8655 = vadd.xlane.f32.xlu1 %v8654_v17 }
0x216c   : > { %10504 = vrsqrt.f32 %v8357_v19 }
0x2179   : > { %v10505_v41 = vpop.eup %10504 }
0x217a   : > { %v8359_v25 = vmul.f32 %v10505_v41, %v8351_v62 }
0x217c   : > { %v8364_v45 = vmul.f32 %v8363_v58, %v8359_v25 }
0x217e   : > { %v8369_v3 = vadd.f32 %v8368_v24, %v8364_v45 }
0x2180   : > { %8370 = vst.msk [vmem:[%s1205_s8] sm:$0xff] %vm1257_vm0, %v8369_v3 }
0x2181   : > { %10553 = shalt.err (!%p10550_p3)
}
0x2182   : > { %s10554_s29 = scalar_lea.hbm %s8699_s1, 128  ;;  %s10558_s8 = scalar_lea.hbm %s10892_s12, 256 }
0x2183   : > { %p10555_p4 = scmp.ne.s32.totalorder %s8699_s1, %s10554_s29  ;;  %p10559_p9 = scmp.lt.s32.totalorder %s8699_s1, %s10892_s12 }
0x2184   : > { %p10560_p10 = scmp.lt.s32.totalorder %s10558_s8, %s10554_s29 }
0x2185   : > { %p10556_p7 = pnand %p10555_p4, %p10937_p5 }
0x2186   : > { %p10561_p11 = por %p10560_p10, %p10559_p9 }
0x2187   : > { %p10557_p8 = pneg %p10556_p7 }
0x2189   : > { %p10562_p12 = pnand %p10561_p11, %p10557_p8 }
0x218b   : > { %10565 = shalt.err (!%p10562_p12)
}
0x218c   : > { %10190 = dma.vmem_to_hbm [thread:$0]  (%p10937_p5), %s8702_s28, 128, %s8699_s1, %s8683_s4   ;;  %v8671_v20 = vrot.slane %v12427_v7, %v12763_v37  ;;  %v8677_v34 = vrot.slane %v12427_v7, %v12764_v36 }
0x218d   : > { %s8899_s9 = sshll.u32 %s12468_s25, 4  ;;  %s9119_s6 = sshll.u32 %s10920_s0, 8 }
0x218e   : > { %s1212_s4 = scalar_lea.vmem [#allocation4], %s8899_s9  ;;  %s12496_s11 = scalar_lea.hbm %s10897_s14, %s9119_s6 }
0x218f   : > { %s8714_s5 = sshll.u32 %s1212_s4, 4  ;;  %s8688_s1 = scalar_lea.sflag [#allocation5], %s12468_s25  ;;  %s12499_s5 = int_to_ptr.vmem [resolvable:$true] %s8714_s5 }
0x2190   : > { %s10566_s3 = scalar_lea.vmem %s12499_s5, 256  ;;  %s10697_s0 = smov [#allocation4]  }
0x2191   : > { %p10567_p13 = scmp.ne.s32.totalorder %s12499_s5, %s10566_s3  ;;  %s10570_s28 = sshll.u32 %s10697_s0, 4  ;;  %s10571_s28 = int_to_ptr.vmem [resolvable:$false] %s10570_s28 }
0x2192   : > { %s10572_s29 = scalar_lea.vmem %s10571_s28, 512  ;;  %p10573_p2 = scmp.lt.s32.totalorder %s12499_s5, %s10571_s28 }
0x2193   : > { %p10568_p0 = pnand %p10567_p13, %p10937_p5  ;;  %p10574_p3 = scmp.lt.s32.totalorder %s10572_s29, %s10566_s3 }
0x2195   : > { %p10569_p1 = pneg %p10568_p0  ;;  %p10575_p4 = por %p10574_p3, %p10573_p2 }
0x2197   : > { %p10576_p7 = pnand %p10575_p4, %p10569_p1 }
0x21f2   : > { %v8659_v27 = vpop.xlane.xlu0 %8658 }
0x21f3   : > { %v8661_v16 = vmul.f32 0.03125, %v8659_v27 }
0x21f4   : > { %v8656_v38 = vpop.xlane.xlu1 %8655 }
0x21f5   : > { %v8663_v23 = vadd.f32 1e-05, %v8661_v16  ;;  %v8660_v55 = vmul.f32 0.03125, %v8656_v38 }
0x21f7   : > { %10506 = vrsqrt.f32 %v8663_v23  ;;  %v8662_v8 = vadd.f32 1e-05, %v8660_v55 }
0x21f9   : > { %10508 = vrsqrt.f32 %v8662_v8 }
0x2204   : > { %v10507_v30 = vpop.eup %10506 }
0x2205   : > { %v8667_v50 = vmul.f32 %v10507_v30, %v12457_v5 }
0x2206   : > { %v10509_v35 = vpop.eup %10508 }
0x2207   : > { %v8673_v14 = vmul.f32 %v8671_v20, %v8667_v50  ;;  %v8666_v15 = vmul.f32 %v10509_v35, %v12459_v10 }
0x2209   : > { %v8672_v48 = vmul.f32 %v8671_v20, %v8666_v15  ;;  %v8679_v32 = vadd.f32 %v8677_v34, %v8673_v14 }
0x220b   : > { %v8678_v43 = vadd.f32 %v8677_v34, %v8672_v48  ;;  %8681 = vst.msk [vmem:[%s1212_s4 + $0x8] sm:$0xff] %vm1257_vm0, %v8679_v32 }
0x220d   : > { %8680 = vst.msk [vmem:[%s1212_s4] sm:$0xff] %vm1257_vm0, %v8678_v43 }
0x220e   : > { %10579 = shalt.err (!%p10576_p7)
}
0x220f   : > { %s10580_s8 = scalar_lea.hbm %s12496_s11, 256  ;;  %s10584_s9 = scalar_lea.hbm %s10897_s14, 512 }
0x2210   : > { %p10581_p8 = scmp.ne.s32.totalorder %s12496_s11, %s10580_s8  ;;  %p10585_p11 = scmp.lt.s32.totalorder %s12496_s11, %s10897_s14 }
0x2211   : > { %p10586_p12 = scmp.lt.s32.totalorder %s10584_s9, %s10580_s8 }
0x2212   : > { %p10582_p9 = pnand %p10581_p8, %p10937_p5 }
0x2213   : > { %p10587_p13 = por %p10586_p12, %p10585_p11 }
0x2214   : > { %p10583_p10 = pneg %p10582_p9 }
0x2216   : > { %p10588_p0 = pnand %p10587_p13, %p10583_p10 }
0x2218   : > { %10591 = shalt.err (!%p10588_p0)
}
0x2219   : > { %s10698_s6 = smov 128  }
0x221a   : > { %10191 = dma.vmem_to_hbm [thread:$0]  (%p10937_p5), %s12499_s5, 256, %s12496_s11, %s8688_s1, %s10698_s6, %s10698_s6, %s12704_s17  }
0x221b PF: > { %p10201_p1 = scmp.ge.s32.totalorder %s10630_s22, 2  ;;  %s8729_s4 = sand.u32 1, %s10618_s15  }
0x221c   : > { %s8730_s3 = scalar_lea.sflag [#allocation3], %s8729_s4 }
0x221d   : > { %p10195_p2 = pnand %p10201_p1, %p10941_p6 }
0x221f   : > { %p10196_p3 = pneg %p10195_p2 }
0x2221   : > { %10609 = dma.done.wait (%p10196_p3), %s8730_s3, 128  }
0x2222   : > { %10611 = vsyncadd (%p10196_p3), %s8730_s3, 4294967168  ;;  %s8739_s0 = scalar_lea.sflag [#allocation5], %s8729_s4 }
0x2223   : > { %10613 = dma.done.wait (%p10196_p3), %s8739_s0, 256  }
0x2224   : > { %10615 = vsyncadd (%p10196_p3), %s8739_s0, 4294967040  ;;  %p91_p5 = scmp.ge.s32.totalorder %s10924_s26, 4   ;;  %s12765_s15 = smov %s10622_s16 }
0x2225   : > { %s12766_s16 = smov %s10626_s18  ;;  %s12767_s18 = smov %s10935_s2 }
0x2226   : > { %s12768_s22 = smov %s10924_s26  ;;  %93 = sbr.rel (!%p91_p5) target bundleno = 90 (0x5a), region = 270 }
0x222b   :  { %8744 = vsyncpa [#allocation3], 1 }
0x222c   :  { %8746 = vsyncpa [#allocation3 + $0x1], 1 }
0x222d   :  { %8747 = vsyncpa [#allocation5], 1 }
0x222e   :  { %8749 = vsyncpa [#allocation5 + $0x1], 1 }

</bundles_post_ra>
